<compile_context>
chip_gen: v5e
topology: v5e:2x2
jax: 0.10.0
libtpu: 0.0.40
codegen_flags: <defaults>
</compile_context>

<pallas_src>
import math

import jax
import jax.numpy as jnp
from jax.experimental import pallas as pl
from jax.experimental.pallas import tpu as pltpu


def _round_up(x, m):
    return (x + m - 1) // m * m


def up_conv_forward(x_nchw, weight, bias, gamma, beta, running_mean, running_var,
                    eps=1e-5):
    """Forward of `up_conv`: Upsample(x2, nearest) -> Conv2d(3x3, pad=1) -> BN -> ReLU.

    x_nchw: [N, Cin, H, W] (PyTorch layout); weight: [Cout, Cin, 3, 3]; bias: [Cout]
    returns [N, Cout, 2H, 2W] float32.
    """
    N, Cin, H, W = x_nchw.shape
    Cout = weight.shape[0]
    H2, W2 = 2 * H, 2 * W

    Cin_p = _round_up(Cin, 128)      # lane-dense matmul K dim
    Cout_p = _round_up(Cout, 128)    # lane-dense matmul N dim / output lanes
    TCo = 128                        # Cout tile (keeps the weight block small)
    TH = math.gcd(H, 8)              # row tile (tunable: larger on v6e, smaller on v7x)
    if (TH * W) % 8 != 0:            # keep the output block sublane-aligned
        TH = H
    n_co = Cout_p // TCo
    n_h = H // TH

    # ---- wrapper-side layout prep (tiny data movement, no upsample in HBM) ----
    # NCHW -> NHWC, pad 1 spatially (on the ORIGINAL grid), pad channels, cast bf16.
    x_nhwc = jnp.transpose(x_nchw, (0, 2, 3, 1))
    x_pad = jnp.pad(x_nhwc, ((0, 0), (1, 1), (1, 1), (0, Cin_p - Cin)))
    x_pad = x_pad.astype(jnp.bfloat16)
    Hp, Wp = H + 2, W + 2

    # Fold Upsample(x2, nearest) + Conv2d(3x3) into 4 parity-specific 2x2 kernels:
    #   out[2a+pa, 2b+pb] = sum_{dr,dc in {0,1}} x_pad[a+pa+dr, b+pb+dc] @ Weff[pa,pb,dr,dc]
    # A[p, d, k] = 1 iff original tap k contributes to (parity p, folded tap d).
    A = jnp.array([[[1., 0., 0.],      # pa=0: dr=0 <- kh=0 ; dr=1 <- kh=1 + kh=2
                    [0., 1., 1.]],
                   [[1., 1., 0.],      # pa=1: dr=0 <- kh=0 + kh=1 ; dr=1 <- kh=2
                    [0., 0., 1.]]], dtype=jnp.float32)
    w_hwio = jnp.transpose(weight, (2, 3, 1, 0)).astype(jnp.float32)     # (3,3,Cin,Cout)
    w_eff = jnp.einsum('prh,qsw,hwio->pqrsio', A, A, w_hwio)             # (2,2,2,2,Cin,Cout)
    w_eff = w_eff.reshape(16, Cin, Cout)        # t = ((pa*2+pb)*2+dr)*2+dc
    w_eff = jnp.pad(w_eff, ((0, 0), (0, Cin_p - Cin), (0, Cout_p - Cout)))
    w_eff = w_eff.astype(jnp.bfloat16)

    # conv bias + BatchNorm (inference) folded into per-channel scale/shift (f32).
    scale = gamma / jnp.sqrt(running_var + eps)
    shift = (bias - running_mean) * scale + beta
    scale_p = jnp.pad(scale, (0, Cout_p - Cout)).reshape(1, Cout_p).astype(jnp.float32)
    shift_p = jnp.pad(shift, (0, Cout_p - Cout)).reshape(1, Cout_p).astype(jnp.float32)
    # ---------------------------------------------------------------------------

    def kernel(x_ref, w_ref, scale_ref, shift_ref, o_ref, acc_ref):
        # x_ref:     (1, Hp, Wp, Cin_p) bf16 -- whole padded image, resident across (co, rows)
        # w_ref:     (16, Cin_p, TCo)   bf16 -- parity-folded taps for this Cout tile
        # scale_ref: (1, TCo) f32, shift_ref: (1, TCo) f32
        # o_ref:     (1, 4, TH*W, TCo)  f32  -- parity-major, lane-dense output slab
        # acc_ref:   (TH*W, TCo)        f32  -- VMEM accumulator scratch
        i = pl.program_id(2)
        row_base = i * TH
        sc = scale_ref[...]                  # (1, TCo), broadcasts over rows
        sh = shift_ref[...]
        for pa in range(2):
            for pb in range(2):
                acc_ref[...] = jnp.zeros_like(acc_ref)
                for dr in range(2):
                    for dc in range(2):
                        t = ((pa * 2 + pb) * 2 + dr) * 2 + dc
                        patch = x_ref[0,
                                      pl.ds(row_base + pa + dr, TH),
                                      pl.ds(pb + dc, W),
                                      :]                       # (TH, W, Cin_p) bf16
                        acc_ref[...] += jnp.dot(
                            patch.reshape(TH * W, Cin_p), w_ref[t],
                            preferred_element_type=jnp.float32)
                y = acc_ref[...] * sc + sh                     # conv bias + BN (folded)
                o_ref[0, pa * 2 + pb] = jnp.maximum(y, 0.0)    # ReLU

    out_slab = pl.pallas_call(
        kernel,
        out_shape=jax.ShapeDtypeStruct((N, 4, H * W, Cout_p), jnp.float32),
        grid_spec=pltpu.PrefetchScalarGridSpec(
            num_scalar_prefetch=0,
            # co outermost: each weight tile is DMA'd once and stays resident
            # across (N, row tiles); the padded image only re-fetches when n changes.
            grid=(n_co, N, n_h),
            in_specs=[
                pl.BlockSpec((1, Hp, Wp, Cin_p), lambda co, n, i: (n, 0, 0, 0)),
                pl.BlockSpec((16, Cin_p, TCo), lambda co, n, i: (0, 0, co)),
                pl.BlockSpec((1, TCo), lambda co, n, i: (0, co)),
                pl.BlockSpec((1, TCo), lambda co, n, i: (0, co)),
            ],
            out_specs=pl.BlockSpec((1, 4, TH * W, TCo),
                                   lambda co, n, i: (n, 0, i, co)),
            scratch_shapes=[pltpu.VMEM((TH * W, TCo), jnp.float32)],
        ),
        compiler_params=pltpu.CompilerParams(
            dimension_semantics=("parallel", "parallel", "parallel"),
            vmem_limit_bytes=64 * 1024 * 1024,
        ),
    )(x_pad, w_eff, scale_p, shift_p)

    # Un-pack parity-major slab: (N, 4, H*W, Cout_p) -> (N, 2H, 2W, Cout) -> NCHW.
    # (Layout plumbing only; in a full NHWC decoder the final transpose would be dropped.)
    out = out_slab.reshape(N, 2, 2, H, W, Cout_p)
    out = jnp.transpose(out, (0, 3, 1, 4, 2, 5)).reshape(N, H2, W2, Cout_p)
    out = out[..., :Cout]
    return jnp.transpose(out, (0, 3, 1, 2))


def _reference_up_conv(x, weight, bias, gamma, beta, mean, var, eps=1e-5):
    """Pure-XLA f32 reference of Upsample(x2) -> Conv(3x3, pad=1) -> BN -> ReLU."""
    xu = jnp.repeat(jnp.repeat(x, 2, axis=2), 2, axis=3)
    y = jax.lax.conv_general_dilated(
        xu, weight, window_strides=(1, 1), padding=((1, 1), (1, 1)),
        dimension_numbers=("NCHW", "OIHW", "NCHW"))
    y = y + bias[None, :, None, None]
    inv = (gamma / jnp.sqrt(var + eps))[None, :, None, None]
    y = (y - mean[None, :, None, None]) * inv + beta[None, :, None, None]
    return jnp.maximum(y, 0.0)


if __name__ == "__main__":
    # small deterministic example: ch_in=4, ch_out=8, batch=2, spatial 16x16
    N, Cin, Cout, H, W = 2, 4, 8, 16, 16

    key = jax.random.PRNGKey(0)
    kx, kw, kb, kg, kbeta, km, kv = jax.random.split(key, 7)

    x = jax.random.normal(kx, (N, Cin, H, W), dtype=jnp.float32)

    # Conv2d(ch_in, ch_out, 3, stride=1, padding=1, bias=True)
    fan_in = Cin * 3 * 3
    bound = 1.0 / jnp.sqrt(jnp.float32(fan_in))
    weight = jax.random.uniform(kw, (Cout, Cin, 3, 3), jnp.float32, -bound, bound)
    bias = jax.random.uniform(kb, (Cout,), jnp.float32, -bound, bound)

    # BatchNorm2d(ch_out) parameters / running stats (deterministic, non-trivial)
    gamma = 1.0 + 0.1 * jax.random.normal(kg, (Cout,), jnp.float32)
    beta = 0.1 * jax.random.normal(kbeta, (Cout,), jnp.float32)
    running_mean = 0.1 * jax.random.normal(km, (Cout,), jnp.float32)
    running_var = jnp.abs(jax.random.normal(kv, (Cout,), jnp.float32)) + 0.5

    out = up_conv_forward(x, weight, bias, gamma, beta, running_mean, running_var)
    out = jax.block_until_ready(out)

    assert out.shape == (N, Cout, 2 * H, 2 * W), out.shape
    assert bool(jnp.all(out >= 0.0))  # ReLU sanity

    # numerical check vs. pure-XLA f32 reference (kernel uses bf16 inputs -> loose tol)
    ref = _reference_up_conv(x, weight, bias, gamma, beta, running_mean, running_var)
    max_err = float(jnp.max(jnp.abs(out - ref)))
    assert max_err < 0.25, f"max abs error vs reference too large: {max_err}"

    print("KERNEL_OK")
</pallas_src>

<mosaic_0001>
module attributes {stable_mosaic.version = 11 : i64} {
  func.func @kernel(%arg0: i32, %arg1: i32, %arg2: i32, %arg3: memref<1x18x18x128xbf16, #tpu.memory_space<vmem>>, %arg4: memref<16x128x128xbf16, #tpu.memory_space<vmem>>, %arg5: memref<1x128xf32, #tpu.memory_space<vmem>>, %arg6: memref<1x128xf32, #tpu.memory_space<vmem>>, %arg7: memref<1x4x128x128xf32, #tpu.memory_space<vmem>>, %arg8: memref<128x128xf32, #tpu.memory_space<vmem>>) attributes {dimension_semantics = [#tpu.dimension_semantics<parallel>, #tpu.dimension_semantics<parallel>, #tpu.dimension_semantics<parallel>], iteration_bounds = array<i64: 1, 2, 2>, scalar_prefetch = 0 : i64, scratch_operands = 1 : i64, tpu.core_type = #tpu.core_type<tc>, window_params = [{transform_indices = @transform_0, window_bounds = array<i64: 1, 18, 18, 128>}, {transform_indices = @transform_1, window_bounds = array<i64: 16, 128, 128>}, {transform_indices = @transform_2, window_bounds = array<i64: 1, 128>}, {transform_indices = @transform_3, window_bounds = array<i64: 1, 128>}, {transform_indices = @transform_4, window_bounds = array<i64: 1, 4, 128, 128>}]} {
    %c8_i32 = arith.constant 8 : i32
    %0 = arith.muli %arg2, %c8_i32 : i32
    %c0 = arith.constant 0 : index
    %c0_0 = arith.constant 0 : index
    %1 = vector.load %arg5[%c0, %c0_0] : memref<1x128xf32, #tpu.memory_space<vmem>>, vector<1x128xf32>
    %c0_1 = arith.constant 0 : index
    %c0_2 = arith.constant 0 : index
    %2 = vector.load %arg6[%c0_1, %c0_2] : memref<1x128xf32, #tpu.memory_space<vmem>>, vector<1x128xf32>
    %cst = arith.constant 0.000000e+00 : f32
    %3 = vector.broadcast %cst : f32 to vector<128x128xf32>
    %c0_3 = arith.constant 0 : index
    %c0_4 = arith.constant 0 : index
    %4 = vector.load %arg8[%c0_3, %c0_4] : memref<128x128xf32, #tpu.memory_space<vmem>>, vector<128x128xf32>
    tpu.vector_store %arg8[%c0_3, %c0_4], %3 {strides = array<i32>} : memref<128x128xf32, #tpu.memory_space<vmem>>, vector<128x128xf32>,
    %c0_i32 = arith.constant 0 : i32
    %5 = arith.addi %0, %c0_i32 : i32
    %c0_i32_5 = arith.constant 0 : i32
    %6 = arith.addi %5, %c0_i32_5 : i32
    %c0_6 = arith.constant 0 : index
    %7 = arith.index_cast %6 : i32 to index
    %c0_7 = arith.constant 0 : index
    %c0_8 = arith.constant 0 : index
    %8 = vector.load %arg3[%c0_6, %7, %c0_7, %c0_8] : memref<1x18x18x128xbf16, #tpu.memory_space<vmem>>, vector<1x8x16x128xbf16>
    %9 = vector.shape_cast %8 : vector<1x8x16x128xbf16> to vector<8x16x128xbf16>
    %c0_9 = arith.constant 0 : index
    %c0_10 = arith.constant 0 : index
    %10 = vector.load %arg8[%c0_9, %c0_10] : memref<128x128xf32, #tpu.memory_space<vmem>>, vector<128x128xf32>
    %11 = vector.shape_cast %9 : vector<8x16x128xbf16> to vector<128x128xbf16>
    %c0_11 = arith.constant 0 : index
    %c0_12 = arith.constant 0 : index
    %c0_13 = arith.constant 0 : index
    %12 = vector.load %arg4[%c0_11, %c0_12, %c0_13] : memref<16x128x128xbf16, #tpu.memory_space<vmem>>, vector<1x128x128xbf16>
    %13 = vector.shape_cast %12 : vector<1x128x128xbf16> to vector<128x128xbf16>
    %cst_14 = arith.constant dense<0.000000e+00> : vector<128x128xf32>
    %14 = tpu.matmul %11, %13, %cst_14 {dimension_numbers = #tpu.dot_dimension_numbers<[1], [0], [0], [1], [0, 0, 1, 1], [], []>} : vector<128x128xbf16>, vector<128x128xbf16>, vector<128x128xf32> -> vector<128x128xf32>
    %15 = arith.addf %10, %14 : vector<128x128xf32>
    %c0_15 = arith.constant 0 : index
    %c0_16 = arith.constant 0 : index
    %16 = vector.load %arg8[%c0_15, %c0_16] : memref<128x128xf32, #tpu.memory_space<vmem>>, vector<128x128xf32>
    tpu.vector_store %arg8[%c0_15, %c0_16], %15 {strides = array<i32>} : memref<128x128xf32, #tpu.memory_space<vmem>>, vector<128x128xf32>,
    %c0_i32_17 = arith.constant 0 : i32
    %17 = arith.addi %0, %c0_i32_17 : i32
    %c0_i32_18 = arith.constant 0 : i32
    %18 = arith.addi %17, %c0_i32_18 : i32
    %c0_19 = arith.constant 0 : index
    %19 = arith.index_cast %18 : i32 to index
    %c1 = arith.constant 1 : index
    %c0_20 = arith.constant 0 : index
    %20 = vector.load %arg3[%c0_19, %19, %c1, %c0_20] : memref<1x18x18x128xbf16, #tpu.memory_space<vmem>>, vector<1x8x16x128xbf16>
    %21 = vector.shape_cast %20 : vector<1x8x16x128xbf16> to vector<8x16x128xbf16>
    %c0_21 = arith.constant 0 : index
    %c0_22 = arith.constant 0 : index
    %22 = vector.load %arg8[%c0_21, %c0_22] : memref<128x128xf32, #tpu.memory_space<vmem>>, vector<128x128xf32>
    %23 = vector.shape_cast %21 : vector<8x16x128xbf16> to vector<128x128xbf16>
    %c1_23 = arith.constant 1 : index
    %c0_24 = arith.constant 0 : index
    %c0_25 = arith.constant 0 : index
    %24 = vector.load %arg4[%c1_23, %c0_24, %c0_25] : memref<16x128x128xbf16, #tpu.memory_space<vmem>>, vector<1x128x128xbf16>
    %25 = vector.shape_cast %24 : vector<1x128x128xbf16> to vector<128x128xbf16>
    %cst_26 = arith.constant dense<0.000000e+00> : vector<128x128xf32>
    %26 = tpu.matmul %23, %25, %cst_26 {dimension_numbers = #tpu.dot_dimension_numbers<[1], [0], [0], [1], [0, 0, 1, 1], [], []>} : vector<128x128xbf16>, vector<128x128xbf16>, vector<128x128xf32> -> vector<128x128xf32>
    %27 = arith.addf %22, %26 : vector<128x128xf32>
    %c0_27 = arith.constant 0 : index
    %c0_28 = arith.constant 0 : index
    %28 = vector.load %arg8[%c0_27, %c0_28] : memref<128x128xf32, #tpu.memory_space<vmem>>, vector<128x128xf32>
    tpu.vector_store %arg8[%c0_27, %c0_28], %27 {strides = array<i32>} : memref<128x128xf32, #tpu.memory_space<vmem>>, vector<128x128xf32>,
    %c0_i32_29 = arith.constant 0 : i32
    %29 = arith.addi %0, %c0_i32_29 : i32
    %c1_i32 = arith.constant 1 : i32
    %30 = arith.addi %29, %c1_i32 : i32
    %c0_30 = arith.constant 0 : index
    %31 = arith.index_cast %30 : i32 to index
    %c0_31 = arith.constant 0 : index
    %c0_32 = arith.constant 0 : index
    %32 = vector.load %arg3[%c0_30, %31, %c0_31, %c0_32] : memref<1x18x18x128xbf16, #tpu.memory_space<vmem>>, vector<1x8x16x128xbf16>
    %33 = vector.shape_cast %32 : vector<1x8x16x128xbf16> to vector<8x16x128xbf16>
    %c0_33 = arith.constant 0 : index
    %c0_34 = arith.constant 0 : index
    %34 = vector.load %arg8[%c0_33, %c0_34] : memref<128x128xf32, #tpu.memory_space<vmem>>, vector<128x128xf32>
    %35 = vector.shape_cast %33 : vector<8x16x128xbf16> to vector<128x128xbf16>
    %c2 = arith.constant 2 : index
    %c0_35 = arith.constant 0 : index
    %c0_36 = arith.constant 0 : index
    %36 = vector.load %arg4[%c2, %c0_35, %c0_36] : memref<16x128x128xbf16, #tpu.memory_space<vmem>>, vector<1x128x128xbf16>
    %37 = vector.shape_cast %36 : vector<1x128x128xbf16> to vector<128x128xbf16>
    %cst_37 = arith.constant dense<0.000000e+00> : vector<128x128xf32>
    %38 = tpu.matmul %35, %37, %cst_37 {dimension_numbers = #tpu.dot_dimension_numbers<[1], [0], [0], [1], [0, 0, 1, 1], [], []>} : vector<128x128xbf16>, vector<128x128xbf16>, vector<128x128xf32> -> vector<128x128xf32>
    %39 = arith.addf %34, %38 : vector<128x128xf32>
    %c0_38 = arith.constant 0 : index
    %c0_39 = arith.constant 0 : index
    %40 = vector.load %arg8[%c0_38, %c0_39] : memref<128x128xf32, #tpu.memory_space<vmem>>, vector<128x128xf32>
    tpu.vector_store %arg8[%c0_38, %c0_39], %39 {strides = array<i32>} : memref<128x128xf32, #tpu.memory_space<vmem>>, vector<128x128xf32>,
    %c0_i32_40 = arith.constant 0 : i32
    %41 = arith.addi %0, %c0_i32_40 : i32
    %c1_i32_41 = arith.constant 1 : i32
    %42 = arith.addi %41, %c1_i32_41 : i32
    %c0_42 = arith.constant 0 : index
    %43 = arith.index_cast %42 : i32 to index
    %c1_43 = arith.constant 1 : index
    %c0_44 = arith.constant 0 : index
    %44 = vector.load %arg3[%c0_42, %43, %c1_43, %c0_44] : memref<1x18x18x128xbf16, #tpu.memory_space<vmem>>, vector<1x8x16x128xbf16>
    %45 = vector.shape_cast %44 : vector<1x8x16x128xbf16> to vector<8x16x128xbf16>
    %c0_45 = arith.constant 0 : index
    %c0_46 = arith.constant 0 : index
    %46 = vector.load %arg8[%c0_45, %c0_46] : memref<128x128xf32, #tpu.memory_space<vmem>>, vector<128x128xf32>
    %47 = vector.shape_cast %45 : vector<8x16x128xbf16> to vector<128x128xbf16>
    %c3 = arith.constant 3 : index
    %c0_47 = arith.constant 0 : index
    %c0_48 = arith.constant 0 : index
    %48 = vector.load %arg4[%c3, %c0_47, %c0_48] : memref<16x128x128xbf16, #tpu.memory_space<vmem>>, vector<1x128x128xbf16>
    %49 = vector.shape_cast %48 : vector<1x128x128xbf16> to vector<128x128xbf16>
    %cst_49 = arith.constant dense<0.000000e+00> : vector<128x128xf32>
    %50 = tpu.matmul %47, %49, %cst_49 {dimension_numbers = #tpu.dot_dimension_numbers<[1], [0], [0], [1], [0, 0, 1, 1], [], []>} : vector<128x128xbf16>, vector<128x128xbf16>, vector<128x128xf32> -> vector<128x128xf32>
    %51 = arith.addf %46, %50 : vector<128x128xf32>
    %c0_50 = arith.constant 0 : index
    %c0_51 = arith.constant 0 : index
    %52 = vector.load %arg8[%c0_50, %c0_51] : memref<128x128xf32, #tpu.memory_space<vmem>>, vector<128x128xf32>
    tpu.vector_store %arg8[%c0_50, %c0_51], %51 {strides = array<i32>} : memref<128x128xf32, #tpu.memory_space<vmem>>, vector<128x128xf32>,
    %c0_52 = arith.constant 0 : index
    %c0_53 = arith.constant 0 : index
    %53 = vector.load %arg8[%c0_52, %c0_53] : memref<128x128xf32, #tpu.memory_space<vmem>>, vector<128x128xf32>
    %54 = vector.broadcast %1 : vector<1x128xf32> to vector<128x128xf32>
    %55 = arith.mulf %53, %54 : vector<128x128xf32>
    %56 = vector.broadcast %2 : vector<1x128xf32> to vector<128x128xf32>
    %57 = arith.addf %55, %56 : vector<128x128xf32>
    %cst_54 = arith.constant 0.000000e+00 : f32
    %58 = vector.broadcast %cst_54 : f32 to vector<128x128xf32>
    %59 = arith.maximumf %57, %58 : vector<128x128xf32>
    %c0_55 = arith.constant 0 : index
    %c0_56 = arith.constant 0 : index
    %c0_57 = arith.constant 0 : index
    %c0_58 = arith.constant 0 : index
    %60 = vector.load %arg7[%c0_55, %c0_56, %c0_57, %c0_58] : memref<1x4x128x128xf32, #tpu.memory_space<vmem>>, vector<1x1x128x128xf32>
    %61 = vector.shape_cast %60 : vector<1x1x128x128xf32> to vector<128x128xf32>
    %62 = vector.shape_cast %59 : vector<128x128xf32> to vector<1x1x128x128xf32>
    tpu.vector_store %arg7[%c0_55, %c0_56, %c0_57, %c0_58], %62 {strides = array<i32>} : memref<1x4x128x128xf32, #tpu.memory_space<vmem>>, vector<1x1x128x128xf32>,
    %cst_59 = arith.constant 0.000000e+00 : f32
    %63 = vector.broadcast %cst_59 : f32 to vector<128x128xf32>
    %c0_60 = arith.constant 0 : index
    %c0_61 = arith.constant 0 : index
    %64 = vector.load %arg8[%c0_60, %c0_61] : memref<128x128xf32, #tpu.memory_space<vmem>>, vector<128x128xf32>
    tpu.vector_store %arg8[%c0_60, %c0_61], %63 {strides = array<i32>} : memref<128x128xf32, #tpu.memory_space<vmem>>, vector<128x128xf32>,
    %c0_i32_62 = arith.constant 0 : i32
    %65 = arith.addi %0, %c0_i32_62 : i32
    %c0_i32_63 = arith.constant 0 : i32
    %66 = arith.addi %65, %c0_i32_63 : i32
    %c0_64 = arith.constant 0 : index
    %67 = arith.index_cast %66 : i32 to index
    %c1_65 = arith.constant 1 : index
    %c0_66 = arith.constant 0 : index
    %68 = vector.load %arg3[%c0_64, %67, %c1_65, %c0_66] : memref<1x18x18x128xbf16, #tpu.memory_space<vmem>>, vector<1x8x16x128xbf16>
    %69 = vector.shape_cast %68 : vector<1x8x16x128xbf16> to vector<8x16x128xbf16>
    %c0_67 = arith.constant 0 : index
    %c0_68 = arith.constant 0 : index
    %70 = vector.load %arg8[%c0_67, %c0_68] : memref<128x128xf32, #tpu.memory_space<vmem>>, vector<128x128xf32>
    %71 = vector.shape_cast %69 : vector<8x16x128xbf16> to vector<128x128xbf16>
    %c4 = arith.constant 4 : index
    %c0_69 = arith.constant 0 : index
    %c0_70 = arith.constant 0 : index
    %72 = vector.load %arg4[%c4, %c0_69, %c0_70] : memref<16x128x128xbf16, #tpu.memory_space<vmem>>, vector<1x128x128xbf16>
    %73 = vector.shape_cast %72 : vector<1x128x128xbf16> to vector<128x128xbf16>
    %cst_71 = arith.constant dense<0.000000e+00> : vector<128x128xf32>
    %74 = tpu.matmul %71, %73, %cst_71 {dimension_numbers = #tpu.dot_dimension_numbers<[1], [0], [0], [1], [0, 0, 1, 1], [], []>} : vector<128x128xbf16>, vector<128x128xbf16>, vector<128x128xf32> -> vector<128x128xf32>
    %75 = arith.addf %70, %74 : vector<128x128xf32>
    %c0_72 = arith.constant 0 : index
    %c0_73 = arith.constant 0 : index
    %76 = vector.load %arg8[%c0_72, %c0_73] : memref<128x128xf32, #tpu.memory_space<vmem>>, vector<128x128xf32>
    tpu.vector_store %arg8[%c0_72, %c0_73], %75 {strides = array<i32>} : memref<128x128xf32, #tpu.memory_space<vmem>>, vector<128x128xf32>,
    %c0_i32_74 = arith.constant 0 : i32
    %77 = arith.addi %0, %c0_i32_74 : i32
    %c0_i32_75 = arith.constant 0 : i32
    %78 = arith.addi %77, %c0_i32_75 : i32
    %c0_76 = arith.constant 0 : index
    %79 = arith.index_cast %78 : i32 to index
    %c2_77 = arith.constant 2 : index
    %c0_78 = arith.constant 0 : index
    %80 = vector.load %arg3[%c0_76, %79, %c2_77, %c0_78] : memref<1x18x18x128xbf16, #tpu.memory_space<vmem>>, vector<1x8x16x128xbf16>
    %81 = vector.shape_cast %80 : vector<1x8x16x128xbf16> to vector<8x16x128xbf16>
    %c0_79 = arith.constant 0 : index
    %c0_80 = arith.constant 0 : index
    %82 = vector.load %arg8[%c0_79, %c0_80] : memref<128x128xf32, #tpu.memory_space<vmem>>, vector<128x128xf32>
    %83 = vector.shape_cast %81 : vector<8x16x128xbf16> to vector<128x128xbf16>
    %c5 = arith.constant 5 : index
    %c0_81 = arith.constant 0 : index
    %c0_82 = arith.constant 0 : index
    %84 = vector.load %arg4[%c5, %c0_81, %c0_82] : memref<16x128x128xbf16, #tpu.memory_space<vmem>>, vector<1x128x128xbf16>
    %85 = vector.shape_cast %84 : vector<1x128x128xbf16> to vector<128x128xbf16>
    %cst_83 = arith.constant dense<0.000000e+00> : vector<128x128xf32>
    %86 = tpu.matmul %83, %85, %cst_83 {dimension_numbers = #tpu.dot_dimension_numbers<[1], [0], [0], [1], [0, 0, 1, 1], [], []>} : vector<128x128xbf16>, vector<128x128xbf16>, vector<128x128xf32> -> vector<128x128xf32>
    %87 = arith.addf %82, %86 : vector<128x128xf32>
    %c0_84 = arith.constant 0 : index
    %c0_85 = arith.constant 0 : index
    %88 = vector.load %arg8[%c0_84, %c0_85] : memref<128x128xf32, #tpu.memory_space<vmem>>, vector<128x128xf32>
    tpu.vector_store %arg8[%c0_84, %c0_85], %87 {strides = array<i32>} : memref<128x128xf32, #tpu.memory_space<vmem>>, vector<128x128xf32>,
    %c0_i32_86 = arith.constant 0 : i32
    %89 = arith.addi %0, %c0_i32_86 : i32
    %c1_i32_87 = arith.constant 1 : i32
    %90 = arith.addi %89, %c1_i32_87 : i32
    %c0_88 = arith.constant 0 : index
    %91 = arith.index_cast %90 : i32 to index
    %c1_89 = arith.constant 1 : index
    %c0_90 = arith.constant 0 : index
    %92 = vector.load %arg3[%c0_88, %91, %c1_89, %c0_90] : memref<1x18x18x128xbf16, #tpu.memory_space<vmem>>, vector<1x8x16x128xbf16>
    %93 = vector.shape_cast %92 : vector<1x8x16x128xbf16> to vector<8x16x128xbf16>
    %c0_91 = arith.constant 0 : index
    %c0_92 = arith.constant 0 : index
    %94 = vector.load %arg8[%c0_91, %c0_92] : memref<128x128xf32, #tpu.memory_space<vmem>>, vector<128x128xf32>
    %95 = vector.shape_cast %93 : vector<8x16x128xbf16> to vector<128x128xbf16>
    %c6 = arith.constant 6 : index
    %c0_93 = arith.constant 0 : index
    %c0_94 = arith.constant 0 : index
    %96 = vector.load %arg4[%c6, %c0_93, %c0_94] : memref<16x128x128xbf16, #tpu.memory_space<vmem>>, vector<1x128x128xbf16>
    %97 = vector.shape_cast %96 : vector<1x128x128xbf16> to vector<128x128xbf16>
    %cst_95 = arith.constant dense<0.000000e+00> : vector<128x128xf32>
    %98 = tpu.matmul %95, %97, %cst_95 {dimension_numbers = #tpu.dot_dimension_numbers<[1], [0], [0], [1], [0, 0, 1, 1], [], []>} : vector<128x128xbf16>, vector<128x128xbf16>, vector<128x128xf32> -> vector<128x128xf32>
    %99 = arith.addf %94, %98 : vector<128x128xf32>
    %c0_96 = arith.constant 0 : index
    %c0_97 = arith.constant 0 : index
    %100 = vector.load %arg8[%c0_96, %c0_97] : memref<128x128xf32, #tpu.memory_space<vmem>>, vector<128x128xf32>
    tpu.vector_store %arg8[%c0_96, %c0_97], %99 {strides = array<i32>} : memref<128x128xf32, #tpu.memory_space<vmem>>, vector<128x128xf32>,
    %c0_i32_98 = arith.constant 0 : i32
    %101 = arith.addi %0, %c0_i32_98 : i32
    %c1_i32_99 = arith.constant 1 : i32
    %102 = arith.addi %101, %c1_i32_99 : i32
    %c0_100 = arith.constant 0 : index
    %103 = arith.index_cast %102 : i32 to index
    %c2_101 = arith.constant 2 : index
    %c0_102 = arith.constant 0 : index
    %104 = vector.load %arg3[%c0_100, %103, %c2_101, %c0_102] : memref<1x18x18x128xbf16, #tpu.memory_space<vmem>>, vector<1x8x16x128xbf16>
    %105 = vector.shape_cast %104 : vector<1x8x16x128xbf16> to vector<8x16x128xbf16>
    %c0_103 = arith.constant 0 : index
    %c0_104 = arith.constant 0 : index
    %106 = vector.load %arg8[%c0_103, %c0_104] : memref<128x128xf32, #tpu.memory_space<vmem>>, vector<128x128xf32>
    %107 = vector.shape_cast %105 : vector<8x16x128xbf16> to vector<128x128xbf16>
    %c7 = arith.constant 7 : index
    %c0_105 = arith.constant 0 : index
    %c0_106 = arith.constant 0 : index
    %108 = vector.load %arg4[%c7, %c0_105, %c0_106] : memref<16x128x128xbf16, #tpu.memory_space<vmem>>, vector<1x128x128xbf16>
    %109 = vector.shape_cast %108 : vector<1x128x128xbf16> to vector<128x128xbf16>
    %cst_107 = arith.constant dense<0.000000e+00> : vector<128x128xf32>
    %110 = tpu.matmul %107, %109, %cst_107 {dimension_numbers = #tpu.dot_dimension_numbers<[1], [0], [0], [1], [0, 0, 1, 1], [], []>} : vector<128x128xbf16>, vector<128x128xbf16>, vector<128x128xf32> -> vector<128x128xf32>
    %111 = arith.addf %106, %110 : vector<128x128xf32>
    %c0_108 = arith.constant 0 : index
    %c0_109 = arith.constant 0 : index
    %112 = vector.load %arg8[%c0_108, %c0_109] : memref<128x128xf32, #tpu.memory_space<vmem>>, vector<128x128xf32>
    tpu.vector_store %arg8[%c0_108, %c0_109], %111 {strides = array<i32>} : memref<128x128xf32, #tpu.memory_space<vmem>>, vector<128x128xf32>,
    %c0_110 = arith.constant 0 : index
    %c0_111 = arith.constant 0 : index
    %113 = vector.load %arg8[%c0_110, %c0_111] : memref<128x128xf32, #tpu.memory_space<vmem>>, vector<128x128xf32>
    %114 = vector.broadcast %1 : vector<1x128xf32> to vector<128x128xf32>
    %115 = arith.mulf %113, %114 : vector<128x128xf32>
    %116 = vector.broadcast %2 : vector<1x128xf32> to vector<128x128xf32>
    %117 = arith.addf %115, %116 : vector<128x128xf32>
    %cst_112 = arith.constant 0.000000e+00 : f32
    %118 = vector.broadcast %cst_112 : f32 to vector<128x128xf32>
    %119 = arith.maximumf %117, %118 : vector<128x128xf32>
    %c0_113 = arith.constant 0 : index
    %c1_114 = arith.constant 1 : index
    %c0_115 = arith.constant 0 : index
    %c0_116 = arith.constant 0 : index
    %120 = vector.load %arg7[%c0_113, %c1_114, %c0_115, %c0_116] : memref<1x4x128x128xf32, #tpu.memory_space<vmem>>, vector<1x1x128x128xf32>
    %121 = vector.shape_cast %120 : vector<1x1x128x128xf32> to vector<128x128xf32>
    %122 = vector.shape_cast %119 : vector<128x128xf32> to vector<1x1x128x128xf32>
    tpu.vector_store %arg7[%c0_113, %c1_114, %c0_115, %c0_116], %122 {strides = array<i32>} : memref<1x4x128x128xf32, #tpu.memory_space<vmem>>, vector<1x1x128x128xf32>,
    %cst_117 = arith.constant 0.000000e+00 : f32
    %123 = vector.broadcast %cst_117 : f32 to vector<128x128xf32>
    %c0_118 = arith.constant 0 : index
    %c0_119 = arith.constant 0 : index
    %124 = vector.load %arg8[%c0_118, %c0_119] : memref<128x128xf32, #tpu.memory_space<vmem>>, vector<128x128xf32>
    tpu.vector_store %arg8[%c0_118, %c0_119], %123 {strides = array<i32>} : memref<128x128xf32, #tpu.memory_space<vmem>>, vector<128x128xf32>,
    %c1_i32_120 = arith.constant 1 : i32
    %125 = arith.addi %0, %c1_i32_120 : i32
    %c0_i32_121 = arith.constant 0 : i32
    %126 = arith.addi %125, %c0_i32_121 : i32
    %c0_122 = arith.constant 0 : index
    %127 = arith.index_cast %126 : i32 to index
    %c0_123 = arith.constant 0 : index
    %c0_124 = arith.constant 0 : index
    %128 = vector.load %arg3[%c0_122, %127, %c0_123, %c0_124] : memref<1x18x18x128xbf16, #tpu.memory_space<vmem>>, vector<1x8x16x128xbf16>
    %129 = vector.shape_cast %128 : vector<1x8x16x128xbf16> to vector<8x16x128xbf16>
    %c0_125 = arith.constant 0 : index
    %c0_126 = arith.constant 0 : index
    %130 = vector.load %arg8[%c0_125, %c0_126] : memref<128x128xf32, #tpu.memory_space<vmem>>, vector<128x128xf32>
    %131 = vector.shape_cast %129 : vector<8x16x128xbf16> to vector<128x128xbf16>
    %c8 = arith.constant 8 : index
    %c0_127 = arith.constant 0 : index
    %c0_128 = arith.constant 0 : index
    %132 = vector.load %arg4[%c8, %c0_127, %c0_128] : memref<16x128x128xbf16, #tpu.memory_space<vmem>>, vector<1x128x128xbf16>
    %133 = vector.shape_cast %132 : vector<1x128x128xbf16> to vector<128x128xbf16>
    %cst_129 = arith.constant dense<0.000000e+00> : vector<128x128xf32>
    %134 = tpu.matmul %131, %133, %cst_129 {dimension_numbers = #tpu.dot_dimension_numbers<[1], [0], [0], [1], [0, 0, 1, 1], [], []>} : vector<128x128xbf16>, vector<128x128xbf16>, vector<128x128xf32> -> vector<128x128xf32>
    %135 = arith.addf %130, %134 : vector<128x128xf32>
    %c0_130 = arith.constant 0 : index
    %c0_131 = arith.constant 0 : index
    %136 = vector.load %arg8[%c0_130, %c0_131] : memref<128x128xf32, #tpu.memory_space<vmem>>, vector<128x128xf32>
    tpu.vector_store %arg8[%c0_130, %c0_131], %135 {strides = array<i32>} : memref<128x128xf32, #tpu.memory_space<vmem>>, vector<128x128xf32>,
    %c1_i32_132 = arith.constant 1 : i32
    %137 = arith.addi %0, %c1_i32_132 : i32
    %c0_i32_133 = arith.constant 0 : i32
    %138 = arith.addi %137, %c0_i32_133 : i32
    %c0_134 = arith.constant 0 : index
    %139 = arith.index_cast %138 : i32 to index
    %c1_135 = arith.constant 1 : index
    %c0_136 = arith.constant 0 : index
    %140 = vector.load %arg3[%c0_134, %139, %c1_135, %c0_136] : memref<1x18x18x128xbf16, #tpu.memory_space<vmem>>, vector<1x8x16x128xbf16>
    %141 = vector.shape_cast %140 : vector<1x8x16x128xbf16> to vector<8x16x128xbf16>
    %c0_137 = arith.constant 0 : index
    %c0_138 = arith.constant 0 : index
    %142 = vector.load %arg8[%c0_137, %c0_138] : memref<128x128xf32, #tpu.memory_space<vmem>>, vector<128x128xf32>
    %143 = vector.shape_cast %141 : vector<8x16x128xbf16> to vector<128x128xbf16>
    %c9 = arith.constant 9 : index
    %c0_139 = arith.constant 0 : index
    %c0_140 = arith.constant 0 : index
    %144 = vector.load %arg4[%c9, %c0_139, %c0_140] : memref<16x128x128xbf16, #tpu.memory_space<vmem>>, vector<1x128x128xbf16>
    %145 = vector.shape_cast %144 : vector<1x128x128xbf16> to vector<128x128xbf16>
    %cst_141 = arith.constant dense<0.000000e+00> : vector<128x128xf32>
    %146 = tpu.matmul %143, %145, %cst_141 {dimension_numbers = #tpu.dot_dimension_numbers<[1], [0], [0], [1], [0, 0, 1, 1], [], []>} : vector<128x128xbf16>, vector<128x128xbf16>, vector<128x128xf32> -> vector<128x128xf32>
    %147 = arith.addf %142, %146 : vector<128x128xf32>
    %c0_142 = arith.constant 0 : index
    %c0_143 = arith.constant 0 : index
    %148 = vector.load %arg8[%c0_142, %c0_143] : memref<128x128xf32, #tpu.memory_space<vmem>>, vector<128x128xf32>
    tpu.vector_store %arg8[%c0_142, %c0_143], %147 {strides = array<i32>} : memref<128x128xf32, #tpu.memory_space<vmem>>, vector<128x128xf32>,
    %c1_i32_144 = arith.constant 1 : i32
    %149 = arith.addi %0, %c1_i32_144 : i32
    %c1_i32_145 = arith.constant 1 : i32
    %150 = arith.addi %149, %c1_i32_145 : i32
    %c0_146 = arith.constant 0 : index
    %151 = arith.index_cast %150 : i32 to index
    %c0_147 = arith.constant 0 : index
    %c0_148 = arith.constant 0 : index
    %152 = vector.load %arg3[%c0_146, %151, %c0_147, %c0_148] : memref<1x18x18x128xbf16, #tpu.memory_space<vmem>>, vector<1x8x16x128xbf16>
    %153 = vector.shape_cast %152 : vector<1x8x16x128xbf16> to vector<8x16x128xbf16>
    %c0_149 = arith.constant 0 : index
    %c0_150 = arith.constant 0 : index
    %154 = vector.load %arg8[%c0_149, %c0_150] : memref<128x128xf32, #tpu.memory_space<vmem>>, vector<128x128xf32>
    %155 = vector.shape_cast %153 : vector<8x16x128xbf16> to vector<128x128xbf16>
    %c10 = arith.constant 10 : index
    %c0_151 = arith.constant 0 : index
    %c0_152 = arith.constant 0 : index
    %156 = vector.load %arg4[%c10, %c0_151, %c0_152] : memref<16x128x128xbf16, #tpu.memory_space<vmem>>, vector<1x128x128xbf16>
    %157 = vector.shape_cast %156 : vector<1x128x128xbf16> to vector<128x128xbf16>
    %cst_153 = arith.constant dense<0.000000e+00> : vector<128x128xf32>
    %158 = tpu.matmul %155, %157, %cst_153 {dimension_numbers = #tpu.dot_dimension_numbers<[1], [0], [0], [1], [0, 0, 1, 1], [], []>} : vector<128x128xbf16>, vector<128x128xbf16>, vector<128x128xf32> -> vector<128x128xf32>
    %159 = arith.addf %154, %158 : vector<128x128xf32>
    %c0_154 = arith.constant 0 : index
    %c0_155 = arith.constant 0 : index
    %160 = vector.load %arg8[%c0_154, %c0_155] : memref<128x128xf32, #tpu.memory_space<vmem>>, vector<128x128xf32>
    tpu.vector_store %arg8[%c0_154, %c0_155], %159 {strides = array<i32>} : memref<128x128xf32, #tpu.memory_space<vmem>>, vector<128x128xf32>,
    %c1_i32_156 = arith.constant 1 : i32
    %161 = arith.addi %0, %c1_i32_156 : i32
    %c1_i32_157 = arith.constant 1 : i32
    %162 = arith.addi %161, %c1_i32_157 : i32
    %c0_158 = arith.constant 0 : index
    %163 = arith.index_cast %162 : i32 to index
    %c1_159 = arith.constant 1 : index
    %c0_160 = arith.constant 0 : index
    %164 = vector.load %arg3[%c0_158, %163, %c1_159, %c0_160] : memref<1x18x18x128xbf16, #tpu.memory_space<vmem>>, vector<1x8x16x128xbf16>
    %165 = vector.shape_cast %164 : vector<1x8x16x128xbf16> to vector<8x16x128xbf16>
    %c0_161 = arith.constant 0 : index
    %c0_162 = arith.constant 0 : index
    %166 = vector.load %arg8[%c0_161, %c0_162] : memref<128x128xf32, #tpu.memory_space<vmem>>, vector<128x128xf32>
    %167 = vector.shape_cast %165 : vector<8x16x128xbf16> to vector<128x128xbf16>
    %c11 = arith.constant 11 : index
    %c0_163 = arith.constant 0 : index
    %c0_164 = arith.constant 0 : index
    %168 = vector.load %arg4[%c11, %c0_163, %c0_164] : memref<16x128x128xbf16, #tpu.memory_space<vmem>>, vector<1x128x128xbf16>
    %169 = vector.shape_cast %168 : vector<1x128x128xbf16> to vector<128x128xbf16>
    %cst_165 = arith.constant dense<0.000000e+00> : vector<128x128xf32>
    %170 = tpu.matmul %167, %169, %cst_165 {dimension_numbers = #tpu.dot_dimension_numbers<[1], [0], [0], [1], [0, 0, 1, 1], [], []>} : vector<128x128xbf16>, vector<128x128xbf16>, vector<128x128xf32> -> vector<128x128xf32>
    %171 = arith.addf %166, %170 : vector<128x128xf32>
    %c0_166 = arith.constant 0 : index
    %c0_167 = arith.constant 0 : index
    %172 = vector.load %arg8[%c0_166, %c0_167] : memref<128x128xf32, #tpu.memory_space<vmem>>, vector<128x128xf32>
    tpu.vector_store %arg8[%c0_166, %c0_167], %171 {strides = array<i32>} : memref<128x128xf32, #tpu.memory_space<vmem>>, vector<128x128xf32>,
    %c0_168 = arith.constant 0 : index
    %c0_169 = arith.constant 0 : index
    %173 = vector.load %arg8[%c0_168, %c0_169] : memref<128x128xf32, #tpu.memory_space<vmem>>, vector<128x128xf32>
    %174 = vector.broadcast %1 : vector<1x128xf32> to vector<128x128xf32>
    %175 = arith.mulf %173, %174 : vector<128x128xf32>
    %176 = vector.broadcast %2 : vector<1x128xf32> to vector<128x128xf32>
    %177 = arith.addf %175, %176 : vector<128x128xf32>
    %cst_170 = arith.constant 0.000000e+00 : f32
    %178 = vector.broadcast %cst_170 : f32 to vector<128x128xf32>
    %179 = arith.maximumf %177, %178 : vector<128x128xf32>
    %c0_171 = arith.constant 0 : index
    %c2_172 = arith.constant 2 : index
    %c0_173 = arith.constant 0 : index
    %c0_174 = arith.constant 0 : index
    %180 = vector.load %arg7[%c0_171, %c2_172, %c0_173, %c0_174] : memref<1x4x128x128xf32, #tpu.memory_space<vmem>>, vector<1x1x128x128xf32>
    %181 = vector.shape_cast %180 : vector<1x1x128x128xf32> to vector<128x128xf32>
    %182 = vector.shape_cast %179 : vector<128x128xf32> to vector<1x1x128x128xf32>
    tpu.vector_store %arg7[%c0_171, %c2_172, %c0_173, %c0_174], %182 {strides = array<i32>} : memref<1x4x128x128xf32, #tpu.memory_space<vmem>>, vector<1x1x128x128xf32>,
    %cst_175 = arith.constant 0.000000e+00 : f32
    %183 = vector.broadcast %cst_175 : f32 to vector<128x128xf32>
    %c0_176 = arith.constant 0 : index
    %c0_177 = arith.constant 0 : index
    %184 = vector.load %arg8[%c0_176, %c0_177] : memref<128x128xf32, #tpu.memory_space<vmem>>, vector<128x128xf32>
    tpu.vector_store %arg8[%c0_176, %c0_177], %183 {strides = array<i32>} : memref<128x128xf32, #tpu.memory_space<vmem>>, vector<128x128xf32>,
    %c1_i32_178 = arith.constant 1 : i32
    %185 = arith.addi %0, %c1_i32_178 : i32
    %c0_i32_179 = arith.constant 0 : i32
    %186 = arith.addi %185, %c0_i32_179 : i32
    %c0_180 = arith.constant 0 : index
    %187 = arith.index_cast %186 : i32 to index
    %c1_181 = arith.constant 1 : index
    %c0_182 = arith.constant 0 : index
    %188 = vector.load %arg3[%c0_180, %187, %c1_181, %c0_182] : memref<1x18x18x128xbf16, #tpu.memory_space<vmem>>, vector<1x8x16x128xbf16>
    %189 = vector.shape_cast %188 : vector<1x8x16x128xbf16> to vector<8x16x128xbf16>
    %c0_183 = arith.constant 0 : index
    %c0_184 = arith.constant 0 : index
    %190 = vector.load %arg8[%c0_183, %c0_184] : memref<128x128xf32, #tpu.memory_space<vmem>>, vector<128x128xf32>
    %191 = vector.shape_cast %189 : vector<8x16x128xbf16> to vector<128x128xbf16>
    %c12 = arith.constant 12 : index
    %c0_185 = arith.constant 0 : index
    %c0_186 = arith.constant 0 : index
    %192 = vector.load %arg4[%c12, %c0_185, %c0_186] : memref<16x128x128xbf16, #tpu.memory_space<vmem>>, vector<1x128x128xbf16>
    %193 = vector.shape_cast %192 : vector<1x128x128xbf16> to vector<128x128xbf16>
    %cst_187 = arith.constant dense<0.000000e+00> : vector<128x128xf32>
    %194 = tpu.matmul %191, %193, %cst_187 {dimension_numbers = #tpu.dot_dimension_numbers<[1], [0], [0], [1], [0, 0, 1, 1], [], []>} : vector<128x128xbf16>, vector<128x128xbf16>, vector<128x128xf32> -> vector<128x128xf32>
    %195 = arith.addf %190, %194 : vector<128x128xf32>
    %c0_188 = arith.constant 0 : index
    %c0_189 = arith.constant 0 : index
    %196 = vector.load %arg8[%c0_188, %c0_189] : memref<128x128xf32, #tpu.memory_space<vmem>>, vector<128x128xf32>
    tpu.vector_store %arg8[%c0_188, %c0_189], %195 {strides = array<i32>} : memref<128x128xf32, #tpu.memory_space<vmem>>, vector<128x128xf32>,
    %c1_i32_190 = arith.constant 1 : i32
    %197 = arith.addi %0, %c1_i32_190 : i32
    %c0_i32_191 = arith.constant 0 : i32
    %198 = arith.addi %197, %c0_i32_191 : i32
    %c0_192 = arith.constant 0 : index
    %199 = arith.index_cast %198 : i32 to index
    %c2_193 = arith.constant 2 : index
    %c0_194 = arith.constant 0 : index
    %200 = vector.load %arg3[%c0_192, %199, %c2_193, %c0_194] : memref<1x18x18x128xbf16, #tpu.memory_space<vmem>>, vector<1x8x16x128xbf16>
    %201 = vector.shape_cast %200 : vector<1x8x16x128xbf16> to vector<8x16x128xbf16>
    %c0_195 = arith.constant 0 : index
    %c0_196 = arith.constant 0 : index
    %202 = vector.load %arg8[%c0_195, %c0_196] : memref<128x128xf32, #tpu.memory_space<vmem>>, vector<128x128xf32>
    %203 = vector.shape_cast %201 : vector<8x16x128xbf16> to vector<128x128xbf16>
    %c13 = arith.constant 13 : index
    %c0_197 = arith.constant 0 : index
    %c0_198 = arith.constant 0 : index
    %204 = vector.load %arg4[%c13, %c0_197, %c0_198] : memref<16x128x128xbf16, #tpu.memory_space<vmem>>, vector<1x128x128xbf16>
    %205 = vector.shape_cast %204 : vector<1x128x128xbf16> to vector<128x128xbf16>
    %cst_199 = arith.constant dense<0.000000e+00> : vector<128x128xf32>
    %206 = tpu.matmul %203, %205, %cst_199 {dimension_numbers = #tpu.dot_dimension_numbers<[1], [0], [0], [1], [0, 0, 1, 1], [], []>} : vector<128x128xbf16>, vector<128x128xbf16>, vector<128x128xf32> -> vector<128x128xf32>
    %207 = arith.addf %202, %206 : vector<128x128xf32>
    %c0_200 = arith.constant 0 : index
    %c0_201 = arith.constant 0 : index
    %208 = vector.load %arg8[%c0_200, %c0_201] : memref<128x128xf32, #tpu.memory_space<vmem>>, vector<128x128xf32>
    tpu.vector_store %arg8[%c0_200, %c0_201], %207 {strides = array<i32>} : memref<128x128xf32, #tpu.memory_space<vmem>>, vector<128x128xf32>,
    %c1_i32_202 = arith.constant 1 : i32
    %209 = arith.addi %0, %c1_i32_202 : i32
    %c1_i32_203 = arith.constant 1 : i32
    %210 = arith.addi %209, %c1_i32_203 : i32
    %c0_204 = arith.constant 0 : index
    %211 = arith.index_cast %210 : i32 to index
    %c1_205 = arith.constant 1 : index
    %c0_206 = arith.constant 0 : index
    %212 = vector.load %arg3[%c0_204, %211, %c1_205, %c0_206] : memref<1x18x18x128xbf16, #tpu.memory_space<vmem>>, vector<1x8x16x128xbf16>
    %213 = vector.shape_cast %212 : vector<1x8x16x128xbf16> to vector<8x16x128xbf16>
    %c0_207 = arith.constant 0 : index
    %c0_208 = arith.constant 0 : index
    %214 = vector.load %arg8[%c0_207, %c0_208] : memref<128x128xf32, #tpu.memory_space<vmem>>, vector<128x128xf32>
    %215 = vector.shape_cast %213 : vector<8x16x128xbf16> to vector<128x128xbf16>
    %c14 = arith.constant 14 : index
    %c0_209 = arith.constant 0 : index
    %c0_210 = arith.constant 0 : index
    %216 = vector.load %arg4[%c14, %c0_209, %c0_210] : memref<16x128x128xbf16, #tpu.memory_space<vmem>>, vector<1x128x128xbf16>
    %217 = vector.shape_cast %216 : vector<1x128x128xbf16> to vector<128x128xbf16>
    %cst_211 = arith.constant dense<0.000000e+00> : vector<128x128xf32>
    %218 = tpu.matmul %215, %217, %cst_211 {dimension_numbers = #tpu.dot_dimension_numbers<[1], [0], [0], [1], [0, 0, 1, 1], [], []>} : vector<128x128xbf16>, vector<128x128xbf16>, vector<128x128xf32> -> vector<128x128xf32>
    %219 = arith.addf %214, %218 : vector<128x128xf32>
    %c0_212 = arith.constant 0 : index
    %c0_213 = arith.constant 0 : index
    %220 = vector.load %arg8[%c0_212, %c0_213] : memref<128x128xf32, #tpu.memory_space<vmem>>, vector<128x128xf32>
    tpu.vector_store %arg8[%c0_212, %c0_213], %219 {strides = array<i32>} : memref<128x128xf32, #tpu.memory_space<vmem>>, vector<128x128xf32>,
    %c1_i32_214 = arith.constant 1 : i32
    %221 = arith.addi %0, %c1_i32_214 : i32
    %c1_i32_215 = arith.constant 1 : i32
    %222 = arith.addi %221, %c1_i32_215 : i32
    %c0_216 = arith.constant 0 : index
    %223 = arith.index_cast %222 : i32 to index
    %c2_217 = arith.constant 2 : index
    %c0_218 = arith.constant 0 : index
    %224 = vector.load %arg3[%c0_216, %223, %c2_217, %c0_218] : memref<1x18x18x128xbf16, #tpu.memory_space<vmem>>, vector<1x8x16x128xbf16>
    %225 = vector.shape_cast %224 : vector<1x8x16x128xbf16> to vector<8x16x128xbf16>
    %c0_219 = arith.constant 0 : index
    %c0_220 = arith.constant 0 : index
    %226 = vector.load %arg8[%c0_219, %c0_220] : memref<128x128xf32, #tpu.memory_space<vmem>>, vector<128x128xf32>
    %227 = vector.shape_cast %225 : vector<8x16x128xbf16> to vector<128x128xbf16>
    %c15 = arith.constant 15 : index
    %c0_221 = arith.constant 0 : index
    %c0_222 = arith.constant 0 : index
    %228 = vector.load %arg4[%c15, %c0_221, %c0_222] : memref<16x128x128xbf16, #tpu.memory_space<vmem>>, vector<1x128x128xbf16>
    %229 = vector.shape_cast %228 : vector<1x128x128xbf16> to vector<128x128xbf16>
    %cst_223 = arith.constant dense<0.000000e+00> : vector<128x128xf32>
    %230 = tpu.matmul %227, %229, %cst_223 {dimension_numbers = #tpu.dot_dimension_numbers<[1], [0], [0], [1], [0, 0, 1, 1], [], []>} : vector<128x128xbf16>, vector<128x128xbf16>, vector<128x128xf32> -> vector<128x128xf32>
    %231 = arith.addf %226, %230 : vector<128x128xf32>
    %c0_224 = arith.constant 0 : index
    %c0_225 = arith.constant 0 : index
    %232 = vector.load %arg8[%c0_224, %c0_225] : memref<128x128xf32, #tpu.memory_space<vmem>>, vector<128x128xf32>
    tpu.vector_store %arg8[%c0_224, %c0_225], %231 {strides = array<i32>} : memref<128x128xf32, #tpu.memory_space<vmem>>, vector<128x128xf32>,
    %c0_226 = arith.constant 0 : index
    %c0_227 = arith.constant 0 : index
    %233 = vector.load %arg8[%c0_226, %c0_227] : memref<128x128xf32, #tpu.memory_space<vmem>>, vector<128x128xf32>
    %234 = vector.broadcast %1 : vector<1x128xf32> to vector<128x128xf32>
    %235 = arith.mulf %233, %234 : vector<128x128xf32>
    %236 = vector.broadcast %2 : vector<1x128xf32> to vector<128x128xf32>
    %237 = arith.addf %235, %236 : vector<128x128xf32>
    %cst_228 = arith.constant 0.000000e+00 : f32
    %238 = vector.broadcast %cst_228 : f32 to vector<128x128xf32>
    %239 = arith.maximumf %237, %238 : vector<128x128xf32>
    %c0_229 = arith.constant 0 : index
    %c3_230 = arith.constant 3 : index
    %c0_231 = arith.constant 0 : index
    %c0_232 = arith.constant 0 : index
    %240 = vector.load %arg7[%c0_229, %c3_230, %c0_231, %c0_232] : memref<1x4x128x128xf32, #tpu.memory_space<vmem>>, vector<1x1x128x128xf32>
    %241 = vector.shape_cast %240 : vector<1x1x128x128xf32> to vector<128x128xf32>
    %242 = vector.shape_cast %239 : vector<128x128xf32> to vector<1x1x128x128xf32>
    tpu.vector_store %arg7[%c0_229, %c3_230, %c0_231, %c0_232], %242 {strides = array<i32>} : memref<1x4x128x128xf32, #tpu.memory_space<vmem>>, vector<1x1x128x128xf32>,
    return
  }
  func.func @transform_0(%arg0: i32, %arg1: i32, %arg2: i32) -> (i32, i32, i32, i32) {
    %c0_i32 = arith.constant 0 : i32
    %c0_i32_0 = arith.constant 0 : i32
    %c0_i32_1 = arith.constant 0 : i32
    %c0_i32_2 = arith.constant 0 : i32
    return %arg1, %c0_i32, %c0_i32_0, %c0_i32_1 : i32, i32, i32, i32
  }
  func.func @transform_1(%arg0: i32, %arg1: i32, %arg2: i32) -> (i32, i32, i32) {
    %c0_i32 = arith.constant 0 : i32
    %c0_i32_0 = arith.constant 0 : i32
    %c0_i32_1 = arith.constant 0 : i32
    return %c0_i32, %c0_i32_0, %arg0 : i32, i32, i32
  }
  func.func @transform_2(%arg0: i32, %arg1: i32, %arg2: i32) -> (i32, i32) {
    %c0_i32 = arith.constant 0 : i32
    %c0_i32_0 = arith.constant 0 : i32
    return %c0_i32, %arg0 : i32, i32
  }
  func.func @transform_3(%arg0: i32, %arg1: i32, %arg2: i32) -> (i32, i32) {
    %c0_i32 = arith.constant 0 : i32
    %c0_i32_0 = arith.constant 0 : i32
    return %c0_i32, %arg0 : i32, i32
  }
  func.func @transform_4(%arg0: i32, %arg1: i32, %arg2: i32) -> (i32, i32, i32, i32) {
    %c0_i32 = arith.constant 0 : i32
    %c0_i32_0 = arith.constant 0 : i32
    return %arg1, %c0_i32, %arg2, %arg0 : i32, i32, i32, i32
  }
}

</mosaic_0001>

<bundles_post_ra>
// kernel: tpu_custom_call.1
= control target key start
LH: loop header
LB: loop body
LE: loop exit
PB: predicated region body
PF: predicated region fallthrough
CT: control target
= control target key end

     0   :  { %9 = vsyncpa [#allocation4], 0  ;;  %s9267_s0 = inlined_call_operand.vmem [shape: bf16[2,18,18,128], index: 0, kind: input, shape index: {}]   ;;  %s9268_s1 = inlined_call_operand.hbm [shape: bf16[16,128,128], index: 1, kind: input, shape index: {}]   ;;  %s9269_s2 = inlined_call_operand.vmem [shape: f32[1,128], index: 2, kind: input, shape index: {}]   ;;  %s9270_s3 = inlined_call_operand.vmem [shape: f32[1,128], index: 3, kind: input, shape index: {}]   ;;  %s9271_s4 = inlined_call_operand.hbm [shape: f32[2,4,256,128], index: 4, kind: output, shape index: {}]  }
   0x1   :  { %10 = vsyncpa [#allocation5], 0 }
   0x2   :  { %12 = vsyncpa [#allocation5 + $0x1], 0  ;;  %s7644_s15 = smov 0   ;;  %s7646_s16 = smov 0  }
   0x3   :  { %s7648_s17 = smov 0   ;;  %s7650_s18 = smov 0  }
   0x4   :  { %s7652_s19 = smov 0   ;;  %s7654_s20 = smov 0  }
   0x5   :  { %s7656_s21 = smov 0   ;;  %s7658_s22 = smov 0  }
   0x6 LB: > { %s6230_s23 = sadd.s32 4294967295, %s7607_s22   ;;  %s6231_s24 = sadd.s32 4294967294, %s7607_s22   ;;  %s7607_s22 = sphi %s7658_s22, %s18_s22   ;;  %s7603_s21 = sphi %s7656_s21, %s9286_s21   ;;  %s7599_s20 = sphi %s7654_s20, %s9285_s20   ;;  %s7595_s19 = sphi %s7652_s19, %s9284_s19   ;;  %s7591_s18 = sphi %s7650_s18, %s9283_s18   ;;  %s7587_s17 = sphi %s7648_s17, %s9282_s17   ;;  %s7583_s16 = sphi %s7646_s16, %s9281_s16   ;;  %s7579_s15 = sphi %s7644_s15, %s9280_s15  }
   0x7   : > { %s30_s25 = sadd.s32 1, %s7599_s20  ;;  %s33_s26 = sadd.s32 1, %s7603_s21 }
   0x8   : > { %p31_p0 = scmp.ge.s32.totalorder %s30_s25, 2  ;;  %s152_s27 = sadd.s32 1, %s7587_s17 }
   0x9   : > { %p162_p1 = scmp.ne.s32.totalorder %s7587_s17, %s7583_s16  ;;  %p163_p2 = scmp.eq.s32.totalorder %s6230_s23, 3 }
   0xa   : > { %s9288_s25 = smov (%p31_p0, %s30_s25), 0  ;;  %s9290_s26 = smov (!%p31_p0, %s33_s26), %s7603_s21 }
   0xb   : > { %s146_s28 = ssub.s32 %s7599_s20, %s9288_s25  ;;  %p7696_p3 = por %p163_p2, %p162_p1 }
   0xc   : > { %p35_p4 = scmp.ge.s32.totalorder %s9290_s26, 2  ;;  %p168_p5 = scmp.ne.s32.totalorder %s7583_s16, %s7579_s15 }
   0xd   : > { %p169_p6 = scmp.eq.s32.totalorder %s6231_s24, 3  ;;  %p6232_p7 = scmp.ge.s32.totalorder %s7607_s22, 1 }
   0xe   : > { %s9292_s26 = smov (%p35_p4, %s9290_s26), 0  ;;  %p176_p9 = scmp.lt.s32.totalorder %s7607_s22, 5 }
   0xf   : > { %p7705_p8 = por %p169_p6, %p168_p5  ;;  %s145_s5 = ssub.s32 %s7603_s21, %s9292_s26 }
  0x10   : > { %s147_s6 = sor.u32 %s146_s28, %s145_s5  ;;  %p7712_p10 = pnand %p6232_p7, %p176_p9 }
  0x11   : > { %p150_p11 = scmp.eq.s32.totalorder %s147_s6, 0  ;;  %p7716_p12 = scmp.eq.s32.totalorder %s6230_s23, 0 }
  0x12   : > { %p7412_p13 = pneg %p7712_p10  ;;  %s189_s11 = sshll.u32 %s9268_s1, 4  ;;  %s190_s11 = int_to_ptr.hbm [resolvable:$true] %s189_s11 }
  0x13   : > { %s7726_s12 = scalar_select %p150_p11, %s7587_s17, %s152_s27  }
  0x14   : > { %s7609_s13 = smov [#allocation3]   ;;  %p7413_p0 = pnand %p7716_p12, %p7412_p13 }
  0x15   : > { %s191_s14 = sshll.u32 %s7609_s13, 4  ;;  %s7610_s24 = smov 64   ;;  %s192_s14 = int_to_ptr.vmem [resolvable:$true] %s191_s14 }
  0x16   : > { %s7611_s23 = smov 4   ;;  %227 = sbr.rel (%p7712_p10) target bundleno = 720 (0x2d0), region = 36 }
  0x17   : > { %7415 = dma.hbm_to_vmem [thread:$0]  (!%p7413_p0), %s190_s11, 16384, %s192_s14, [#allocation4], %s7610_s24, %s7610_s24, %s7611_s23  }
  0x1b   : > { %7570 = dma.done.wait (%p7716_p12), [#allocation4], 16384  }
  0x1c   : > { %7572 = vsyncadd (%p7716_p12), [#allocation4], 4294950912  ;;  %p260_p1 = scmp.lt.s32.totalorder %s7595_s19, 1  ;;  %v7254_v0 = vld [vmem:[#allocation3 + $0x38] sm:$0xff]  ;;  %v7253_v4 = vld [vmem:[#allocation3 + $0x30] sm:$0xff]  ;;  %s7238_s5 = smul.u32 96, %s7591_s18 }
  0x1d   : > { %v7262_v1 = vld [vmem:[#allocation3 + $0x78] sm:$0xff]  ;;  %438 = vmatpush.bf16.msra.mxu0 %v7254_v0  ;;  %v7261_v5 = vld [vmem:[#allocation3 + $0x70] sm:$0xff]  ;;  %v7252_v8 = vld [vmem:[#allocation3 + $0x28] sm:$0xff]  ;;  %vm559_vm0 = vsmask.f32 3328  ;;  %vm2148_vm3 = vcmask 1042432  }
  0x1e   : > { %s261_s27 = scalar_select %p260_p1, %s7595_s19, 1  ;;  %v7278_v2 = vld [vmem:[#allocation3 + $0xb8] sm:$0xff]  ;;  %851 = vmatpush.bf16.msra.mxu1 %v7262_v1  ;;  %v7277_v6 = vld [vmem:[#allocation3 + $0xb0] sm:$0xff]  ;;  %v7260_v9 = vld [vmem:[#allocation3 + $0x68] sm:$0xff]  ;;  %vm560_vm1 = vsmask.f32 7440 }
  0x1f   : > { %v7286_v3 = vld [vmem:[#allocation3 + $0xf8] sm:$0xff]  ;;  %1081 = vmatpush.bf16.msra.mxu2 %v7278_v2  ;;  %v7285_v7 = vld [vmem:[#allocation3 + $0xf0] sm:$0xff]  ;;  %v7276_v10 = vld [vmem:[#allocation3 + $0xa8] sm:$0xff]  ;;  %vm2149_vm4 = vcmask 1046532   ;;  %s257_s13 = sand.u32 1, %s7583_s16  }
  0x20   : > { %s7399_s28 = smul.u32 216, %s261_s27  ;;  %1491 = vmatpush.bf16.msra.mxu3 %v7286_v3  ;;  %v7284_v11 = vld [vmem:[#allocation3 + $0xe8] sm:$0xff]  ;;  %v7251_v12 = vld [vmem:[#allocation3 + $0x20] sm:$0xff]  ;;  %v7250_v19 = vld [vmem:[#allocation3 + $0x18] sm:$0xff]  ;;  %s8063_s23 = sshll.u32 %s257_s13, 9 }
  0x21   : > { %439 = vmatpush.bf16.msra.mxu0 %v7253_v4  ;;  %v7259_v13 = vld [vmem:[#allocation3 + $0x60] sm:$0xff]  ;;  %v7258_v24 = vld [vmem:[#allocation3 + $0x58] sm:$0xff]  ;;  %v7249_v48 = vld [vmem:[#allocation3 + $0x10] sm:$0xff]  ;;  %s8085_s27 = scalar_lea.vmem [#allocation6], %s8063_s23  ;;  %s6061_s10 = scalar_lea.sflag [#allocation5], %s257_s13 }
  0x22   : > { %s264_s8 = scalar_lea.vmem %s9267_s0, %s7399_s28  ;;  %852 = vmatpush.bf16.msra.mxu1 %v7261_v5  ;;  %v7275_v14 = vld [vmem:[#allocation3 + $0xa0] sm:$0xff]  ;;  %v7274_v33 = vld [vmem:[#allocation3 + $0x98] sm:$0xff]  ;;  %v7257_v49 = vld [vmem:[#allocation3 + $0x50] sm:$0xff] }
  0x23   : > { %1082 = vmatpush.bf16.msra.mxu2 %v7277_v6  ;;  %s7742_s9 = scalar_lea.vmem %s264_s8, %s7238_s5  ;;  %v7283_v15 = vld [vmem:[#allocation3 + $0xe0] sm:$0xff]  ;;  %v7282_v34 = vld [vmem:[#allocation3 + $0xd8] sm:$0xff]  ;;  %vm7754_vm2 = vmor %vm559_vm0, %vm560_vm1 }
  0x24   : > { %1492 = vmatpush.bf16.msra.mxu3 %v7285_v7  ;;  %v519_v16 = vld [vmem:[%s7742_s9] sm:$0xf]  ;;  %v520_v17 = vld [vmem:[%s7742_s9 + $0x4] sm:$0xf]  ;;  %v521_v18 = vld [vmem:[%s7742_s9 + $0x8] sm:$0x1] }
  0x25   : > { %440 = vmatpush.bf16.msra.mxu0 %v7252_v8  ;;  %v563_v20 = vshrl.u32 %v519_v16, 16  ;;  %v566_v21 = vshll.u32 %v519_v16, 16  ;;  %v572_v22 = vshll.u32 %v520_v17, 16  ;;  %v576_v23 = vshrl.u32 %v520_v17, 16  ;;  %v6422_v26 = vld [vmem:[%s7742_s9 + $0xc] sm:$0xf]  ;;  %vm7936_vm5 = vmor %vm2148_vm3, %vm2149_vm4 }
  0x26   : > { %853 = vmatpush.bf16.msra.mxu1 %v7260_v9  ;;  %v582_v25 = vshll.u32 %v521_v18, 16  ;;  %v6423_v27 = vld [vmem:[%s7742_s9 + $0x10] sm:$0xf]  ;;  %v6424_v32 = vld [vmem:[%s7742_s9 + $0x14] sm:$0x1]  ;;  %v1203_v35 = vshrl.u32 %v6422_v26, 16 }
  0x27   : > { %1083 = vmatpush.bf16.msra.mxu2 %v7276_v10  ;;  %v565_v28 = vrot.slane %v563_v20, 4  ;;  %v568_v29 = vrot.slane %v566_v21, 5  ;;  %v574_v30 = vrot.slane %v572_v22, 5  ;;  %v578_v31 = vrot.slane %v576_v23, 4  ;;  %v522_v42 = vld [vmem:[%s7742_s9 + $0xc] sm:$0xf] }
  0x28   : > { %1493 = vmatpush.bf16.msra.mxu3 %v7284_v11  ;;  %v1206_v36 = vshll.u32 %v6422_v26, 16  ;;  %v1212_v37 = vshll.u32 %v6423_v27, 16  ;;  %v1216_v40 = vshrl.u32 %v6423_v27, 16  ;;  %v1222_v41 = vshll.u32 %v6424_v32, 16  ;;  %v523_v47 = vld [vmem:[%s7742_s9 + $0x10] sm:$0xf] }
  0x29   : > { %441 = vmatpush.bf16.msra.mxu0 %v7251_v12  ;;  %v569_v38 = vor.u32 %v568_v29, %v565_v28  ;;  %v579_v39 = vor.u32 %v578_v31, %v574_v30  ;;  %v584_v43 = vrot.slane %v582_v25, 5  ;;  %v1205_v44 = vrot.slane %v1203_v35, 4  ;;  %v7273_v54 = vld [vmem:[#allocation3 + $0x90] sm:$0xff]  ;;  %v6425_v62 = vld [vmem:[%s7742_s9 + $0x18] sm:$0xf]  ;;  %v7248_v3 = vld [vmem:[#allocation3 + $0x8] sm:$0xff] }
  0x2a   : > { %854 = vmatpush.bf16.msra.mxu1 %v7259_v13  ;;  %v1208_v45 = vrot.slane %v1206_v36, 5  ;;  %v1214_v46 = vrot.slane %v1212_v37, 5  ;;  %v1218_v53 = vrot.slane %v1216_v40, 4  ;;  %v7281_v55 = vld [vmem:[#allocation3 + $0xd0] sm:$0xff]  ;;  %v587_v57 = vshrl.u32 %v522_v42, 16  ;;  %v7256_v4 = vld [vmem:[#allocation3 + $0x48] sm:$0xff] }
  0x2b   : > { %1084 = vmatpush.bf16.msra.mxu2 %v7275_v14  ;;  %v570_v51 = vrot.slane %v569_v38, 4  ;;  %v580_v52 = vrot.slane %v579_v39, 4  ;;  %v1224_v59 = vrot.slane %v1222_v41, 5  ;;  %v590_v60 = vshll.u32 %v522_v42, 16  ;;  %v7272_v6 = vld [vmem:[#allocation3 + $0x88] sm:$0xff]  ;;  %v7247_v16 = vld [vmem:[#allocation3] sm:$0xff] }
  0x2c   : > { %1494 = vmatpush.bf16.msra.mxu3 %v7283_v15  ;;  %v1209_v56 = vor.u32 %v1208_v45, %v1205_v44  ;;  %v1219_v58 = vor.u32 %v1218_v53, %v1214_v46  ;;  %v596_v61 = vshll.u32 %v523_v47, 16  ;;  %v600_v2 = vshrl.u32 %v523_v47, 16  ;;  %v7280_v7 = vld [vmem:[#allocation3 + $0xc8] sm:$0xff]  ;;  %v6426_v10 = vld [vmem:[%s7742_s9 + $0x1c] sm:$0xf]  ;;  %v7255_v22 = vld [vmem:[#allocation3 + $0x40] sm:$0xff] }
  0x2d   : > { %442 = vmatpush.bf16.msra.mxu0 %v7250_v19  ;;  %v575_v63 = vsel %vm7754_vm2, %v570_v51, %v574_v30  ;;  %v585_v0 = vsel %vm7754_vm2, %v580_v52, %v584_v43  ;;  %v589_v9 = vrot.slane %v587_v57, 4  ;;  %v1227_v11 = vshrl.u32 %v6425_v62, 16  ;;  %v524_v18 = vld [vmem:[%s7742_s9 + $0x14] sm:$0x1]  ;;  %v7271_v27 = vld [vmem:[#allocation3 + $0x80] sm:$0xff]  ;;  %v7310_v30 = vld [vmem:[#allocation3 + $0x1b8] sm:$0xff] }
  0x2e   : > { %855 = vmatpush.bf16.msra.mxu1 %v7258_v24  ;;  %v1210_v1 = vrot.slane %v1209_v56, 4  ;;  %v1220_v5 = vrot.slane %v1219_v58, 4  ;;  %v771_v12 = vunpack.c.l.b16 %v575_v63  ;;  %v772_v13 = vunpack.c.l.b16 %v585_v0  ;;  %v7279_v28 = vld [vmem:[#allocation3 + $0xc0] sm:$0xff]  ;;  %v7318_v31 = vld [vmem:[#allocation3 + $0x1f8] sm:$0xff]  ;;  %v7263_v40 = vld [vmem:[%s7742_s9 + $0xc] sm:$0xff] }
  0x2f   : > { %1085 = vmatpush.bf16.msra.mxu2 %v7274_v33  ;;  %v592_v15 = vrot.slane %v590_v60, 5  ;;  %v7769_v19 = vrot.slane %v596_v61, 5  ;;  %v602_v20 = vrot.slane %v600_v2, 4  ;;  %v1230_v21 = vshll.u32 %v6425_v62, 16  ;;  %v6427_v32 = vld [vmem:[%s7742_s9 + $0x20] sm:$0x1] }
  0x30   : > { %1495 = vmatpush.bf16.msra.mxu3 %v7282_v34  ;;  %v1215_v8 = vsel %vm7754_vm2, %v1210_v1, %v1214_v46  ;;  %v1225_v14 = vsel %vm7754_vm2, %v1220_v5, %v1224_v59  ;;  %v1229_v24 = vrot.slane %v1227_v11, 4  ;;  %v1236_v25 = vshll.u32 %v6426_v10, 16  ;;  %v7239_v35 = vld [vmem:[%s7742_s9] sm:$0xff]  ;;  %v525_v43 = vld [vmem:[%s7742_s9 + $0x18] sm:$0xf]  ;;  %v7317_v51 = vld [vmem:[#allocation3 + $0x1f0] sm:$0xff] }
  0x31   : > { %443 = vmatpush.bf16.msra.mxu0 %v7249_v48  ;;  %v1411_v17 = vunpack.c.l.b16 %v1215_v8  ;;  %v1412_v23 = vunpack.c.l.b16 %v1225_v14  ;;  %v1240_v26 = vshrl.u32 %v6426_v10, 16  ;;  %v1232_v29 = vrot.slane %v1230_v21, 5  ;;  %v7294_v44 = vld [vmem:[#allocation3 + $0x138] sm:$0xff]  ;;  %v6428_v60 = vld [vmem:[%s7742_s9 + $0x24] sm:$0xf]  ;;  %v7293_v63 = vld [vmem:[#allocation3 + $0x130] sm:$0xff] }
  0x32   : > { %856 = vmatpush.bf16.msra.mxu1 %v7257_v49  ;;  %v7772_v33 = vrot.slane %v1236_v25, 5  ;;  %v787_v36 = vpack.c.b16 %v772_v13, %v771_v12  ;;  %v593_v37 = vor.u32 %v592_v15, %v589_v9  ;;  %v603_v38 = vor.u32 %v602_v20, %v7769_v19  ;;  %v7302_v45 = vld [vmem:[#allocation3 + $0x178] sm:$0xff]  ;;  %v7309_v49 = vld [vmem:[#allocation3 + $0x1b0] sm:$0xff]  ;;  %v6429_v1 = vld [vmem:[%s7742_s9 + $0x28] sm:$0xf] }
  0x33   : > { %1086 = vmatpush.bf16.msra.mxu2 %v7273_v54  ;;  %v1242_v34 = vrot.slane %v1240_v26, 4  ;;  %v606_v39 = vshll.u32 %v524_v18, 16  ;;  %v1427_v41 = vpack.c.b16 %v1412_v23, %v1411_v17  ;;  %v1233_v42 = vor.u32 %v1232_v29, %v1229_v24  ;;  %v526_v48 = vld [vmem:[%s7742_s9 + $0x1c] sm:$0xf]  ;;  %v7301_v0 = vld [vmem:[#allocation3 + $0x170] sm:$0xff]  ;;  %v7308_v2 = vld [vmem:[#allocation3 + $0x1a8] sm:$0xff] }
  0x34   : > { %1496 = vmatpush.bf16.msra.mxu3 %v7281_v55  ;;  %v1246_v47 = vshll.u32 %v6427_v32, 16  ;;  %v594_v52 = vrot.slane %v593_v37, 4  ;;  %v604_v53 = vrot.slane %v603_v38, 4  ;;  %v611_v55 = vshrl.u32 %v525_v43, 16  ;;  %v527_v9 = vld [vmem:[%s7742_s9 + $0x20] sm:$0x1] }
  0x35   : > { %444 = vmatpush.bf16.msra.mxu0 %v7248_v3  ;;  %v1243_v46 = vor.u32 %v1242_v34, %v7772_v33  ;;  %v608_v54 = vrot.slane %v606_v39, 5  ;;  %v1234_v56 = vrot.slane %v1233_v42, 4  ;;  %v614_v57 = vshll.u32 %v525_v43, 16  ;;  %v7316_v3 = vld [vmem:[#allocation3 + $0x1e8] sm:$0xff]  ;;  %v6431_v43 = vld [vmem:[%s7742_s9 + $0x30] sm:$0xf] }
  0x36   : > { %857 = vmatpush.bf16.msra.mxu1 %v7256_v4  ;;  %v620_v58 = vshll.u32 %v526_v48, 16  ;;  %v624_v59 = vshrl.u32 %v526_v48, 16  ;;  %v1248_v62 = vrot.slane %v1246_v47, 5  ;;  %v599_v4 = vsel %vm7754_vm2, %v594_v52, %v7769_v19  ;;  %v7292_v17 = vld [vmem:[#allocation3 + $0x128] sm:$0xff]  ;;  %v7315_v47 = vld [vmem:[#allocation3 + $0x1e0] sm:$0xff] }
  0x37   : > { %1087 = vmatpush.bf16.msra.mxu2 %v7272_v6  ;;  %v1244_v61 = vrot.slane %v1243_v46, 4  ;;  %v609_v5 = vsel %vm7754_vm2, %v604_v53, %v608_v54  ;;  %v613_v6 = vrot.slane %v611_v55, 4  ;;  %v1239_v8 = vsel %vm7754_vm2, %v1234_v56, %v7772_v33  ;;  %v7300_v18 = vld [vmem:[#allocation3 + $0x168] sm:$0xff]  ;;  %v7264_v33 = vld [vmem:[%s7742_s9 + $0x18] sm:$0xff]  ;;  %v7307_v46 = vld [vmem:[#allocation3 + $0x1a0] sm:$0xff] }
  0x38   : > { %1497 = vmatpush.bf16.msra.mxu3 %v7280_v7  ;;  %v1251_v7 = vshrl.u32 %v6428_v60, 16  ;;  %v616_v10 = vrot.slane %v614_v57, 5  ;;  %v7791_v11 = vrot.slane %v620_v58, 5  ;;  %v626_v12 = vrot.slane %v624_v59, 4  ;;  %v529_v42 = vld [vmem:[%s7742_s9 + $0x28] sm:$0xf] }
  0x39   : > { %445 = vmatpush.bf16.msra.mxu0 %v7247_v16  ;;  %v1249_v13 = vsel %vm7754_vm2, %v1244_v61, %v1248_v62  ;;  %v1254_v14 = vshll.u32 %v6428_v60, 16  ;;  %v1260_v15 = vshll.u32 %v6429_v1, 16  ;;  %v1264_v16 = vshrl.u32 %v6429_v1, 16  ;;  %v7291_v48 = vld [vmem:[#allocation3 + $0x120] sm:$0xff] }
  0x3a   : > { %858 = vmatpush.bf16.msra.mxu1 %v7255_v22  ;;  %v773_v19 = vunpack.c.l.b16 %v599_v4  ;;  %v774_v20 = vunpack.c.l.b16 %v609_v5  ;;  %v630_v21 = vshll.u32 %v527_v9, 16  ;;  %v1413_v22 = vunpack.c.l.b16 %v1239_v8  ;;  %v7299_v54 = vld [vmem:[#allocation3 + $0x160] sm:$0xff] }
  0x3b   : > { %1088 = vmatpush.bf16.msra.mxu2 %v7271_v27  ;;  %v1414_v23 = vunpack.c.l.b16 %v1249_v13  ;;  %v617_v24 = vor.u32 %v616_v10, %v613_v6  ;;  %v1253_v25 = vrot.slane %v1251_v7, 4  ;;  %v627_v26 = vor.u32 %v626_v12, %v7791_v11  ;;  %v530_v7 = vld [vmem:[%s7742_s9 + $0x2c] sm:$0x1] }
  0x3c   : > { %1498 = vmatpush.bf16.msra.mxu3 %v7279_v28  ;;  %446 = vmatmul.bf16.vlgmr.msra.gmra.mxu0 %v7239_v35  ;;  %v1256_v27 = vrot.slane %v1254_v14, 5  ;;  %v1262_v28 = vrot.slane %v1260_v15, 5  ;;  %v1266_v29 = vrot.slane %v1264_v16, 4  ;;  %v788_v32 = vpack.c.b16 %v774_v20, %v773_v19  ;;  %v6433_v14 = vld [vmem:[%s7742_s9 + $0x38] sm:$0x1] }
  0x3d   : > { %859 = vmatmul.bf16.vlgmr.msra.gmra.mxu1 %v787_v36  ;;  %2003 = vmatpush.bf16.msrb.mxu0 %v7294_v44  ;;  %v1428_v34 = vpack.c.b16 %v1414_v23, %v1413_v22  ;;  %v618_v35 = vrot.slane %v617_v24, 4  ;;  %v632_v36 = vrot.slane %v630_v21, 5  ;;  %v628_v37 = vrot.slane %v627_v26, 4  ;;  %v6432_v44 = vld [vmem:[%s7742_s9 + $0x34] sm:$0xf]  ;;  %v7265_v23 = vld [vmem:[%s7742_s9 + $0x24] sm:$0xff] }
  0x3e   : > { %1089 = vmatmul.bf16.vlgmr.msra.gmra.mxu2 %v7263_v40  ;;  %2304 = vmatpush.bf16.msrb.mxu1 %v7302_v45  ;;  %v1257_v38 = vor.u32 %v1256_v27, %v1253_v25  ;;  %v1267_v39 = vor.u32 %v1266_v29, %v1262_v28  ;;  %v644_v57 = vshll.u32 %v529_v42, 16  ;;  %v648_v58 = vshrl.u32 %v529_v42, 16  ;;  %v531_v25 = vld [vmem:[%s7742_s9 + $0x30] sm:$0xf] }
  0x3f   : > { %2714 = vmatpush.bf16.msrb.mxu2 %v7310_v30  ;;  %1499 = vmatmul.bf16.vlgmr.msra.gmra.mxu3 %v1427_v41  ;;  %v6430_v30 = vld [vmem:[%s7742_s9 + $0x2c] sm:$0x1]  ;;  %v528_v41 = vld [vmem:[%s7742_s9 + $0x24] sm:$0xf]  ;;  %v623_v45 = vsel %vm7754_vm2, %v618_v35, %v7791_v11  ;;  %v1275_v59 = vshrl.u32 %v6431_v43, 16  ;;  %v1278_v60 = vshll.u32 %v6431_v43, 16 }
  0x40   : > { %3012 = vmatpush.bf16.msrb.mxu3 %v7318_v31  ;;  %v7240_v31 = vld [vmem:[%s7742_s9 + $0xc] sm:$0xff]  ;;  %v1270_v40 = vshll.u32 %v6430_v30, 16  ;;  %v1268_v52 = vrot.slane %v1267_v39, 4  ;;  %v635_v55 = vshrl.u32 %v528_v41, 16  ;;  %v638_v56 = vshll.u32 %v528_v41, 16  ;;  %v7306_v35 = vld [vmem:[#allocation3 + $0x198] sm:$0xff] }
  0x41   : > { %2004 = vmatpush.bf16.msrb.mxu0 %v7293_v63  ;;  %v1284_v61 = vshll.u32 %v6432_v44, 16  ;;  %v1288_v62 = vshrl.u32 %v6432_v44, 16  ;;  %v775_v63 = vunpack.c.l.b16 %v623_v45  ;;  %v646_v5 = vrot.slane %v644_v57, 5  ;;  %v7298_v41 = vld [vmem:[#allocation3 + $0x158] sm:$0xff]  ;;  %v6435_v43 = vld [vmem:[%s7742_s9 + $0x40] sm:$0xf] }
  0x42   : > { %2305 = vmatpush.bf16.msrb.mxu1 %v7301_v0  ;;  %v1272_v53 = vrot.slane %v1270_v40, 5  ;;  %v640_v4 = vrot.slane %v638_v56, 5  ;;  %v650_v6 = vrot.slane %v648_v58, 4  ;;  %v1277_v8 = vrot.slane %v1275_v59, 4  ;;  %v6434_v40 = vld [vmem:[%s7742_s9 + $0x3c] sm:$0xf] }
  0x43   : > { %2715 = vmatpush.bf16.msrb.mxu2 %v7309_v49  ;;  %v633_v49 = vsel %vm7754_vm2, %v628_v37, %v632_v36  ;;  %v1280_v9 = vrot.slane %v1278_v60, 5  ;;  %v1286_v10 = vrot.slane %v1284_v61, 5  ;;  %v1290_v11 = vrot.slane %v1288_v62, 4  ;;  %v7314_v36 = vld [vmem:[#allocation3 + $0x1d8] sm:$0xff] }
  0x44   : > { %3013 = vmatpush.bf16.msrb.mxu3 %v7317_v51  ;;  %v1258_v51 = vrot.slane %v1257_v38, 4  ;;  %v776_v0 = vunpack.c.l.b16 %v633_v49  ;;  %v651_v19 = vor.u32 %v650_v6, %v646_v5  ;;  %v1294_v22 = vshll.u32 %v6433_v14, 16  ;;  %v7290_v37 = vld [vmem:[#allocation3 + $0x118] sm:$0xff] }
  0x45   : > { %2005 = vmatpush.bf16.msrb.mxu0 %v7292_v17  ;;  %v654_v17 = vshll.u32 %v530_v7, 16  ;;  %v1281_v20 = vor.u32 %v1280_v9, %v1277_v8  ;;  %v1291_v21 = vor.u32 %v1290_v11, %v1286_v10  ;;  %v1299_v49 = vshrl.u32 %v6434_v40, 16  ;;  %v7266_v7 = vld [vmem:[%s7742_s9 + $0x30] sm:$0xff] }
  0x46   : > { %2306 = vmatpush.bf16.msrb.mxu1 %v7300_v18  ;;  %v1263_v1 = vsel %vm7754_vm2, %v1258_v51, %v1262_v28  ;;  %v789_v15 = vpack.c.b16 %v776_v0, %v775_v63  ;;  %v7241_v18 = vld [vmem:[%s7742_s9 + $0x18] sm:$0xff]  ;;  %v532_v28 = vld [vmem:[%s7742_s9 + $0x34] sm:$0xf]  ;;  %v652_v29 = vrot.slane %v651_v19, 4  ;;  %v1302_v51 = vshll.u32 %v6434_v40, 16 }
  0x47   : > { %2716 = vmatpush.bf16.msrb.mxu2 %v7308_v2  ;;  %v1273_v2 = vsel %vm7754_vm2, %v1268_v52, %v1272_v53  ;;  %v1415_v12 = vunpack.c.l.b16 %v1263_v1  ;;  %v656_v27 = vrot.slane %v654_v17, 5  ;;  %v1282_v30 = vrot.slane %v1281_v20, 4  ;;  %v533_v52 = vld [vmem:[%s7742_s9 + $0x38] sm:$0x1]  ;;  %v6436_v1 = vld [vmem:[%s7742_s9 + $0x44] sm:$0x1] }
  0x48   : > { %3014 = vmatpush.bf16.msrb.mxu3 %v7316_v3  ;;  %v637_v3 = vrot.slane %v635_v55, 4  ;;  %v1416_v13 = vunpack.c.l.b16 %v1273_v2  ;;  %v668_v38 = vshll.u32 %v532_v28, 16  ;;  %v672_v39 = vshrl.u32 %v532_v28, 16  ;;  %v6437_v17 = vld [vmem:[%s7742_s9 + $0x48] sm:$0xf]  ;;  %v7305_v20 = vld [vmem:[#allocation3 + $0x190] sm:$0xff] }
  0x49   : > { %2006 = vmatpush.bf16.msrb.mxu0 %v7291_v48  ;;  %v657_v44 = vsel %vm7754_vm2, %v652_v29, %v656_v27  ;;  %v1287_v45 = vsel %vm7754_vm2, %v1282_v30, %v1286_v10  ;;  %v1308_v55 = vshll.u32 %v6435_v43, 16  ;;  %v1312_v56 = vshrl.u32 %v6435_v43, 16  ;;  %v7297_v27 = vld [vmem:[#allocation3 + $0x150] sm:$0xff] }
  0x4a   : > { %2307 = vmatpush.bf16.msrb.mxu1 %v7299_v54  ;;  %v641_v16 = vor.u32 %v640_v4, %v637_v3  ;;  %v1429_v24 = vpack.c.b16 %v1416_v13, %v1415_v12  ;;  %v670_v53 = vrot.slane %v668_v38, 5  ;;  %v674_v54 = vrot.slane %v672_v39, 4 }
  0x4b   : > { %2717 = vmatpush.bf16.msrb.mxu2 %v7307_v46  ;;  %v778_v58 = vunpack.c.l.b16 %v657_v44  ;;  %v1417_v59 = vunpack.c.l.b16 %v1287_v45  ;;  %v678_v62 = vshll.u32 %v533_v52, 16  ;;  %v1301_v63 = vrot.slane %v1299_v49, 4  ;;  %v536_v44 = vld [vmem:[%s7742_s9 + $0x44] sm:$0x1]  ;;  %v6439_v52 = vld [vmem:[%s7742_s9 + $0x50] sm:$0x1] }
  0x4c   : > { %451 = vmatmul.bf16.gmra.mxu0 %v7240_v31  ;;  %3015 = vmatpush.bf16.msrb.mxu3 %v7315_v47  ;;  %v642_v26 = vrot.slane %v641_v16, 4  ;;  %v1292_v31 = vrot.slane %v1291_v21, 4  ;;  %v675_v0 = vor.u32 %v674_v54, %v670_v53  ;;  %v1304_v2 = vrot.slane %v1302_v51, 5  ;;  %v535_v16 = vld [vmem:[%s7742_s9 + $0x40] sm:$0xf]  ;;  %v7313_v21 = vld [vmem:[#allocation3 + $0x1d0] sm:$0xff] }
  0x4d   : > { %864 = vmatmul.bf16.gmra.mxu1 %v788_v32  ;;  %v1296_v32 = vrot.slane %v1294_v22, 5  ;;  %2007 = vmatpush.bf16.msrb.mxu0 %v7290_v37  ;;  %v1310_v3 = vrot.slane %v1308_v55, 5  ;;  %v1314_v4 = vrot.slane %v1312_v56, 4  ;;  %v1318_v10 = vshll.u32 %v6436_v1, 16  ;;  %v7289_v22 = vld [vmem:[#allocation3 + $0x110] sm:$0xff] }
  0x4e   : > { %1094 = vmatmul.bf16.gmra.mxu2 %v7264_v33  ;;  %v659_v33 = vshrl.u32 %v531_v25, 16  ;;  %v647_v42 = vsel %vm7754_vm2, %v642_v26, %v646_v5  ;;  %2308 = vmatpush.bf16.msrb.mxu1 %v7298_v41  ;;  %v7242_v5 = vld [vmem:[%s7742_s9 + $0x24] sm:$0xff]  ;;  %v676_v11 = vrot.slane %v675_v0, 4  ;;  %v680_v12 = vrot.slane %v678_v62, 5  ;;  %v7243_v56 = vld [vmem:[%s7742_s9 + $0x30] sm:$0xff] }
  0x4f   : > { %1504 = vmatmul.bf16.gmra.mxu3 %v1428_v34  ;;  %v662_v34 = vshll.u32 %v531_v25, 16  ;;  %2718 = vmatpush.bf16.msrb.mxu2 %v7306_v35  ;;  %v1297_v46 = vsel %vm7754_vm2, %v1292_v31, %v1296_v32  ;;  %v777_v57 = vunpack.c.l.b16 %v647_v42  ;;  %v1305_v13 = vor.u32 %v1304_v2, %v1301_v63  ;;  %v537_v1 = vld [vmem:[%s7742_s9 + $0x48] sm:$0xf] }
  0x50   : > { %3016 = vmatpush.bf16.msrb.mxu3 %v7314_v36  ;;  %v661_v47 = vrot.slane %v659_v33, 4  ;;  %v1418_v60 = vunpack.c.l.b16 %v1297_v46  ;;  %v1315_v14 = vor.u32 %v1314_v4, %v1310_v3  ;;  %v1320_v19 = vrot.slane %v1318_v10, 5 }
  0x51   : > { %v664_v48 = vrot.slane %v662_v34, 5  ;;  %v790_v6 = vpack.c.b16 %v778_v58, %v777_v57  ;;  %v1306_v25 = vrot.slane %v1305_v13, 4  ;;  %v692_v30 = vshll.u32 %v535_v16, 16  ;;  %2008 = vmatpush.bf16.msrb.mxu0 %v7289_v22  ;;  %v7296_v13 = vld [vmem:[#allocation3 + $0x148] sm:$0xff] }
  0x52   : > { %v1430_v8 = vpack.c.b16 %v1418_v60, %v1417_v59  ;;  %v1316_v26 = vrot.slane %v1315_v14, 4  ;;  %v696_v31 = vshrl.u32 %v535_v16, 16  ;;  %v1323_v32 = vshrl.u32 %v6437_v17, 16  ;;  %2309 = vmatpush.bf16.msrb.mxu1 %v7297_v27 }
  0x53   : > { %v665_v61 = vor.u32 %v664_v48, %v661_v47  ;;  %2719 = vmatpush.bf16.msrb.mxu2 %v7305_v20  ;;  %v1326_v33 = vshll.u32 %v6437_v17, 16  ;;  %v1311_v38 = vsel %vm7754_vm2, %v1306_v25, %v1310_v3  ;;  %v694_v42 = vrot.slane %v692_v30, 5 }
  0x54   : > { %3017 = vmatpush.bf16.msrb.mxu3 %v7313_v21  ;;  %v1321_v39 = vsel %vm7754_vm2, %v1316_v26, %v1320_v19  ;;  %v698_v43 = vrot.slane %v696_v31, 4  ;;  %v1325_v45 = vrot.slane %v1323_v32, 4  ;;  %v1419_v49 = vunpack.c.l.b16 %v1311_v38 }
  0x55   : > { %v666_v9 = vrot.slane %v665_v61, 4  ;;  %v1328_v46 = vrot.slane %v1326_v33, 5  ;;  %v1420_v51 = vunpack.c.l.b16 %v1321_v39  ;;  %v702_v55 = vshll.u32 %v536_v44, 16  ;;  %v7267_v61 = vld [vmem:[%s7742_s9 + $0x3c] sm:$0xff]  ;;  %v7268_v44 = vld [vmem:[%s7742_s9 + $0x48] sm:$0xff] }
  0x56   : > { %v699_v57 = vor.u32 %v698_v43, %v694_v42  ;;  %v1342_v60 = vshll.u32 %v6439_v52, 16  ;;  %v707_v10 = vshrl.u32 %v537_v1, 16  ;;  %2310 = vmatpush.bf16.msrb.mxu1 %v7296_v13  ;;  %v6442_v39 = vld [vmem:[%s7742_s9 + $0x5c] sm:$0x1]  ;;  %v541_v43 = vld [vmem:[%s7742_s9 + $0x58] sm:$0xf] }
  0x57   : > { %v1329_v58 = vor.u32 %v1328_v46, %v1325_v45  ;;  %v1431_v62 = vpack.c.b16 %v1420_v51, %v1419_v49  ;;  %v704_v0 = vrot.slane %v702_v55, 5  ;;  %v6444_v49 = vld [vmem:[%s7742_s9 + $0x64] sm:$0xf]  ;;  %v542_v13 = vld [vmem:[%s7742_s9 + $0x5c] sm:$0x1] }
  0x58   : > { %v700_v2 = vrot.slane %v699_v57, 4  ;;  %v740_v57 = vshll.u32 %v541_v43, 16 }
  0x59   : > { %v1330_v3 = vrot.slane %v1329_v58, 4  ;;  %v744_v58 = vshrl.u32 %v541_v43, 16 }
  0x5a   : > { %v705_v16 = vsel %vm7754_vm2, %v700_v2, %v704_v0  ;;  %v7311_v2 = vld [vmem:[#allocation3 + $0x1c0] sm:$0xff] }
  0x5c   : > { %456 = vmatmul.bf16.gmra.mxu0 %v7241_v18  ;;  %v6438_v18 = vld [vmem:[%s7742_s9 + $0x4c] sm:$0xf] }
  0x5d   : > { %869 = vmatmul.bf16.gmra.mxu1 %v789_v15  ;;  %v534_v15 = vld [vmem:[%s7742_s9 + $0x3c] sm:$0xf]  ;;  %v1332_v34 = vshll.u32 %v6438_v18, 16  ;;  %v1336_v35 = vshrl.u32 %v6438_v18, 16 }
  0x5e   : > { %1099 = vmatmul.bf16.gmra.mxu2 %v7265_v23  ;;  %v671_v23 = vsel %vm7754_vm2, %v666_v9, %v670_v53  ;;  %v683_v28 = vshrl.u32 %v534_v15, 16  ;;  %v686_v29 = vshll.u32 %v534_v15, 16  ;;  %v7288_v9 = vld [vmem:[#allocation3 + $0x108] sm:$0xff]  ;;  %v6441_v15 = vld [vmem:[%s7742_s9 + $0x58] sm:$0xf] }
  0x5f   : > { %1509 = vmatmul.bf16.gmra.mxu3 %v1429_v24  ;;  %v681_v24 = vsel %vm7754_vm2, %v676_v11, %v680_v12  ;;  %v779_v36 = vunpack.c.l.b16 %v671_v23  ;;  %v1334_v47 = vrot.slane %v1332_v34, 5  ;;  %v1338_v48 = vrot.slane %v1336_v35, 4  ;;  %v6440_v12 = vld [vmem:[%s7742_s9 + $0x54] sm:$0xf]  ;;  %2009 = vmatpush.bf16.msrb.mxu0 %v7288_v9  ;;  %v539_v34 = vld [vmem:[%s7742_s9 + $0x50] sm:$0x1] }
  0x60   : > { %v780_v37 = vunpack.c.l.b16 %v681_v24  ;;  %v685_v40 = vrot.slane %v683_v28, 4  ;;  %v688_v41 = vrot.slane %v686_v29, 5  ;;  %v710_v11 = vshll.u32 %v537_v1, 16  ;;  %v7303_v1 = vld [vmem:[#allocation3 + $0x180] sm:$0xff] }
  0x61   : > { %v1339_v59 = vor.u32 %v1338_v48, %v1334_v47  ;;  %v1335_v17 = vsel %vm7754_vm2, %v1330_v3, %v1334_v47  ;;  %v1347_v21 = vshrl.u32 %v6440_v12, 16  ;;  %v1350_v22 = vshll.u32 %v6440_v12, 16  ;;  %v6443_v48 = vld [vmem:[%s7742_s9 + $0x60] sm:$0xf] }
  0x62   : > { %v791_v53 = vpack.c.b16 %v780_v37, %v779_v36  ;;  %v689_v54 = vor.u32 %v688_v41, %v685_v40  ;;  %v709_v23 = vrot.slane %v707_v10, 4  ;;  %v712_v24 = vrot.slane %v710_v11, 5  ;;  %v7244_v40 = vld [vmem:[%s7742_s9 + $0x3c] sm:$0xff] }
  0x63   : > { %v1340_v4 = vrot.slane %v1339_v59, 4  ;;  %v1356_v25 = vshll.u32 %v6441_v15, 16  ;;  %v1360_v26 = vshrl.u32 %v6441_v15, 16  ;;  %v782_v28 = vunpack.c.l.b16 %v705_v16  ;;  %v7287_v3 = vld [vmem:[#allocation3 + $0x100] sm:$0xff] }
  0x64   : > { %v690_v63 = vrot.slane %v689_v54, 4  ;;  %v1421_v29 = vunpack.c.l.b16 %v1335_v17  ;;  %v1349_v33 = vrot.slane %v1347_v21, 4  ;;  %v713_v35 = vor.u32 %v712_v24, %v709_v23  ;;  %2010 = vmatpush.bf16.msrb.mxu0 %v7287_v3 }
  0x65   : > { %v1352_v36 = vrot.slane %v1350_v22, 5  ;;  %v7863_v37 = vrot.slane %v1356_v25, 5  ;;  %v1362_v38 = vrot.slane %v1360_v26, 4  ;;  %v726_v47 = vshll.u32 %v539_v34, 16  ;;  %v1674_v22 = vld [vmem:[%s7742_s9] sm:$0xf] }
  0x66   : > { %v695_v14 = vsel %vm7754_vm2, %v690_v63, %v694_v42  ;;  %v540_v42 = vld [vmem:[%s7742_s9 + $0x54] sm:$0xf]  ;;  %v714_v51 = vrot.slane %v713_v35, 4  ;;  %v1366_v54 = vshll.u32 %v6442_v39, 16  ;;  %v1371_v59 = vshrl.u32 %v6443_v48, 16 }
  0x67   : > { %v781_v27 = vunpack.c.l.b16 %v695_v14  ;;  %v1353_v52 = vor.u32 %v1352_v36, %v1349_v33  ;;  %v731_v55 = vshrl.u32 %v540_v42, 16  ;;  %v728_v0 = vrot.slane %v726_v47, 5  ;;  %v7269_v47 = vld [vmem:[%s7742_s9 + $0x54] sm:$0xff] }
  0x68   : > { %v742_v11 = vrot.slane %v740_v57, 5  ;;  %v746_v12 = vrot.slane %v744_v58, 4  ;;  %v1373_v14 = vrot.slane %v1371_v59, 4  ;;  %v750_v26 = vshll.u32 %v542_v13, 16 }
  0x69   : > { %v792_v41 = vpack.c.b16 %v782_v28, %v781_v27  ;;  %v733_v9 = vrot.slane %v731_v55, 4  ;;  %v1675_v27 = vld [vmem:[%s7742_s9 + $0x4] sm:$0xf]  ;;  %v1715_v34 = vshrl.u32 %v1674_v22, 16  ;;  %v1718_v35 = vshll.u32 %v1674_v22, 16 }
  0x6a   : > { %v747_v25 = vor.u32 %v746_v12, %v742_v11  ;;  %v1724_v36 = vshll.u32 %v1675_v27, 16 }
  0x6c   : > { %461 = vmatmul.bf16.gmra.mxu0 %v7242_v5  ;;  %v1344_v5 = vrot.slane %v1342_v60, 5  ;;  %v1374_v60 = vshll.u32 %v6443_v48, 16  ;;  %v748_v39 = vrot.slane %v747_v25, 4  ;;  %v1678_v25 = vld [vmem:[%s7742_s9 + $0x10] sm:$0xf] }
  0x6d   : > { %874 = vmatmul.bf16.gmra.mxu1 %v790_v6  ;;  %v538_v6 = vld [vmem:[%s7742_s9 + $0x4c] sm:$0xf] }
  0x6e   : > { %1104 = vmatmul.bf16.gmra.mxu2 %v7266_v7  ;;  %v7304_v7 = vld [vmem:[#allocation3 + $0x188] sm:$0xff]  ;;  %v1345_v18 = vsel %vm7754_vm2, %v1340_v4, %v1344_v5  ;;  %v716_v19 = vshll.u32 %v538_v6, 16  ;;  %v720_v20 = vshrl.u32 %v538_v6, 16  ;;  %v1354_v5 = vrot.slane %v1353_v52, 4 }
  0x6f   : > { %1514 = vmatmul.bf16.gmra.mxu3 %v1430_v8  ;;  %v7312_v8 = vld [vmem:[#allocation3 + $0x1c8] sm:$0xff]  ;;  %2720 = vmatpush.bf16.msrb.mxu2 %v7304_v7  ;;  %v1422_v30 = vunpack.c.l.b16 %v1345_v18  ;;  %v1368_v7 = vrot.slane %v1366_v54, 5  ;;  %v1376_v15 = vrot.slane %v1374_v60, 5  ;;  %v7891_v52 = vrot.slane %v1724_v36, 5 }
  0x70   : > { %3018 = vmatpush.bf16.msrb.mxu3 %v7312_v8  ;;  %v7860_v31 = vrot.slane %v716_v19, 5  ;;  %v722_v32 = vrot.slane %v720_v20, 4  ;;  %v7295_v8 = vld [vmem:[#allocation3 + $0x140] sm:$0xff]  ;;  %v6445_v19 = vld [vmem:[%s7742_s9 + $0x68] sm:$0x1]  ;;  %v1359_v20 = vsel %vm7754_vm2, %v1354_v5, %v7863_v37 }
  0x71   : > { %v1432_v45 = vpack.c.b16 %v1422_v30, %v1421_v29  ;;  %2311 = vmatpush.bf16.msrb.mxu1 %v7295_v8  ;;  %v1377_v29 = vor.u32 %v1376_v15, %v1373_v14  ;;  %v2084_v14 = vld [vmem:[%s7742_s9] sm:$0xe]  ;;  %v6552_v15 = vld [vmem:[%s7742_s9 + $0x14] sm:$0x1] }
  0x72   : > { %v723_v46 = vor.u32 %v722_v32, %v7860_v31  ;;  %v719_v4 = vsel %vm7754_vm2, %v714_v51, %v7860_v31  ;;  %v1390_v31 = vshll.u32 %v6445_v19, 16  ;;  %v1423_v32 = vunpack.c.l.b16 %v1359_v20  ;;  %v2086_v19 = vld [vmem:[%s7742_s9 + $0x8] sm:$0x1]  ;;  %v1677_v20 = vld [vmem:[%s7742_s9 + $0xc] sm:$0xf] }
  0x73   : > { %2721 = vmatpush.bf16.msrb.mxu2 %v7303_v1  ;;  %v783_v23 = vunpack.c.l.b16 %v719_v4  ;;  %v1378_v43 = vrot.slane %v1377_v29, 4  ;;  %v1720_v51 = vrot.slane %v1718_v35, 5  ;;  %v7366_v1 = vld [vmem:[#allocation3 + $0x2f8] sm:$0xff] }
  0x74   : > { %v724_v63 = vrot.slane %v723_v46, 4  ;;  %3019 = vmatpush.bf16.msrb.mxu3 %v7311_v2  ;;  %v6550_v46 = vld [vmem:[%s7742_s9 + $0xc] sm:$0xf]  ;;  %v6554_v35 = vld [vmem:[%s7742_s9 + $0x1c] sm:$0xf] }
  0x75   : > { %v2426_v57 = vshrl.u32 %v6550_v46, 16  ;;  %v2429_v58 = vshll.u32 %v6550_v46, 16  ;;  %v7246_v46 = vld [vmem:[%s7742_s9 + $0x54] sm:$0xff] }
  0x76   : > { %v729_v18 = vsel %vm7754_vm2, %v724_v63, %v728_v0  ;;  %v2085_v63 = vld [vmem:[%s7742_s9 + $0x4] sm:$0xf]  ;;  %v7358_v0 = vld [vmem:[#allocation3 + $0x2b8] sm:$0xff] }
  0x77   : > { %v784_v28 = vunpack.c.l.b16 %v729_v18  ;;  %v2428_v8 = vrot.slane %v2426_v57, 4  ;;  %3975 = vmatpush.bf16.msra.mxu2 %v7358_v0  ;;  %v7334_v0 = vld [vmem:[#allocation3 + $0x238] sm:$0xff] }
  0x78   : > { %4385 = vmatpush.bf16.msra.mxu3 %v7366_v1  ;;  %v7342_v1 = vld [vmem:[#allocation3 + $0x278] sm:$0xff]  ;;  %3335 = vmatpush.bf16.msra.mxu0 %v7334_v0 }
  0x79   : > { %3745 = vmatpush.bf16.msra.mxu1 %v7342_v1 }
  0x7c   : > { %466 = vmatmul.bf16.gmra.mxu0 %v7243_v56  ;;  %v734_v56 = vshll.u32 %v540_v42, 16  ;;  %v793_v42 = vpack.c.b16 %v784_v28, %v783_v23  ;;  %v6606_v23 = vld [vmem:[%s7742_s9 + $0xc] sm:$0xe] }
  0x7d   : > { %879 = vmatmul.bf16.gmra.mxu1 %v791_v53  ;;  %v1363_v53 = vor.u32 %v1362_v38, %v7863_v37  ;;  %v1728_v37 = vshrl.u32 %v1675_v27, 16 }
  0x7e   : > { %1109 = vmatmul.bf16.gmra.mxu2 %v7267_v61  ;;  %v1380_v61 = vshll.u32 %v6444_v49, 16  ;;  %v736_v10 = vrot.slane %v734_v56, 5  ;;  %v1676_v56 = vld [vmem:[%s7742_s9 + $0x8] sm:$0x1] }
  0x7f   : > { %1519 = vmatmul.bf16.gmra.mxu3 %v1431_v62  ;;  %v1384_v62 = vshrl.u32 %v6444_v49, 16  ;;  %v1364_v6 = vrot.slane %v1363_v53, 4  ;;  %v1717_v49 = vrot.slane %v1715_v34, 4  ;;  %v1730_v53 = vrot.slane %v1728_v37, 4 }
  0x80   : > { %v1382_v16 = vrot.slane %v1380_v61, 5  ;;  %v737_v24 = vor.u32 %v736_v10, %v733_v9  ;;  %v6551_v61 = vld [vmem:[%s7742_s9 + $0x10] sm:$0xf]  ;;  %v1734_v5 = vshll.u32 %v1676_v56, 16  ;;  %v2431_v9 = vrot.slane %v2429_v58, 5 }
  0x81   : > { %v1386_v17 = vrot.slane %v1384_v62, 4  ;;  %v1369_v21 = vsel %vm7754_vm2, %v1364_v6, %v1368_v7  ;;  %v1721_v62 = vor.u32 %v1720_v51, %v1717_v49  ;;  %v1731_v4 = vor.u32 %v1730_v53, %v7891_v52 }
  0x82   : > { %v1424_v33 = vunpack.c.l.b16 %v1369_v21  ;;  %v738_v38 = vrot.slane %v737_v24, 4  ;;  %v1383_v59 = vsel %vm7754_vm2, %v1378_v43, %v1382_v16  ;;  %v2153_v10 = vrot.slane %v2085_v63, 5  ;;  %v6607_v24 = vld [vmem:[%s7742_s9 + $0x10] sm:$0xf] }
  0x83   : > { %v1387_v30 = vor.u32 %v1386_v17, %v1382_v16  ;;  %v7909_v6 = vunpack.c.l.b16 %v1383_v59  ;;  %v2439_v12 = vshrl.u32 %v6551_v61, 16  ;;  %v7913_v13 = vrot.slane %v1721_v62, 4  ;;  %v1679_v59 = vld [vmem:[%s7742_s9 + $0x14] sm:$0x1] }
  0x84   : > { %v1433_v48 = vpack.c.b16 %v1424_v33, %v1423_v32  ;;  %v743_v54 = vsel %vm7754_vm2, %v738_v38, %v742_v11  ;;  %v2435_v11 = vshll.u32 %v6551_v61, 16  ;;  %v1732_v17 = vrot.slane %v1731_v4, 4 }
  0x85   : > { %v7904_v2 = vunpack.c.l.b16 %v743_v54  ;;  %v1736_v18 = vrot.slane %v1734_v5, 5  ;;  %v2432_v22 = vor.u32 %v2431_v9, %v2428_v8  ;;  %v2155_v27 = vrot.slane %v2153_v10, 4 }
  0x86   : > { %v2437_v28 = vrot.slane %v2435_v11, 5  ;;  %v2441_v29 = vrot.slane %v2439_v12, 4  ;;  %v2156_v32 = vrot.slane %v2086_v19, 5  ;;  %v1739_v33 = vshrl.u32 %v1677_v20, 16  ;;  %v6555_v12 = vld [vmem:[%s7742_s9 + $0x20] sm:$0x1] }
  0x87   : > { %v1742_v34 = vshll.u32 %v1677_v20, 16  ;;  %v1737_v36 = vsel %vm7754_vm2, %v1732_v17, %v1736_v18  ;;  %v2445_v38 = vshll.u32 %v6552_v15, 16  ;;  %v6630_v43 = vrot.slane %v6606_v23, 9  ;;  %v1680_v23 = vld [vmem:[%s7742_s9 + $0x18] sm:$0xf] }
  0x88   : > { %v2459_v49 = vshll.u32 %v6554_v35, 16  ;;  %v2463_v51 = vshrl.u32 %v6554_v35, 16  ;;  %v7949_v54 = vsel %vm7936_vm5, %v2155_v27, %v2156_v32  ;;  %v1758_v15 = vshll.u32 %v1679_v59, 16  ;;  %v6609_v32 = vld [vmem:[%s7742_s9 + $0x18] sm:$0xe] }
  0x89   : > { %v1744_v56 = vrot.slane %v1742_v34, 5  ;;  %v2447_v57 = vrot.slane %v2445_v38, 5  ;;  %v2225_v18 = vunpack.c.l.b16 %v7949_v54  ;;  %v2469_v27 = vshll.u32 %v6555_v12, 16 }
  0x8a   : > { %v2465_v8 = vrot.slane %v2463_v51, 4  ;;  %v1766_v34 = vshll.u32 %v1680_v23, 16 }
  0x8b   : > { %v2471_v51 = vrot.slane %v2469_v27, 5 }
  0x8c   : > { %471 = vmatmul.bf16.gmra.mxu0 %v7244_v40  ;;  %v752_v40 = vrot.slane %v750_v26, 5  ;;  %v6510_v26 = vrot.slane %v2084_v14, 9 }
  0x8d   : > { %884 = vmatmul.bf16.gmra.mxu1 %v792_v41  ;;  %v7245_v41 = vld [vmem:[%s7742_s9 + $0x48] sm:$0xff] }
  0x8e   : > { %1114 = vmatmul.bf16.gmra.mxu2 %v7268_v44  ;;  %v1388_v44 = vrot.slane %v1387_v30, 4  ;;  %v753_v55 = vsel %vm7754_vm2, %v748_v39, %v752_v40  ;;  %v6553_v30 = vld [vmem:[%s7742_s9 + $0x18] sm:$0xf]  ;;  %v1748_v39 = vshll.u32 %v1678_v25, 16  ;;  %v1752_v40 = vshrl.u32 %v1678_v25, 16 }
  0x8f   : > { %1524 = vmatmul.bf16.gmra.mxu3 %v1432_v45  ;;  %v1392_v45 = vrot.slane %v1390_v31, 5  ;;  %v7906_v3 = vunpack.c.l.b16 %v753_v55  ;;  %v1727_v31 = vsel %vm7754_vm2, %v7913_v13, %v7891_v52  ;;  %v7270_v52 = vld [vmem:[%s7742_s9 + $0x60] sm:$0xff]  ;;  %v7945_v53 = vsel %vm7936_vm5, %v6510_v26, %v2153_v10 }
  0x90   : > { %v1741_v55 = vrot.slane %v1739_v33, 4  ;;  %v1754_v61 = vrot.slane %v1752_v40, 4  ;;  %v7963_v9 = vunpack.c.l.b16 %v1727_v31  ;;  %v7965_v10 = vunpack.c.l.b16 %v1737_v36  ;;  %v6611_v40 = vld [vmem:[%s7742_s9 + $0x20] sm:$0x1] }
  0x91   : > { %v1393_v60 = vsel %vm7754_vm2, %v1388_v44, %v1392_v45  ;;  %v794_v16 = vpack.c.b16 %v7906_v3, %v7904_v2  ;;  %v2450_v44 = vshrl.u32 %v6553_v30, 16  ;;  %v2453_v45 = vshll.u32 %v6553_v30, 16  ;;  %v2088_v2 = vld [vmem:[%s7742_s9 + $0x10] sm:$0xf] }
  0x92   : > { %v7911_v7 = vunpack.c.l.b16 %v1393_v60  ;;  %v7952_v60 = vrot.slane %v1748_v39, 5  ;;  %v1745_v11 = vor.u32 %v1744_v56, %v1741_v55  ;;  %v2224_v13 = vunpack.c.l.b16 %v7945_v53 }
  0x93   : > { %v2452_v3 = vrot.slane %v2450_v44, 4  ;;  %v2455_v4 = vrot.slane %v2453_v45, 5  ;;  %v2160_v17 = vrot.slane %v2088_v2, 5  ;;  %v1763_v33 = vshrl.u32 %v1680_v23, 16  ;;  %v7365_v44 = vld [vmem:[#allocation3 + $0x2f0] sm:$0xff] }
  0x94   : > { %v1434_v21 = vpack.c.b16 %v7911_v7, %v7909_v6  ;;  %v7961_v7 = vrot.slane %v2459_v49, 5  ;;  %v1755_v14 = vor.u32 %v1754_v61, %v7952_v60  ;;  %v1746_v30 = vrot.slane %v1745_v11, 4  ;;  %4386 = vmatpush.bf16.msra.mxu3 %v7365_v44 }
  0x95   : > { %v1760_v36 = vrot.slane %v1758_v15, 5  ;;  %v2162_v38 = vrot.slane %v2160_v17, 4  ;;  %v1765_v54 = vrot.slane %v1763_v33, 4  ;;  %v1768_v55 = vrot.slane %v1766_v34, 5  ;;  %v6556_v15 = vld [vmem:[%s7742_s9 + $0x24] sm:$0xf] }
  0x96   : > { %v2466_v26 = vor.u32 %v2465_v8, %v7961_v7  ;;  %v1756_v35 = vrot.slane %v1755_v14, 4  ;;  %v2871_v59 = vrot.slane %v6611_v40, 5  ;;  %v1939_v0 = vpack.c.b16 %v7965_v10, %v7963_v9  ;;  %v2091_v14 = vld [vmem:[%s7742_s9 + $0x1c] sm:$0xf] }
  0x97   : > { %v2240_v1 = vpack.c.b16 %v2225_v18, %v2224_v13  ;;  %v1769_v12 = vor.u32 %v1768_v55, %v1765_v54  ;;  %v2477_v27 = vshll.u32 %v6556_v15, 16 }
  0x98   : > { %v2467_v49 = vrot.slane %v2466_v26, 4  ;;  %v1761_v56 = vsel %vm7754_vm2, %v1756_v35, %v1760_v36  ;;  %v2474_v26 = vshrl.u32 %v6556_v15, 16 }
  0x9c   : > { %476 = vmatmul.bf16.gmra.mxu0 %v7245_v41  ;;  %v2433_v41 = vrot.slane %v2432_v22, 4  ;;  %v2456_v22 = vor.u32 %v2455_v4, %v2452_v3  ;;  %v2472_v3 = vsel %vm7754_vm2, %v2467_v49, %v2471_v51  ;;  %v1682_v4 = vld [vmem:[%s7742_s9 + $0x20] sm:$0x1]  ;;  %v2479_v49 = vrot.slane %v2477_v27, 5  ;;  %v1684_v51 = vld [vmem:[%s7742_s9 + $0x28] sm:$0xf] }
  0x9d   : > { %889 = vmatmul.bf16.gmra.mxu1 %v793_v42  ;;  %v6608_v42 = vld [vmem:[%s7742_s9 + $0x14] sm:$0x1]  ;;  %v8017_v18 = vunpack.c.l.b16 %v2472_v3  ;;  %v1782_v23 = vshll.u32 %v1682_v4, 16  ;;  %v6612_v3 = vld [vmem:[%s7742_s9 + $0x24] sm:$0xe]  ;;  %v7356_v4 = vld [vmem:[#allocation3 + $0x2a8] sm:$0xff] }
  0x9e   : > { %1119 = vmatmul.bf16.gmra.mxu2 %v7269_v47  ;;  %v2442_v47 = vor.u32 %v2441_v29, %v2437_v28  ;;  %v2864_v58 = vrot.slane %v6608_v42, 5  ;;  %v2438_v62 = vsel %vm7754_vm2, %v2433_v41, %v2437_v28  ;;  %v6610_v28 = vld [vmem:[%s7742_s9 + $0x1c] sm:$0xf]  ;;  %v2457_v41 = vrot.slane %v2456_v22, 4 }
  0x9f   : > { %1529 = vmatmul.bf16.gmra.mxu3 %v1433_v48  ;;  %v2861_v48 = vrot.slane %v6607_v24, 5  ;;  %v7972_v19 = vunpack.c.l.b16 %v2438_v62  ;;  %v1681_v29 = vld [vmem:[%s7742_s9 + $0x1c] sm:$0xf]  ;;  %v2868_v42 = vrot.slane %v6610_v28, 5 }
  0xa0   : > { %v2443_v5 = vrot.slane %v2442_v47, 4  ;;  %v1772_v45 = vshll.u32 %v1681_v29, 16 }
  0xa1   : > { %v7958_v63 = vsel %vm7936_vm5, %v6630_v43, %v2861_v48  ;;  %v2863_v6 = vrot.slane %v2861_v48, 4  ;;  %v7357_v43 = vld [vmem:[#allocation3 + $0x2b0] sm:$0xff]  ;;  %v2870_v61 = vrot.slane %v2868_v42, 4 }
  0xa2   : > { %v2932_v20 = vunpack.c.l.b16 %v7958_v63  ;;  %v2448_v24 = vsel %vm7754_vm2, %v2443_v5, %v2447_v57  ;;  %3976 = vmatpush.bf16.msra.mxu2 %v7357_v43  ;;  %v7998_v62 = vrot.slane %v1772_v45, 5  ;;  %v1683_v43 = vld [vmem:[%s7742_s9 + $0x24] sm:$0xf] }
  0xa3   : > { %v2865_v25 = vsel %vm7936_vm5, %v2863_v6, %v2864_v58  ;;  %v2635_v47 = vunpack.c.l.b16 %v2448_v24  ;;  %v6631_v58 = vrot.slane %v6609_v32, 9  ;;  %v2090_v24 = vld [vmem:[%s7742_s9 + $0x18] sm:$0xe] }
  0xa4   : > { %v2933_v48 = vunpack.c.l.b16 %v2865_v25  ;;  %v2167_v25 = vrot.slane %v2091_v14, 5  ;;  %v6512_v36 = vrot.slane %v2090_v24, 9 }
  0xa5   : > { %v2650_v8 = vpack.c.b16 %v2635_v47, %v7972_v19  ;;  %v2869_v13 = vsel %vm7936_vm5, %v6631_v58, %v2868_v42  ;;  %v2872_v19 = vsel %vm7936_vm5, %v2870_v61, %v2871_v59  ;;  %v1784_v42 = vrot.slane %v1782_v23, 5  ;;  %v6613_v59 = vld [vmem:[%s7742_s9 + $0x28] sm:$0xf] }
  0xa6   : > { %v2948_v2 = vpack.c.b16 %v2933_v48, %v2932_v20  ;;  %v7333_v20 = vld [vmem:[#allocation3 + $0x230] sm:$0xff]  ;;  %v2934_v34 = vunpack.c.l.b16 %v2869_v13  ;;  %v2935_v35 = vunpack.c.l.b16 %v2872_v19  ;;  %v2476_v48 = vrot.slane %v2474_v26, 4  ;;  %3977 = vmatpush.bf16.msra.mxu2 %v7356_v4 }
  0xa7   : > { %3336 = vmatpush.bf16.msra.mxu0 %v7333_v20  ;;  %v2875_v15 = vrot.slane %v6613_v59, 5  ;;  %v6614_v20 = vld [vmem:[%s7742_s9 + $0x2c] sm:$0x1] }
  0xa8   : > { %v8050_v61 = vpack.c.b16 %v2935_v35, %v2934_v34 }
  0xa9   : > { %v2877_v35 = vrot.slane %v2875_v15, 4 }
  0xac   : > { %481 = vmatmul.bf16.gmra.mxu0 %v7246_v46  ;;  %v1776_v46 = vshrl.u32 %v1681_v29, 16  ;;  %v1770_v29 = vrot.slane %v1769_v12, 4  ;;  %v2480_v12 = vor.u32 %v2479_v49, %v2476_v48  ;;  %v6560_v48 = vld [vmem:[%s7742_s9 + $0x34] sm:$0xf] }
  0xad   : > { %894 = vmatmul.bf16.gmra.mxu1 %v794_v16  ;;  %v2087_v16 = vld [vmem:[%s7742_s9 + $0xc] sm:$0xe]  ;;  %v2511_v4 = vshrl.u32 %v6560_v48, 16 }
  0xae   : > { %1124 = vmatmul.bf16.gmra.mxu2 %v7270_v52  ;;  %v6511_v31 = vrot.slane %v2087_v16, 9  ;;  %v1751_v52 = vsel %vm7754_vm2, %v1746_v30, %v7952_v60  ;;  %v2462_v60 = vsel %vm7754_vm2, %v2457_v41, %v7961_v7  ;;  %v1778_v63 = vrot.slane %v1776_v46, 4  ;;  %v2092_v30 = vld [vmem:[%s7742_s9 + $0x20] sm:$0x1] }
  0xaf   : > { %1534 = vmatmul.bf16.gmra.mxu3 %v1434_v21  ;;  %v2089_v21 = vld [vmem:[%s7742_s9 + $0x14] sm:$0x1]  ;;  %v8006_v7 = vunpack.c.l.b16 %v1751_v52  ;;  %v8010_v16 = vunpack.c.l.b16 %v1761_v56  ;;  %v8012_v10 = vunpack.c.l.b16 %v2462_v60  ;;  %v2169_v46 = vrot.slane %v2167_v25, 4  ;;  %v6558_v56 = vld [vmem:[%s7742_s9 + $0x2c] sm:$0x1] }
  0xb0   : > { %v2163_v39 = vrot.slane %v2089_v21, 5  ;;  %v2161_v53 = vsel %vm7936_vm5, %v6511_v31, %v2160_v17  ;;  %v6557_v17 = vld [vmem:[%s7742_s9 + $0x28] sm:$0xf]  ;;  %v7341_v21 = vld [vmem:[#allocation3 + $0x270] sm:$0xff]  ;;  %v1779_v22 = vor.u32 %v1778_v63, %v7998_v62  ;;  %v2170_v47 = vrot.slane %v2092_v30, 5 }
  0xb1   : > { %v2226_v11 = vunpack.c.l.b16 %v2161_v53  ;;  %v2483_v31 = vshll.u32 %v6557_v17, 16  ;;  %v2487_v32 = vshrl.u32 %v6557_v17, 16  ;;  %v1940_v33 = vpack.c.b16 %v8010_v16, %v8006_v7  ;;  %3746 = vmatpush.bf16.msra.mxu1 %v7341_v21  ;;  %v8048_v60 = vld [vmem:[%s9270_s3] ss:$0 sm:$0xff] }
  0xb2   : > { %v2164_v57 = vsel %vm7936_vm5, %v2162_v38, %v2163_v39  ;;  %v8029_v38 = vld [vmem:[%s9269_s2] ss:$0 sm:$0xff]  ;;  %v2651_v40 = vpack.c.b16 %v8017_v18, %v8012_v10  ;;  %v1780_v41 = vrot.slane %v1779_v22, 4  ;;  %v1775_v55 = vsel %vm7754_vm2, %v1770_v29, %v7998_v62  ;;  %v6559_v29 = vld [vmem:[%s7742_s9 + $0x30] sm:$0xf] }
  0xb3   : > { %v2227_v9 = vunpack.c.l.b16 %v2164_v57  ;;  %v8041_v57 = vrot.slane %v2483_v31, 5  ;;  %v2489_v58 = vrot.slane %v2487_v32, 4  ;;  %v8054_v63 = vsel %vm7936_vm5, %v6512_v36, %v2167_v25 }
  0xb4   : > { %v1790_v62 = vshll.u32 %v1683_v43, 16  ;;  %v2493_v14 = vshll.u32 %v6558_v56, 16  ;;  %v8068_v13 = vsel %vm7936_vm5, %v2169_v46, %v2170_v47  ;;  %v2228_v17 = vunpack.c.l.b16 %v8054_v63  ;;  %v7332_v56 = vld [vmem:[#allocation3 + $0x228] sm:$0xff]  ;;  %v1686_v63 = vld [vmem:[%s7742_s9 + $0x30] sm:$0xf] }
  0xb5   : > { %v8031_v39 = vpack.c.b16 %v2227_v9, %v2226_v11  ;;  %v8059_v11 = vunpack.c.l.b16 %v1775_v55  ;;  %v2490_v19 = vor.u32 %v2489_v58, %v8041_v57  ;;  %v6632_v22 = vrot.slane %v6612_v3, 9  ;;  %v7340_v58 = vld [vmem:[#allocation3 + $0x268] sm:$0xff]  ;;  %3337 = vmatpush.bf16.msra.mxu0 %v7332_v56 }
  0xb6   : > { %v1792_v24 = vrot.slane %v1790_v62, 5  ;;  %v2229_v32 = vunpack.c.l.b16 %v8068_v13  ;;  %v2481_v34 = vrot.slane %v2480_v12, 4  ;;  %v2878_v36 = vrot.slane %v6614_v20, 5  ;;  %v2094_v62 = vld [vmem:[%s7742_s9 + $0x28] sm:$0xf]  ;;  %3747 = vmatpush.bf16.msra.mxu1 %v7340_v58 }
  0xb7   : > { %v2491_v46 = vrot.slane %v2490_v19, 4  ;;  %v2495_v47 = vrot.slane %v2493_v14, 5  ;;  %v2876_v49 = vsel %vm7936_vm5, %v6632_v22, %v2875_v15  ;;  %v2507_v3 = vshll.u32 %v6560_v48, 16 }
  0xb8   : > { %v2936_v16 = vunpack.c.l.b16 %v2876_v49  ;;  %v8113_v13 = vpack.c.b16 %v2229_v32, %v2228_v17  ;;  %v2513_v22 = vrot.slane %v2511_v4, 4  ;;  %v6617_v49 = vld [vmem:[%s7742_s9 + $0x38] sm:$0x1] }
  0xb9   : > { %v447_v5 = vpop.f32.mrf.mxu0  ;;  %v2496_v7 = vsel %vm7754_vm2, %v2491_v46, %v2495_v47  ;;  %v8117_v20 = vrot.slane %v2507_v3, 5  ;;  %v7363_v46 = vld [vmem:[#allocation3 + $0x2e0] sm:$0xff] }
  0xba   : > { %v860_v6 = vpop.f32.mrf.mxu1 }
  0xbb   : > { %v900_v28 = vadd.f32 %v860_v6, %v447_v5  ;;  %v7364_v5 = vld [vmem:[#allocation3 + $0x2e8] sm:$0xff]  ;;  %v1796_v6 = vshll.u32 %v1684_v51, 16  ;;  %v2514_v47 = vor.u32 %v2513_v22, %v8117_v20 }
  0xbc   : > { %2011 = vmatmul.bf16.vlgmr.msrb.gmra.mxu0 %v1939_v0  ;;  %v1787_v0 = vshrl.u32 %v1683_v43, 16  ;;  %4387 = vmatpush.bf16.msra.mxu3 %v7364_v5 }
  0xbd   : > { %2312 = vmatmul.bf16.vlgmr.msrb.gmra.mxu1 %v2240_v1  ;;  %v8076_v27 = vrot.slane %v1796_v6, 5 }
  0xbe   : > { %2722 = vmatmul.bf16.vlgmr.msrb.gmra.mxu2 %v2650_v8  ;;  %v1800_v8 = vshrl.u32 %v1684_v51, 16  ;;  %v1789_v23 = vrot.slane %v1787_v0, 4 }
  0xbf   : > { %3020 = vmatmul.bf16.vlgmr.msrb.gmra.mxu3 %v2948_v2  ;;  %v1785_v2 = vsel %vm7754_vm2, %v1780_v41, %v1784_v42  ;;  %v1685_v41 = vld [vmem:[%s7742_s9 + $0x2c] sm:$0x1] }
  0xc0   : > { %v8073_v21 = vunpack.c.l.b16 %v1785_v2  ;;  %v1793_v51 = vor.u32 %v1792_v24, %v1789_v23  ;;  %v1806_v0 = vshll.u32 %v1685_v41, 16  ;;  %v2879_v2 = vsel %vm7936_vm5, %v2877_v35, %v2878_v36  ;;  %v6616_v23 = vld [vmem:[%s7742_s9 + $0x34] sm:$0xf]  ;;  %4388 = vmatpush.bf16.msra.mxu3 %v7363_v46 }
  0xc1   : > { %v1090_v44 = vpop.f32.mrf.mxu2  ;;  %v449_v53 = vpop.f32.mrf.mxu0  ;;  %v2937_v15 = vunpack.c.l.b16 %v2879_v2 }
  0xc2   : > { %v1500_v45 = vpop.f32.mrf.mxu3  ;;  %v1130_v52 = vadd.f32 %v1090_v44, %v900_v28  ;;  %v862_v54 = vpop.f32.mrf.mxu1  ;;  %v1802_v28 = vrot.slane %v1800_v8, 4  ;;  %v1941_v55 = vpack.c.b16 %v8073_v21, %v8059_v11  ;;  %v1808_v18 = vrot.slane %v1806_v0, 5  ;;  %v2096_v11 = vld [vmem:[%s7742_s9 + $0x30] sm:$0xe] }
  0xc3   : > { %v901_v26 = vadd.f32 %v862_v54, %v449_v53  ;;  %v2501_v53 = vshll.u32 %v6559_v29, 16  ;;  %v2950_v41 = vpack.c.b16 %v2937_v15, %v2936_v16  ;;  %v2515_v16 = vrot.slane %v2514_v47, 4  ;;  %v2098_v47 = vld [vmem:[%s7742_s9 + $0x38] sm:$0x1] }
  0xc4   : > { %v1540_v1 = vadd.f32 %v1500_v45, %v1130_v52  ;;  %v2498_v52 = vshrl.u32 %v6559_v29, 16  ;;  %v1803_v59 = vor.u32 %v1802_v28, %v8076_v27  ;;  %v8120_v29 = vunpack.c.l.b16 %v2496_v7 }
  0xc5   : > { %v2503_v12 = vrot.slane %v2501_v53, 5 }
  0xc6   : > { %v1591_v9 = vmul.f32 %v8029_v38, %v1540_v1  ;;  %v2486_v1 = vsel %vm7754_vm2, %v2481_v34, %v8041_v57  ;;  %v2174_v57 = vrot.slane %v2094_v62, 5  ;;  %v2500_v8 = vrot.slane %v2498_v52, 4 }
  0xc7   : > { %v1804_v10 = vrot.slane %v1803_v59, 4  ;;  %v8115_v19 = vunpack.c.l.b16 %v2486_v1  ;;  %v1687_v1 = vld [vmem:[%s7742_s9 + $0x34] sm:$0xf] }
  0xc8   : > { %v1610_v25 = vadd.f32 %v8048_v60, %v1591_v9  ;;  %v2176_v32 = vrot.slane %v2174_v57, 4  ;;  %v2504_v35 = vor.u32 %v2503_v12, %v2500_v8  ;;  %v6562_v8 = vld [vmem:[%s7742_s9 + $0x3c] sm:$0xf] }
  0xc9   : > { %v1092_v30 = vpop.f32.mrf.mxu2  ;;  %v452_v44 = vpop.f32.mrf.mxu0  ;;  %v2652_v53 = vpack.c.b16 %v8120_v29, %v8115_v19  ;;  %v7339_v29 = vld [vmem:[#allocation3 + $0x260] sm:$0xff] }
  0xca   : > { %v1502_v31 = vpop.f32.mrf.mxu3  ;;  %v1626_v42 = vmax.f32 %v1610_v25, 0.0  ;;  %v1131_v43 = vadd.f32 %v1092_v30, %v901_v26  ;;  %v865_v45 = vpop.f32.mrf.mxu1  ;;  %v2505_v0 = vrot.slane %v2504_v35, 4  ;;  %3748 = vmatpush.bf16.msra.mxu1 %v7339_v29 }
  0xcb   : > { %v902_v6 = vadd.f32 %v865_v45, %v452_v44  ;;  %v2882_v44 = vrot.slane %v6616_v23, 5  ;;  %v7355_v45 = vld [vmem:[#allocation3 + $0x2a0] sm:$0xff] }
  0xcc   : > { %1642 = vst [vmem:[%s8085_s27] sm:$0xff] %v1626_v42  ;;  %v1541_v54 = vadd.f32 %v1502_v31, %v1131_v43  ;;  %2016 = vmatmul.bf16.gmra.mxu0 %v1940_v33  ;;  %v1794_v33 = vrot.slane %v1793_v51, 4  ;;  %v6561_v31 = vld [vmem:[%s7742_s9 + $0x38] sm:$0x1]  ;;  %v1809_v42 = vsel %vm7754_vm2, %v1804_v10, %v1808_v18  ;;  %v6615_v43 = vld [vmem:[%s7742_s9 + $0x30] sm:$0xe]  ;;  %v1811_v51 = vshrl.u32 %v1686_v63, 16  ;;  %3978 = vmatpush.bf16.msra.mxu2 %v7355_v45 }
  0xcd   : > { %2317 = vmatmul.bf16.gmra.mxu1 %v8031_v39  ;;  %v2093_v39 = vld [vmem:[%s7742_s9 + $0x24] sm:$0xe]  ;;  %v2517_v48 = vshll.u32 %v6561_v31, 16  ;;  %v8142_v58 = vunpack.c.l.b16 %v1809_v42  ;;  %v6633_v62 = vrot.slane %v6615_v43, 9  ;;  %v2884_v4 = vrot.slane %v2882_v44, 4 }
  0xce   : > { %v1592_v5 = vmul.f32 %v8029_v38, %v1541_v54  ;;  %2727 = vmatmul.bf16.gmra.mxu2 %v2651_v40  ;;  %v2095_v40 = vld [vmem:[%s7742_s9 + $0x2c] sm:$0x1]  ;;  %v6513_v30 = vrot.slane %v2093_v39, 9  ;;  %v1799_v17 = vsel %vm7754_vm2, %v1794_v33, %v8076_v27  ;;  %v1814_v27 = vshll.u32 %v1686_v63, 16 }
  0xcf   : > { %3025 = vmatmul.bf16.gmra.mxu3 %v8050_v61  ;;  %v2177_v34 = vrot.slane %v2095_v40, 5  ;;  %v8136_v54 = vunpack.c.l.b16 %v1799_v17  ;;  %v2519_v33 = vrot.slane %v2517_v48, 5  ;;  %v1813_v39 = vrot.slane %v1811_v51, 4 }
  0xd0   : > { %v1611_v14 = vadd.f32 %v8048_v60, %v1592_v5  ;;  %v8140_v56 = vsel %vm7936_vm5, %v6513_v30, %v2174_v57  ;;  %v2885_v5 = vrot.slane %v6617_v49, 5  ;;  %v1816_v57 = vrot.slane %v1814_v27, 5 }
  0xd1   : > { %v1095_v61 = vpop.f32.mrf.mxu2  ;;  %v454_v26 = vpop.f32.mrf.mxu0  ;;  %v8146_v59 = vsel %vm7936_vm5, %v2176_v32, %v2177_v34  ;;  %v1820_v18 = vshll.u32 %v1687_v1, 16  ;;  %v1824_v40 = vshrl.u32 %v1687_v1, 16  ;;  %v2510_v22 = vsel %vm7754_vm2, %v2505_v0, %v8117_v20 }
  0xd2   : > { %v1505_v9 = vpop.f32.mrf.mxu3  ;;  %v1627_v24 = vmax.f32 %v1611_v14, 0.0  ;;  %v1132_v25 = vadd.f32 %v1095_v61, %v902_v6  ;;  %v867_v28 = vpop.f32.mrf.mxu1  ;;  %v6563_v61 = vld [vmem:[%s7742_s9 + $0x40] sm:$0xf]  ;;  %v2231_v19 = vunpack.c.l.b16 %v8146_v59  ;;  %v2883_v23 = vsel %vm7936_vm5, %v6633_v62, %v2882_v44 }
  0xd3   : > { %v903_v3 = vadd.f32 %v867_v28, %v454_v26  ;;  %v2886_v26 = vsel %vm7936_vm5, %v2884_v4, %v2885_v5  ;;  %v7331_v28 = vld [vmem:[#allocation3 + $0x220] sm:$0xff]  ;;  %v2522_v30 = vshrl.u32 %v6562_v8, 16  ;;  %v2525_v31 = vshll.u32 %v6562_v8, 16 }
  0xd4   : > { %1643 = vst [vmem:[%s8085_s27 + $0x8] sm:$0xff] %v1627_v24  ;;  %v1542_v36 = vadd.f32 %v1505_v9, %v1132_v25  ;;  %v2230_v9 = vunpack.c.l.b16 %v8140_v56  ;;  %v8160_v24 = vld [vmem:[%s7742_s9 + $0x34] sm:$0xf]  ;;  %v2520_v20 = vsel %vm7754_vm2, %v2515_v16, %v2519_v33  ;;  %v1817_v63 = vor.u32 %v1816_v57, %v1813_v39  ;;  %3338 = vmatpush.bf16.msra.mxu0 %v7331_v28  ;;  %v6619_v59 = vld [vmem:[%s7742_s9 + $0x40] sm:$0xf] }
  0xd5   : > { %v2531_v17 = vshll.u32 %v6563_v61, 16  ;;  %v2535_v32 = vshrl.u32 %v6563_v61, 16  ;;  %v8173_v42 = vrot.slane %v1820_v18, 5  ;;  %v1826_v43 = vrot.slane %v1824_v40, 4  ;;  %v6564_v5 = vld [vmem:[%s7742_s9 + $0x44] sm:$0x1] }
  0xd6   : > { %v1593_v52 = vmul.f32 %v8029_v38, %v1542_v36  ;;  %v1688_v36 = vld [vmem:[%s7742_s9 + $0x38] sm:$0x1]  ;;  %v8176_v21 = vunpack.c.l.b16 %v2510_v22  ;;  %v2181_v44 = vrot.slane %v8160_v24, 5  ;;  %v8180_v46 = vunpack.c.l.b16 %v2520_v20  ;;  %v6618_v39 = vld [vmem:[%s7742_s9 + $0x3c] sm:$0xe] }
  0xd7   : > { %v2527_v48 = vrot.slane %v2525_v31, 5  ;;  %v1830_v27 = vshll.u32 %v1688_v36, 16  ;;  %v2537_v56 = vrot.slane %v2535_v32, 4  ;;  %v1827_v4 = vor.u32 %v1826_v43, %v8173_v42  ;;  %v6620_v57 = vld [vmem:[%s7742_s9 + $0x44] sm:$0x1]  ;;  %v7362_v18 = vld [vmem:[#allocation3 + $0x2d8] sm:$0xff] }
  0xd8   : > { %v1612_v2 = vadd.f32 %v8048_v60, %v1593_v52  ;;  %v6514_v52 = vrot.slane %v2096_v11, 9  ;;  %v2183_v16 = vrot.slane %v2181_v44, 4  ;;  %v2184_v33 = vrot.slane %v2098_v47, 5  ;;  %v1689_v40 = vld [vmem:[%s7742_s9 + $0x3c] sm:$0xf]  ;;  %4389 = vmatpush.bf16.msra.mxu3 %v7362_v18 }
  0xd9   : > { %v1097_v6 = vpop.f32.mrf.mxu2  ;;  %v457_v15 = vpop.f32.mrf.mxu0  ;;  %v2653_v61 = vpack.c.b16 %v8180_v46, %v8176_v21  ;;  %v1832_v22 = vrot.slane %v1830_v27, 5  ;;  %v2892_v28 = vrot.slane %v6620_v57, 5  ;;  %v1835_v29 = vshrl.u32 %v1689_v40, 16  ;;  %v6565_v46 = vld [vmem:[%s7742_s9 + $0x48] sm:$0xf] }
  0xda   : > { %v1507_v7 = vpop.f32.mrf.mxu3  ;;  %v1628_v12 = vmax.f32 %v1612_v2, 0.0  ;;  %v1133_v14 = vadd.f32 %v1097_v6, %v903_v3  ;;  %v870_v10 = vpop.f32.mrf.mxu1  ;;  %v1818_v3 = vrot.slane %v1817_v63, 4  ;;  %v1942_v6 = vpack.c.b16 %v8142_v58, %v8136_v54 }
  0xdb   : > { %v904_v35 = vadd.f32 %v870_v10, %v457_v15  ;;  %v2889_v15 = vrot.slane %v6619_v59, 5  ;;  %v7354_v10 = vld [vmem:[#allocation3 + $0x298] sm:$0xff]  ;;  %v2541_v54 = vshll.u32 %v6564_v5, 16  ;;  %v8203_v24 = vsel %vm7936_vm5, %v6514_v52, %v2181_v44 }
  0xdc   : > { %1644 = vst [vmem:[%s8085_s27 + $0x10] sm:$0xff] %v1628_v12  ;;  %v1543_v25 = vadd.f32 %v1507_v7, %v1133_v14  ;;  %2021 = vmatmul.bf16.gmra.mxu0 %v1941_v55  ;;  %v2938_v55 = vunpack.c.l.b16 %v2883_v23  ;;  %v2243_v7 = vpack.c.b16 %v2231_v19, %v2230_v9  ;;  %v1823_v9 = vsel %vm7754_vm2, %v1818_v3, %v8173_v42  ;;  %v7330_v59 = vld [vmem:[#allocation3 + $0x218] sm:$0xff] }
  0xdd   : > { %2322 = vmatmul.bf16.gmra.mxu1 %v8113_v13  ;;  %v2939_v13 = vunpack.c.l.b16 %v2886_v26  ;;  %v1828_v19 = vrot.slane %v1827_v4, 4  ;;  %3979 = vmatpush.bf16.msra.mxu2 %v7354_v10  ;;  %v6634_v26 = vrot.slane %v6618_v39, 9  ;;  %v2891_v63 = vrot.slane %v2889_v15, 4 }
  0xde   : > { %v1594_v34 = vmul.f32 %v8029_v38, %v1543_v25  ;;  %2732 = vmatmul.bf16.gmra.mxu2 %v2652_v53  ;;  %v8183_v53 = vrot.slane %v2531_v17, 5  ;;  %v8207_v25 = vsel %vm7936_vm5, %v2183_v16, %v2184_v33  ;;  %v1690_v17 = vld [vmem:[%s7742_s9 + $0x40] sm:$0xf]  ;;  %v2543_v42 = vrot.slane %v2541_v54, 5  ;;  %3339 = vmatpush.bf16.msra.mxu0 %v7330_v59 }
  0xdf   : > { %3030 = vmatmul.bf16.gmra.mxu3 %v2950_v41  ;;  %v2524_v41 = vrot.slane %v2522_v30, 4  ;;  %v2951_v12 = vpack.c.b16 %v2939_v13, %v2938_v55  ;;  %v1838_v43 = vshll.u32 %v1689_v40, 16  ;;  %v8212_v44 = vunpack.c.l.b16 %v1823_v9  ;;  %v2100_v40 = vld [vmem:[%s7742_s9 + $0x40] sm:$0xf] }
  0xe0   : > { %v1613_v45 = vadd.f32 %v8048_v60, %v1594_v34  ;;  %v2538_v23 = vor.u32 %v2537_v56, %v8183_v53  ;;  %v1833_v47 = vsel %vm7754_vm2, %v1828_v19, %v1832_v22  ;;  %v2893_v56 = vsel %vm7936_vm5, %v2891_v63, %v2892_v28  ;;  %v2101_v63 = vld [vmem:[%s7742_s9 + $0x44] sm:$0x1] }
  0xe1   : > { %v1100_v49 = vpop.f32.mrf.mxu2  ;;  %v459_v1 = vpop.f32.mrf.mxu0  ;;  %v2528_v14 = vor.u32 %v2527_v48, %v2524_v41  ;;  %v2890_v41 = vsel %vm7936_vm5, %v6634_v26, %v2889_v15  ;;  %v1844_v48 = vshll.u32 %v1690_v17, 16  ;;  %v2546_v3 = vshrl.u32 %v6565_v46, 16 }
  0xe2   : > { %v1510_v51 = vpop.f32.mrf.mxu3  ;;  %v1629_v0 = vmax.f32 %v1613_v45, 0.0  ;;  %v1134_v62 = vadd.f32 %v1100_v49, %v904_v35  ;;  %v872_v2 = vpop.f32.mrf.mxu1  ;;  %v2232_v35 = vunpack.c.l.b16 %v8203_v24  ;;  %v2539_v36 = vrot.slane %v2538_v23, 4 }
  0xe3   : > { %v905_v31 = vadd.f32 %v872_v2, %v459_v1  ;;  %v2529_v20 = vrot.slane %v2528_v14, 4  ;;  %v2233_v45 = vunpack.c.l.b16 %v8207_v25  ;;  %v1848_v49 = vshrl.u32 %v1690_v17, 16 }
  0xe4   : > { %1645 = vst [vmem:[%s8085_s27 + $0x18] sm:$0xff] %v1629_v0  ;;  %v1544_v8 = vadd.f32 %v1510_v51, %v1134_v62  ;;  %v6566_v51 = vld [vmem:[%s7742_s9 + $0x4c] sm:$0xf]  ;;  %v7338_v0 = vld [vmem:[#allocation3 + $0x258] sm:$0xff]  ;;  %v1837_v62 = vrot.slane %v1835_v29, 4  ;;  %v2544_v1 = vsel %vm7754_vm2, %v2539_v36, %v2543_v42  ;;  %v1840_v2 = vrot.slane %v1838_v43, 5 }
  0xe5   : > { %v2534_v52 = vsel %vm7754_vm2, %v2529_v20, %v8183_v53  ;;  %v2549_v4 = vshll.u32 %v6565_v46, 16  ;;  %v1691_v53 = vld [vmem:[%s7742_s9 + $0x44] sm:$0x1]  ;;  %v2555_v33 = vshll.u32 %v6566_v51, 16  ;;  %v2559_v39 = vshrl.u32 %v6566_v51, 16  ;;  %3749 = vmatpush.bf16.msra.mxu1 %v7338_v0 }
  0xe6   : > { %v1595_v58 = vmul.f32 %v8029_v38, %v1544_v8  ;;  %v8231_v57 = vunpack.c.l.b16 %v1833_v47  ;;  %v1850_v8 = vrot.slane %v1848_v49, 4  ;;  %v8236_v15 = vunpack.c.l.b16 %v2534_v52  ;;  %v6622_v46 = vld [vmem:[%s7742_s9 + $0x4c] sm:$0xf] }
  0xe7   : > { %v8238_v10 = vunpack.c.l.b16 %v2544_v1  ;;  %v2941_v18 = vunpack.c.l.b16 %v2893_v56  ;;  %v1841_v23 = vor.u32 %v1840_v2, %v1837_v62  ;;  %v1854_v54 = vshll.u32 %v1691_v53, 16 }
  0xe8   : > { %v1614_v30 = vadd.f32 %v8048_v60, %v1595_v58  ;;  %v2548_v58 = vrot.slane %v2546_v3, 4  ;;  %v2551_v9 = vrot.slane %v2549_v4, 5  ;;  %v8242_v28 = vrot.slane %v2555_v33, 5  ;;  %v1693_v3 = vld [vmem:[%s7742_s9 + $0x4c] sm:$0xf] }
  0xe9   : > { %v1102_v32 = vpop.f32.mrf.mxu2  ;;  %v462_v55 = vpop.f32.mrf.mxu0  ;;  %v2561_v29 = vrot.slane %v2559_v39, 4  ;;  %v1943_v42 = vpack.c.b16 %v8231_v57, %v8212_v44  ;;  %v2654_v43 = vpack.c.b16 %v8238_v10, %v8236_v15  ;;  %v1856_v49 = vrot.slane %v1854_v54, 5  ;;  %v6623_v33 = vld [vmem:[%s7742_s9 + $0x50] sm:$0x1] }
  0xea   : > { %v1512_v34 = vpop.f32.mrf.mxu3  ;;  %v1630_v11 = vmax.f32 %v1614_v30, 0.0  ;;  %v1135_v21 = vadd.f32 %v1102_v32, %v905_v31  ;;  %v875_v13 = vpop.f32.mrf.mxu1  ;;  %v1692_v30 = vld [vmem:[%s7742_s9 + $0x48] sm:$0xf]  ;;  %v2244_v31 = vpack.c.b16 %v2233_v45, %v2232_v35  ;;  %v2188_v32 = vrot.slane %v2100_v40, 5 }
  0xeb   : > { %v906_v16 = vadd.f32 %v875_v13, %v462_v55  ;;  %v7353_v55 = vld [vmem:[#allocation3 + $0x290] sm:$0xff]  ;;  %v1842_v35 = vrot.slane %v1841_v23, 4  ;;  %v2552_v45 = vor.u32 %v2551_v9, %v2548_v58  ;;  %v1859_v47 = vshrl.u32 %v1692_v30, 16 }
  0xec   : > { %1646 = vst [vmem:[%s8085_s27 + $0x20] sm:$0xff] %v1630_v11  ;;  %v1545_v27 = vadd.f32 %v1512_v34, %v1135_v21  ;;  %2026 = vmatmul.bf16.gmra.mxu0 %v1942_v6  ;;  %v2940_v6 = vunpack.c.l.b16 %v2890_v41  ;;  %v6567_v34 = vld [vmem:[%s7742_s9 + $0x50] sm:$0x1]  ;;  %v6621_v21 = vld [vmem:[%s7742_s9 + $0x48] sm:$0xe]  ;;  %v1862_v41 = vshll.u32 %v1692_v30, 16  ;;  %v2562_v51 = vor.u32 %v2561_v29, %v8242_v28  ;;  %3980 = vmatpush.bf16.msra.mxu2 %v7353_v55 }
  0xed   : > { %2327 = vmatmul.bf16.gmra.mxu1 %v2243_v7  ;;  %v8233_v7 = vrot.slane %v1844_v48, 5  ;;  %v7361_v13 = vld [vmem:[#allocation3 + $0x2d0] sm:$0xff]  ;;  %v2190_v56 = vrot.slane %v2188_v32, 4  ;;  %v2191_v59 = vrot.slane %v2101_v63, 5  ;;  %v6635_v1 = vrot.slane %v6621_v21, 9 }
  0xee   : > { %v1596_v5 = vmul.f32 %v8029_v38, %v1545_v27  ;;  %2737 = vmatmul.bf16.gmra.mxu2 %v2653_v61  ;;  %v2952_v11 = vpack.c.b16 %v2941_v18, %v2940_v6  ;;  %v2565_v27 = vshll.u32 %v6567_v34, 16  ;;  %4390 = vmatpush.bf16.msra.mxu3 %v7361_v13  ;;  %v2896_v2 = vrot.slane %v6622_v46, 5  ;;  %v7329_v9 = vld [vmem:[#allocation3 + $0x210] sm:$0xff]  ;;  %v6569_v21 = vld [vmem:[%s7742_s9 + $0x58] sm:$0xf] }
  0xef   : > { %3035 = vmatmul.bf16.gmra.mxu3 %v2951_v12  ;;  %v2099_v12 = vld [vmem:[%s7742_s9 + $0x3c] sm:$0xe]  ;;  %v1851_v20 = vor.u32 %v1850_v8, %v8233_v7  ;;  %v2553_v53 = vrot.slane %v2552_v45, 4  ;;  %v1861_v39 = vrot.slane %v1859_v47, 4  ;;  %v1864_v57 = vrot.slane %v1862_v41, 5  ;;  %3340 = vmatpush.bf16.msra.mxu0 %v7329_v9 }
  0xf0   : > { %v1615_v14 = vadd.f32 %v8048_v60, %v1596_v5  ;;  %v6515_v17 = vrot.slane %v2099_v12, 9  ;;  %v2563_v10 = vrot.slane %v2562_v51, 4  ;;  %v2567_v18 = vrot.slane %v2565_v27, 5  ;;  %v6568_v30 = vld [vmem:[%s7742_s9 + $0x54] sm:$0xf] }
  0xf1   : > { %v1105_v61 = vpop.f32.mrf.mxu2  ;;  %v464_v25 = vpop.f32.mrf.mxu0  ;;  %v1852_v44 = vrot.slane %v1851_v20, 4  ;;  %v2192_v40 = vsel %vm7936_vm5, %v2190_v56, %v2191_v59  ;;  %v8274_v23 = vsel %vm7936_vm5, %v6635_v1, %v2896_v2  ;;  %v2898_v54 = vrot.slane %v2896_v2, 4  ;;  %v2102_v13 = vld [vmem:[%s7742_s9 + $0x48] sm:$0xe]  ;;  %v2104_v59 = vld [vmem:[%s7742_s9 + $0x50] sm:$0x1] }
  0xf2   : > { %v1515_v22 = vpop.f32.mrf.mxu3  ;;  %v1631_v19 = vmax.f32 %v1615_v14, 0.0  ;;  %v1136_v24 = vadd.f32 %v1105_v61, %v906_v16  ;;  %v877_v26 = vpop.f32.mrf.mxu1  ;;  %v8259_v52 = vsel %vm7936_vm5, %v6515_v17, %v2188_v32  ;;  %v1847_v16 = vsel %vm7754_vm2, %v1842_v35, %v8233_v7  ;;  %v2103_v32 = vld [vmem:[%s7742_s9 + $0x4c] sm:$0xf]  ;;  %v6625_v9 = vld [vmem:[%s7742_s9 + $0x58] sm:$0xf] }
  0xf3   : > { %v907_v62 = vadd.f32 %v877_v26, %v464_v25  ;;  %v1857_v12 = vsel %vm7754_vm2, %v1852_v44, %v1856_v49  ;;  %v1868_v61 = vshll.u32 %v1693_v3, 16  ;;  %v2899_v58 = vrot.slane %v6623_v33, 5 }
  0xf4   : > { %1647 = vst [vmem:[%s8085_s27 + $0x28] sm:$0xff] %v1631_v19  ;;  %v1546_v36 = vadd.f32 %v1515_v22, %v1136_v24  ;;  %v1872_v22 = vshrl.u32 %v1693_v3, 16  ;;  %v7337_v19 = vld [vmem:[#allocation3 + $0x250] sm:$0xff]  ;;  %v8276_v24 = vunpack.c.l.b16 %v1847_v16  ;;  %v2234_v25 = vunpack.c.l.b16 %v8259_v52 }
  0xf5   : > { %v2558_v26 = vsel %vm7754_vm2, %v2553_v53, %v8242_v28  ;;  %v1865_v29 = vor.u32 %v1864_v57, %v1861_v39  ;;  %v2235_v17 = vunpack.c.l.b16 %v2192_v40  ;;  %v8287_v34 = vunpack.c.l.b16 %v1857_v12  ;;  %3750 = vmatpush.bf16.msra.mxu1 %v7337_v19  ;;  %v7352_v39 = vld [vmem:[#allocation3 + $0x288] sm:$0xff] }
  0xf6   : > { %v1597_v48 = vmul.f32 %v8029_v38, %v1546_v36  ;;  %v2942_v36 = vunpack.c.l.b16 %v8274_v23  ;;  %v1870_v28 = vrot.slane %v1868_v61, 5  ;;  %v2570_v35 = vshrl.u32 %v6568_v30, 16  ;;  %v7360_v57 = vld [vmem:[#allocation3 + $0x2c8] sm:$0xff]  ;;  %3981 = vmatpush.bf16.msra.mxu2 %v7352_v39 }
  0xf7   : > { %v2573_v45 = vshll.u32 %v6568_v30, 16  ;;  %v8296_v41 = vunpack.c.l.b16 %v2558_v26  ;;  %v1866_v49 = vrot.slane %v1865_v29, 4  ;;  %v2195_v51 = vrot.slane %v2103_v32, 5  ;;  %4391 = vmatpush.bf16.msra.mxu3 %v7360_v57  ;;  %v1696_v29 = vld [vmem:[%s7742_s9 + $0x58] sm:$0xf] }
  0xf8   : > { %v1616_v0 = vadd.f32 %v8048_v60, %v1597_v48  ;;  %v2245_v16 = vpack.c.b16 %v2235_v17, %v2234_v25  ;;  %v2572_v53 = vrot.slane %v2570_v35, 4 }
  0xf9   : > { %v1107_v4 = vpop.f32.mrf.mxu2  ;;  %v467_v14 = vpop.f32.mrf.mxu0  ;;  %v2575_v33 = vrot.slane %v2573_v45, 5  ;;  %v1871_v12 = vsel %vm7754_vm2, %v1866_v49, %v1870_v28  ;;  %v1892_v45 = vshll.u32 %v1696_v29, 16 }
  0xfa   : > { %v1517_v5 = vpop.f32.mrf.mxu3  ;;  %v1632_v6 = vmax.f32 %v1616_v0, 0.0  ;;  %v1137_v8 = vadd.f32 %v1107_v4, %v907_v62  ;;  %v880_v15 = vpop.f32.mrf.mxu1  ;;  %v2579_v0 = vshll.u32 %v6569_v21, 16  ;;  %v2583_v62 = vshrl.u32 %v6569_v21, 16 }
  0xfb   : > { %v908_v63 = vadd.f32 %v880_v15, %v467_v14  ;;  %v6516_v4 = vrot.slane %v2102_v13, 9  ;;  %v2197_v14 = vrot.slane %v2195_v51, 4  ;;  %v2198_v15 = vrot.slane %v2104_v59, 5 }
  0xfc   : > { %1648 = vst [vmem:[%s8085_s27 + $0x30] sm:$0xff] %v1632_v6  ;;  %v1547_v7 = vadd.f32 %v1517_v5, %v1137_v8  ;;  %2031 = vmatmul.bf16.gmra.mxu0 %v1943_v42  ;;  %v1874_v42 = vrot.slane %v1872_v22, 4  ;;  %v1944_v6 = vpack.c.b16 %v8287_v34, %v8276_v24  ;;  %v8310_v40 = vrot.slane %v2579_v0, 5  ;;  %v1695_v22 = vld [vmem:[%s7742_s9 + $0x54] sm:$0xf] }
  0xfd   : > { %2332 = vmatmul.bf16.gmra.mxu1 %v2244_v31  ;;  %v2568_v31 = vsel %vm7754_vm2, %v2563_v10, %v2567_v18  ;;  %v6570_v10 = vld [vmem:[%s7742_s9 + $0x5c] sm:$0x1]  ;;  %v2585_v61 = vrot.slane %v2583_v62, 4  ;;  %v2576_v25 = vor.u32 %v2575_v33, %v2572_v53  ;;  %v2199_v17 = vsel %vm7936_vm5, %v2197_v14, %v2198_v15  ;;  %v6572_v62 = vld [vmem:[%s7742_s9 + $0x64] sm:$0xf] }
  0xfe   : > { %v1598_v20 = vmul.f32 %v8029_v38, %v1547_v7  ;;  %2742 = vmatmul.bf16.gmra.mxu2 %v2654_v43  ;;  %v2900_v43 = vsel %vm7936_vm5, %v2898_v54, %v2899_v58  ;;  %v8298_v48 = vunpack.c.l.b16 %v2568_v31  ;;  %v1875_v2 = vor.u32 %v1874_v42, %v1870_v28 }
  0xff   : > { %3040 = vmatmul.bf16.gmra.mxu3 %v2952_v11  ;;  %v1694_v11 = vld [vmem:[%s7742_s9 + $0x50] sm:$0x1]  ;;  %v2943_v1 = vunpack.c.l.b16 %v2900_v43  ;;  %v2196_v58 = vsel %vm7936_vm5, %v6516_v4, %v2195_v51  ;;  %v2589_v26 = vshll.u32 %v6570_v10, 16  ;;  %v1883_v31 = vshrl.u32 %v1695_v22, 16  ;;  %v6626_v43 = vld [vmem:[%s7742_s9 + $0x5c] sm:$0x1] }
 0x100   : > { %v1617_v55 = vadd.f32 %v8048_v60, %v1598_v20  ;;  %v1878_v3 = vshll.u32 %v1694_v11, 16  ;;  %v2655_v8 = vpack.c.b16 %v8298_v48, %v8296_v41  ;;  %v1876_v23 = vrot.slane %v1875_v2, 4 }
 0x101   : > { %v1110_v46 = vpop.f32.mrf.mxu2  ;;  %v469_v52 = vpop.f32.mrf.mxu0  ;;  %v2953_v7 = vpack.c.b16 %v2943_v1, %v2942_v36  ;;  %v1886_v32 = vshll.u32 %v1695_v22, 16  ;;  %v2586_v21 = vor.u32 %v2585_v61, %v8310_v40  ;;  %v2903_v11 = vrot.slane %v6625_v9, 5  ;;  %v2105_v9 = vld [vmem:[%s7742_s9 + $0x54] sm:$0xe] }
 0x102   : > { %v1520_v47 = vpop.f32.mrf.mxu3  ;;  %v1633_v27 = vmax.f32 %v1617_v55, 0.0  ;;  %v1138_v44 = vadd.f32 %v1110_v46, %v908_v63  ;;  %v882_v56 = vpop.f32.mrf.mxu1  ;;  %v1880_v54 = vrot.slane %v1878_v3, 5  ;;  %v8318_v63 = vunpack.c.l.b16 %v1871_v12  ;;  %v6624_v55 = vld [vmem:[%s7742_s9 + $0x54] sm:$0xe] }
 0x103   : > { %v909_v24 = vadd.f32 %v882_v56, %v469_v52  ;;  %v2236_v35 = vunpack.c.l.b16 %v2196_v58  ;;  %v1896_v46 = vshrl.u32 %v1696_v29, 16  ;;  %v2237_v48 = vunpack.c.l.b16 %v2199_v17 }
 0x104   : > { %1649 = vst [vmem:[%s8085_s27 + $0x38] sm:$0xff] %v1633_v27  ;;  %v1548_v5 = vadd.f32 %v1520_v47, %v1138_v44  ;;  %v1881_v13 = vsel %vm7754_vm2, %v1876_v23, %v1880_v54  ;;  %v6571_v47 = vld [vmem:[%s7742_s9 + $0x60] sm:$0xf]  ;;  %v2577_v49 = vrot.slane %v2576_v25, 4  ;;  %v2591_v51 = vrot.slane %v2589_v26, 5  ;;  %v7328_v27 = vld [vmem:[#allocation3 + $0x208] sm:$0xff] }
 0x105   : > { %v7336_v44 = vld [vmem:[#allocation3 + $0x248] sm:$0xff]  ;;  %v6636_v52 = vrot.slane %v6624_v55, 9  ;;  %v2906_v56 = vrot.slane %v6626_v43, 5  ;;  %v1885_v59 = vrot.slane %v1883_v31, 4  ;;  %v1888_v0 = vrot.slane %v1886_v32, 5  ;;  %3341 = vmatpush.bf16.msra.mxu0 %v7328_v27  ;;  %v7351_v32 = vld [vmem:[#allocation3 + $0x280] sm:$0xff] }
 0x106   : > { %v1599_v18 = vmul.f32 %v8029_v38, %v1548_v5  ;;  %v2587_v3 = vrot.slane %v2586_v21, 4  ;;  %v2905_v4 = vrot.slane %v2903_v11, 4  ;;  %3751 = vmatpush.bf16.msra.mxu1 %v7336_v44  ;;  %v8331_v5 = vrot.slane %v1892_v45, 5  ;;  %v6573_v25 = vld [vmem:[%s7742_s9 + $0x68] sm:$0x1]  ;;  %3982 = vmatpush.bf16.msra.mxu2 %v7351_v32 }
 0x107   : > { %v1898_v53 = vrot.slane %v1896_v46, 4  ;;  %v2594_v33 = vshrl.u32 %v6571_v47, 16  ;;  %v8334_v57 = vunpack.c.l.b16 %v1881_v13  ;;  %v2582_v10 = vsel %vm7754_vm2, %v2577_v49, %v8310_v40  ;;  %v8356_v55 = vld [vmem:[%s7742_s9 + $0x64] sm:$0xf]  ;;  %v8361_v43 = vld [vmem:[%s9269_s2] ss:$0 sm:$0xff] }
 0x108   : > { %v1618_v19 = vadd.f32 %v8048_v60, %v1599_v18  ;;  %v2904_v18 = vsel %vm7936_vm5, %v6636_v52, %v2903_v11  ;;  %v2607_v12 = vshrl.u32 %v6572_v62, 16  ;;  %v2592_v54 = vsel %vm7754_vm2, %v2587_v3, %v2591_v51  ;;  %v8370_v51 = vld [vmem:[%s9270_s3] ss:$0 sm:$0xff]  ;;  %v6627_v52 = vld [vmem:[%s7742_s9 + $0x60] sm:$0xe] }
 0x109   : > { %v1112_v30 = vpop.f32.mrf.mxu2  ;;  %v472_v28 = vpop.f32.mrf.mxu0  ;;  %v2907_v58 = vsel %vm7936_vm5, %v2905_v4, %v2906_v56  ;;  %v1899_v40 = vor.u32 %v1898_v53, %v8331_v5  ;;  %v2596_v26 = vrot.slane %v2594_v33, 4  ;;  %v1945_v13 = vpack.c.b16 %v8334_v57, %v8318_v63  ;;  %v6629_v4 = vld [vmem:[%s7742_s9 + $0x68] sm:$0x1]  ;;  %v7327_v53 = vld [vmem:[#allocation3 + $0x200] sm:$0xff] }
 0x10a   : > { %v1522_v20 = vpop.f32.mrf.mxu3  ;;  %v1634_v34 = vmax.f32 %v1618_v19, 0.0  ;;  %v1139_v36 = vadd.f32 %v1112_v30, %v909_v24  ;;  %v885_v42 = vpop.f32.mrf.mxu1  ;;  %v2106_v19 = vld [vmem:[%s7742_s9 + $0x58] sm:$0xf]  ;;  %v2609_v31 = vrot.slane %v2607_v12, 4  ;;  %v6517_v45 = vrot.slane %v2105_v9, 9  ;;  %v7335_v33 = vld [vmem:[#allocation3 + $0x240] sm:$0xff]  ;;  %3342 = vmatpush.bf16.msra.mxu0 %v7327_v53 }
 0x10b   : > { %v910_v2 = vadd.f32 %v885_v42, %v472_v28  ;;  %v2944_v28 = vunpack.c.l.b16 %v2904_v18  ;;  %v2945_v42 = vunpack.c.l.b16 %v2907_v58  ;;  %v2202_v46 = vrot.slane %v2106_v19, 5  ;;  %3752 = vmatpush.bf16.msra.mxu1 %v7335_v33 }
 0x10c   : > { %1650 = vst [vmem:[%s8085_s27 + $0x40] sm:$0xff] %v1634_v34  ;;  %v1549_v41 = vadd.f32 %v1522_v20, %v1139_v36  ;;  %2036 = vmatmul.bf16.gmra.mxu0 %v1944_v6  ;;  %v8336_v6 = vpack.c.b16 %v2237_v48, %v2236_v35  ;;  %v2646_v20 = vunpack.c.l.b16 %v2582_v10  ;;  %v7359_v34 = vld [vmem:[#allocation3 + $0x2c0] sm:$0xff]  ;;  %v2647_v36 = vunpack.c.l.b16 %v2592_v54  ;;  %v2107_v35 = vld [vmem:[%s7742_s9 + $0x5c] sm:$0x1] }
 0x10d   : > { %2337 = vmatmul.bf16.gmra.mxu1 %v2245_v16  ;;  %v2597_v16 = vshll.u32 %v6571_v47, 16  ;;  %4392 = vmatpush.bf16.msra.mxu3 %v7359_v34  ;;  %v1900_v47 = vrot.slane %v1899_v40, 4  ;;  %v2613_v49 = vshll.u32 %v6573_v25, 16  ;;  %v2910_v56 = vrot.slane %v8356_v55, 5  ;;  %v6767_v40 = vld [vmem:[%s7742_s9 + $0x10] sm:$0xf] }
 0x10e   : > { %v1600_v1 = vmul.f32 %v8029_v38, %v1549_v41  ;;  %2747 = vmatmul.bf16.gmra.mxu2 %v2655_v8  ;;  %v1697_v38 = vld [vmem:[%s7742_s9 + $0x5c] sm:$0x1]  ;;  %v2603_v8 = vshll.u32 %v6572_v62, 16  ;;  %v2656_v62 = vpack.c.b16 %v2647_v36, %v2646_v20  ;;  %v2205_v3 = vrot.slane %v2107_v35, 5 }
 0x10f   : > { %3045 = vmatmul.bf16.gmra.mxu3 %v2953_v7  ;;  %v1902_v24 = vshll.u32 %v1697_v38, 16  ;;  %v2599_v29 = vrot.slane %v2597_v16, 5  ;;  %v6637_v18 = vrot.slane %v6627_v52, 9 }
 0x110   : > { %v1619_v39 = vadd.f32 %v8048_v60, %v1600_v1  ;;  %v1889_v60 = vor.u32 %v1888_v0, %v1885_v59  ;;  %v8353_v17 = vrot.slane %v2603_v8, 5  ;;  %v2954_v1 = vpack.c.b16 %v2945_v42, %v2944_v28 }
 0x111   : > { %v1115_v14 = vpop.f32.mrf.mxu2  ;;  %v474_v7 = vpop.f32.mrf.mxu0  ;;  %v1904_v41 = vrot.slane %v1902_v24, 5  ;;  %v2600_v48 = vor.u32 %v2599_v29, %v2596_v26  ;;  %v8382_v8 = vsel %vm7936_vm5, %v6517_v45, %v2202_v46  ;;  %v6904_v24 = vld [vmem:[%s7742_s9 + $0x18] sm:$0xf]  ;;  %v2911_v32 = vsel %vm7936_vm5, %v6637_v18, %v2910_v56 }
 0x112   : > { %v1525_v15 = vpop.f32.mrf.mxu3  ;;  %v1635_v61 = vmax.f32 %v1619_v39, 0.0  ;;  %v1140_v22 = vadd.f32 %v1115_v14, %v910_v2  ;;  %v887_v23 = vpop.f32.mrf.mxu1  ;;  %v1890_v21 = vrot.slane %v1889_v60, 4  ;;  %v2610_v63 = vor.u32 %v2609_v31, %v8353_v17 }
 0x113   : > { %v911_v44 = vadd.f32 %v887_v23, %v474_v7  ;;  %v2204_v14 = vrot.slane %v2202_v46, 4  ;;  %v2601_v10 = vrot.slane %v2600_v48, 4  ;;  %v6766_v7 = vld [vmem:[%s7742_s9 + $0xc] sm:$0xf]  ;;  %v2238_v19 = vunpack.c.l.b16 %v8382_v8 }
 0x114   : > { %1651 = vst [vmem:[%s8085_s27 + $0x48] sm:$0xff] %v1635_v61  ;;  %v1550_v30 = vadd.f32 %v1525_v15, %v1140_v22  ;;  %v1895_v2 = vsel %vm7754_vm2, %v1890_v21, %v8331_v5  ;;  %v1905_v15 = vsel %vm7754_vm2, %v1900_v47, %v1904_v41  ;;  %v2615_v5 = vrot.slane %v2613_v49, 5 }
 0x115   : > { %v2611_v12 = vrot.slane %v2610_v63, 4  ;;  %v2912_v61 = vrot.slane %v2910_v56, 4  ;;  %v2913_v22 = vrot.slane %v6629_v4, 5  ;;  %v8389_v23 = vunpack.c.l.b16 %v1895_v2 }
 0x116   : > { %v1601_v11 = vmul.f32 %v8361_v43, %v1550_v30  ;;  %v2206_v9 = vsel %vm7936_vm5, %v2204_v14, %v2205_v3  ;;  %v8397_v25 = vunpack.c.l.b16 %v1905_v15  ;;  %v3457_v26 = vshrl.u32 %v6766_v7, 16  ;;  %v6905_v30 = vld [vmem:[%s7742_s9 + $0x1c] sm:$0xf] }
 0x117   : > { %v3460_v29 = vshll.u32 %v6766_v7, 16  ;;  %v2616_v31 = vsel %vm7754_vm2, %v2611_v12, %v2615_v5  ;;  %v2914_v34 = vsel %vm7936_vm5, %v2912_v61, %v2913_v22  ;;  %v3466_v42 = vshll.u32 %v6767_v40, 16 }
 0x118   : > { %v1620_v27 = vadd.f32 %v8370_v51, %v1601_v11  ;;  %v3470_v21 = vshrl.u32 %v6767_v40, 16  ;;  %v4100_v55 = vshll.u32 %v6904_v24, 16  ;;  %v4106_v46 = vshll.u32 %v6905_v30, 16 }
 0x119   : > { %v1117_v59 = vpop.f32.mrf.mxu2  ;;  %v477_v57 = vpop.f32.mrf.mxu0  ;;  %v4110_v47 = vshrl.u32 %v6905_v30, 16  ;;  %v2239_v41 = vunpack.c.l.b16 %v2206_v9  ;;  %v3459_v49 = vrot.slane %v3457_v26, 4  ;;  %v2649_v63 = vunpack.c.l.b16 %v2616_v31  ;;  %v7374_v26 = vld [vmem:[#allocation3 + $0x338] sm:$0xff] }
 0x11a   : > { %v1527_v0 = vpop.f32.mrf.mxu3  ;;  %v1636_v16 = vmax.f32 %v1620_v27, 0.0  ;;  %v1141_v39 = vadd.f32 %v1117_v59, %v911_v44  ;;  %v890_v38 = vpop.f32.mrf.mxu1  ;;  %v3462_v27 = vrot.slane %v3460_v29, 5  ;;  %v2946_v52 = vunpack.c.l.b16 %v2911_v32  ;;  %v7390_v59 = vld [vmem:[#allocation3 + $0x3b8] sm:$0xff]  ;;  %4892 = vmatpush.bf16.msrb.mxu0 %v7374_v26 }
 0x11b   : > { %v912_v58 = vadd.f32 %v890_v38, %v477_v57  ;;  %v2947_v56 = vunpack.c.l.b16 %v2914_v34  ;;  %v3472_v2 = vrot.slane %v3470_v21, 4  ;;  %v4102_v4 = vrot.slane %v4100_v55, 5  ;;  %5600 = vmatpush.bf16.msrb.mxu2 %v7390_v59  ;;  %v6906_v38 = vld [vmem:[%s7742_s9 + $0x20] sm:$0x1]  ;;  %v7382_v29 = vld [vmem:[#allocation3 + $0x378] sm:$0xff] }
 0x11c   : > { %1652 = vst [vmem:[%s8085_s27 + $0x50] sm:$0xff] %v1636_v16  ;;  %v1551_v60 = vadd.f32 %v1527_v0, %v1141_v39  ;;  %2041 = vmatmul.bf16.gmra.mxu0 %v1945_v13  ;;  %v7398_v0 = vld [vmem:[#allocation3 + $0x3f8] sm:$0xff]  ;;  %v8415_v33 = vrot.slane %v4106_v46, 5  ;;  %v4112_v16 = vrot.slane %v4110_v47, 4  ;;  %v1946_v39 = vpack.c.b16 %v8397_v25, %v8389_v23  ;;  %5190 = vmatpush.bf16.msrb.mxu1 %v7382_v29 }
 0x11d   : > { %2342 = vmatmul.bf16.gmra.mxu1 %v8336_v6  ;;  %v2606_v6 = vsel %vm7754_vm2, %v2601_v10, %v8353_v17  ;;  %v4097_v17 = vshrl.u32 %v6904_v24, 16  ;;  %5898 = vmatpush.bf16.msrb.mxu3 %v7398_v0  ;;  %v3463_v57 = vor.u32 %v3462_v27, %v3459_v49  ;;  %v2247_v15 = vpack.c.b16 %v2239_v41, %v2238_v19  ;;  %v6769_v24 = vld [vmem:[%s7742_s9 + $0x18] sm:$0xf]  ;;  %v6770_v30 = vld [vmem:[%s7742_s9 + $0x1c] sm:$0xf] }
 0x11e   : > { %v1602_v54 = vmul.f32 %v8361_v43, %v1551_v60  ;;  %2752 = vmatmul.bf16.gmra.mxu2 %v2656_v62  ;;  %v2648_v48 = vunpack.c.l.b16 %v2606_v6  ;;  %v6768_v62 = vld [vmem:[%s7742_s9 + $0x14] sm:$0x1]  ;;  %v2955_v12 = vpack.c.b16 %v2947_v56, %v2946_v52  ;;  %v4113_v9 = vor.u32 %v4112_v16, %v8415_v33 }
 0x11f   : > { %3050 = vmatmul.bf16.gmra.mxu3 %v2954_v1  ;;  %v8412_v1 = vrot.slane %v3466_v42, 5  ;;  %v4099_v3 = vrot.slane %v4097_v17, 4  ;;  %v3476_v10 = vshll.u32 %v6768_v62, 16  ;;  %v4116_v40 = vshll.u32 %v6906_v38, 16  ;;  %v7397_v38 = vld [vmem:[#allocation3 + $0x3f0] sm:$0xff] }
 0x120   : > { %v1621_v20 = vadd.f32 %v8370_v51, %v1602_v54  ;;  %v2657_v60 = vpack.c.b16 %v2649_v63, %v2648_v48  ;;  %v3464_v19 = vrot.slane %v3463_v57, 4  ;;  %v3481_v32 = vshrl.u32 %v6769_v24, 16 }
 0x121   : > { %v1120_v36 = vpop.f32.mrf.mxu2  ;;  %v479_v35 = vpop.f32.mrf.mxu0  ;;  %v3473_v61 = vor.u32 %v3472_v2, %v8412_v1  ;;  %v4103_v22 = vor.u32 %v4102_v4, %v4099_v3  ;;  %v3478_v6 = vrot.slane %v3476_v10, 5  ;;  %v3484_v34 = vshll.u32 %v6769_v24, 16  ;;  %v6771_v2 = vld [vmem:[%s7742_s9 + $0x20] sm:$0x1]  ;;  %5899 = vmatpush.bf16.msrb.mxu3 %v7397_v38  ;;  %v7319_v24 = vld [vmem:[%s7742_s9 + $0xc] sm:$0xff] }
 0x122   : > { %v1530_v28 = vpop.f32.mrf.mxu3  ;;  %v1637_v11 = vmax.f32 %v1621_v20, 0.0  ;;  %v1142_v13 = vadd.f32 %v1120_v36, %v912_v58  ;;  %v892_v45 = vpop.f32.mrf.mxu1  ;;  %v6907_v36 = vld [vmem:[%s7742_s9 + $0x24] sm:$0xf]  ;;  %v4114_v21 = vrot.slane %v4113_v9, 4  ;;  %v4118_v17 = vrot.slane %v4116_v40, 5 }
 0x123   : > { %v913_v14 = vadd.f32 %v892_v45, %v479_v35  ;;  %v3474_v20 = vrot.slane %v3473_v61, 4  ;;  %v4104_v31 = vrot.slane %v4103_v22, 4  ;;  %v3490_v55 = vshll.u32 %v6770_v30, 16  ;;  %v6908_v35 = vld [vmem:[%s7742_s9 + $0x28] sm:$0xf] }
 0x124   : > { %1653 = vst [vmem:[%s8085_s27 + $0x58] sm:$0xff] %v1637_v11  ;;  %v1552_v44 = vadd.f32 %v1530_v28, %v1142_v13  ;;  %v3494_v11 = vshrl.u32 %v6770_v30, 16  ;;  %v4121_v45 = vshrl.u32 %v6907_v36, 16  ;;  %v4124_v46 = vshll.u32 %v6907_v36, 16  ;;  %v7343_v30 = vld [vmem:[%s7742_s9 + $0x18] sm:$0xff] }
 0x125   : > { %v3469_v48 = vsel %vm7754_vm2, %v3464_v19, %v8412_v1  ;;  %v3479_v49 = vsel %vm7754_vm2, %v3474_v20, %v3478_v6  ;;  %v4109_v27 = vsel %vm7754_vm2, %v4104_v31, %v8415_v33  ;;  %v4119_v0 = vsel %vm7754_vm2, %v4114_v21, %v4118_v17  ;;  %v7389_v33 = vld [vmem:[#allocation3 + $0x3b0] sm:$0xff] }
 0x126   : > { %v1603_v53 = vmul.f32 %v8361_v43, %v1552_v44  ;;  %v3483_v44 = vrot.slane %v3481_v32, 4  ;;  %v3486_v62 = vrot.slane %v3484_v34, 5  ;;  %v8441_v3 = vrot.slane %v3490_v55, 5  ;;  %5601 = vmatpush.bf16.msrb.mxu2 %v7389_v33  ;;  %v7373_v17 = vld [vmem:[#allocation3 + $0x330] sm:$0xff] }
 0x127   : > { %v3496_v1 = vrot.slane %v3494_v11, 4  ;;  %v4130_v4 = vshll.u32 %v6908_v35, 16  ;;  %v4126_v57 = vrot.slane %v4124_v46, 5  ;;  %v4305_v10 = vunpack.c.l.b16 %v4109_v27  ;;  %v7381_v55 = vld [vmem:[#allocation3 + $0x370] sm:$0xff]  ;;  %v6772_v11 = vld [vmem:[%s7742_s9 + $0x24] sm:$0xf]  ;;  %4893 = vmatpush.bf16.msrb.mxu0 %v7373_v17 }
 0x128   : > { %v1622_v8 = vadd.f32 %v8370_v51, %v1603_v53  ;;  %v4134_v53 = vshrl.u32 %v6908_v35, 16  ;;  %v6910_v46 = vld [vmem:[%s7742_s9 + $0x30] sm:$0xf]  ;;  %5191 = vmatpush.bf16.msrb.mxu1 %v7381_v55  ;;  %v6911_v27 = vld [vmem:[%s7742_s9 + $0x34] sm:$0xf] }
 0x129   : > { %v1122_v5 = vpop.f32.mrf.mxu2  ;;  %v482_v23 = vpop.f32.mrf.mxu0  ;;  %v8446_v61 = vrot.slane %v4130_v4, 5  ;;  %v4158_v33 = vshrl.u32 %v6911_v27, 16 }
 0x12a   : > { %v1532_v18 = vpop.f32.mrf.mxu3  ;;  %v1638_v7 = vmax.f32 %v1622_v8, 0.0  ;;  %v1143_v54 = vadd.f32 %v1122_v5, %v913_v14  ;;  %v895_v58 = vpop.f32.mrf.mxu1  ;;  %v3665_v8 = vunpack.c.l.b16 %v3469_v48  ;;  %v3666_v14 = vunpack.c.l.b16 %v3479_v49 }
 0x12b   : > { %v914_v42 = vadd.f32 %v895_v58, %v482_v23  ;;  %v4306_v5 = vunpack.c.l.b16 %v4119_v0  ;;  %v4136_v22 = vrot.slane %v4134_v53, 4  ;;  %v6909_v23 = vld [vmem:[%s7742_s9 + $0x2c] sm:$0x1] }
 0x12c   : > { %1654 = vst [vmem:[%s8085_s27 + $0x60] sm:$0xff] %v1638_v7  ;;  %v1553_v25 = vadd.f32 %v1532_v18, %v1143_v54  ;;  %2046 = vmatmul.bf16.gmra.mxu0 %v1946_v39  ;;  %v4123_v39 = vrot.slane %v4121_v45, 4  ;;  %v3487_v18 = vor.u32 %v3486_v62, %v3483_v44  ;;  %v3681_v19 = vpack.c.b16 %v3666_v14, %v3665_v8  ;;  %v6773_v45 = vld [vmem:[%s7742_s9 + $0x28] sm:$0xf] }
 0x12d   : > { %2347 = vmatmul.bf16.gmra.mxu1 %v2247_v15  ;;  %v4321_v20 = vpack.c.b16 %v4306_v5, %v4305_v10  ;;  %v4137_v36 = vor.u32 %v4136_v22, %v8446_v61  ;;  %v3514_v62 = vshll.u32 %v6773_v45, 16 }
 0x12e   : > { %v1604_v28 = vmul.f32 %v8361_v43, %v1553_v25  ;;  %2757 = vmatmul.bf16.gmra.mxu2 %v2657_v60  ;;  %v3497_v60 = vor.u32 %v3496_v1, %v8441_v3  ;;  %v4127_v58 = vor.u32 %v4126_v57, %v4123_v39  ;;  %v3488_v31 = vrot.slane %v3487_v18, 4 }
 0x12f   : > { %3055 = vmatmul.bf16.gmra.mxu3 %v2955_v12  ;;  %v3500_v12 = vshll.u32 %v6771_v2, 16  ;;  %v4138_v48 = vrot.slane %v4137_v36, 4  ;;  %v3518_v2 = vshrl.u32 %v6773_v45, 16  ;;  %v4148_v1 = vshll.u32 %v6910_v46, 16  ;;  %v6775_v45 = vld [vmem:[%s7742_s9 + $0x30] sm:$0xf] }
 0x130   : > { %v1623_v13 = vadd.f32 %v8370_v51, %v1604_v28  ;;  %v3498_v32 = vrot.slane %v3497_v60, 4  ;;  %v4140_v28 = vshll.u32 %v6909_v23, 16  ;;  %v4128_v21 = vrot.slane %v4127_v58, 4  ;;  %v7388_v60 = vld [vmem:[#allocation3 + $0x3a8] sm:$0xff] }
 0x131   : > { %v1125_v47 = vpop.f32.mrf.mxu2  ;;  %v484_v56 = vpop.f32.mrf.mxu0  ;;  %v3502_v34 = vrot.slane %v3500_v12, 5  ;;  %v4154_v57 = vshll.u32 %v6911_v27, 16  ;;  %v7396_v12 = vld [vmem:[#allocation3 + $0x3e8] sm:$0xff]  ;;  %v3520_v22 = vrot.slane %v3518_v2, 4  ;;  %5602 = vmatpush.bf16.msrb.mxu2 %v7388_v60  ;;  %v6913_v2 = vld [vmem:[%s7742_s9 + $0x3c] sm:$0xf] }
 0x132   : > { %v1535_v41 = vpop.f32.mrf.mxu3  ;;  %v1639_v63 = vmax.f32 %v1623_v13, 0.0  ;;  %v1144_v52 = vadd.f32 %v1125_v47, %v914_v42  ;;  %v897_v59 = vpop.f32.mrf.mxu1  ;;  %v3493_v47 = vsel %vm7754_vm2, %v3488_v31, %v8441_v3  ;;  %v4142_v49 = vrot.slane %v4140_v28, 5  ;;  %5900 = vmatpush.bf16.msrb.mxu3 %v7396_v12  ;;  %v7320_v31 = vld [vmem:[%s7742_s9 + $0x18] sm:$0xff] }
 0x133   : > { %v915_v54 = vadd.f32 %v897_v59, %v484_v56  ;;  %v3508_v56 = vshll.u32 %v6772_v11, 16  ;;  %v4145_v3 = vshrl.u32 %v6910_v46, 16  ;;  %v3667_v38 = vunpack.c.l.b16 %v3493_v47 }
 0x134   : > { %1655 = vst [vmem:[%s8085_s27 + $0x68] sm:$0xff] %v1639_v63  ;;  %v1554_v16 = vadd.f32 %v1535_v41, %v1144_v52  ;;  %v3503_v41 = vsel %vm7754_vm2, %v3498_v32, %v3502_v34  ;;  %v4133_v63 = vsel %vm7754_vm2, %v4128_v21, %v8446_v61  ;;  %v3505_v52 = vshrl.u32 %v6772_v11, 16  ;;  %v7344_v11 = vld [vmem:[%s7742_s9 + $0x24] sm:$0xff] }
 0x135   : > { %v3668_v8 = vunpack.c.l.b16 %v3503_v41  ;;  %v4143_v14 = vsel %vm7754_vm2, %v4138_v48, %v4142_v49  ;;  %v4307_v10 = vunpack.c.l.b16 %v4133_v63  ;;  %v3510_v18 = vrot.slane %v3508_v56, 5  ;;  %v7372_v41 = vld [vmem:[#allocation3 + $0x328] sm:$0xff]  ;;  %v6776_v49 = vld [vmem:[%s7742_s9 + $0x34] sm:$0xf] }
 0x136   : > { %v1605_v15 = vmul.f32 %v8361_v43, %v1554_v16  ;;  %v3507_v5 = vrot.slane %v3505_v52, 4  ;;  %v8471_v61 = vrot.slane %v3514_v62, 5  ;;  %v4308_v58 = vunpack.c.l.b16 %v4143_v14  ;;  %v7380_v48 = vld [vmem:[#allocation3 + $0x368] sm:$0xff]  ;;  %4894 = vmatpush.bf16.msrb.mxu0 %v7372_v41 }
 0x137   : > { %v3529_v62 = vshrl.u32 %v6775_v45, 16  ;;  %5192 = vmatpush.bf16.msrb.mxu1 %v7380_v48  ;;  %v4169_v14 = vshrl.u32 %v6913_v2, 16 }
 0x138   : > { %v1624_v7 = vadd.f32 %v8370_v51, %v1605_v15  ;;  %v3521_v32 = vor.u32 %v3520_v22, %v8471_v61 }
 0x139   : > { %v1127_v9 = vpop.f32.mrf.mxu2  ;;  %v2012_v26 = vpop.f32.mrf.mxu0 }
 0x13a   : > { %v1537_v40 = vpop.f32.mrf.mxu3  ;;  %v1640_v25 = vmax.f32 %v1624_v7, 0.0  ;;  %v1145_v6 = vadd.f32 %v1127_v9, %v915_v54  ;;  %v2313_v29 = vpop.f32.mrf.mxu1  ;;  %v4147_v7 = vrot.slane %v4145_v3, 4  ;;  %v4150_v54 = vrot.slane %v4148_v1, 5  ;;  %v6774_v9 = vld [vmem:[%s7742_s9 + $0x2c] sm:$0x1] }
 0x13b   : > { %v2353_v35 = vadd.f32 %v2313_v29, %v2012_v26  ;;  %v3682_v26 = vpack.c.b16 %v3668_v8, %v3667_v38  ;;  %v3511_v29 = vor.u32 %v3510_v18, %v3507_v5  ;;  %v3524_v34 = vshll.u32 %v6774_v9, 16  ;;  %v6777_v9 = vld [vmem:[%s7742_s9 + $0x38] sm:$0x1] }
 0x13c   : > { %1656 = vst [vmem:[%s8085_s27 + $0x70] sm:$0xff] %v1640_v25  ;;  %v1555_v42 = vadd.f32 %v1537_v40, %v1145_v6  ;;  %3343 = vmatmul.bf16.vlgmr.msra.gmra.mxu0 %v7319_v24  ;;  %v6912_v40 = vld [vmem:[%s7742_s9 + $0x38] sm:$0x1]  ;;  %v8476_v24 = vrot.slane %v4154_v57, 5  ;;  %v4151_v36 = vor.u32 %v4150_v54, %v4147_v7  ;;  %v3522_v27 = vrot.slane %v3521_v32, 4 }
 0x13d   : > { %3753 = vmatmul.bf16.vlgmr.msra.gmra.mxu1 %v3681_v19  ;;  %v4160_v19 = vrot.slane %v4158_v33, 4  ;;  %v4164_v28 = vshll.u32 %v6912_v40, 16  ;;  %v3512_v47 = vrot.slane %v3511_v29, 4  ;;  %v3532_v3 = vshll.u32 %v6775_v45, 16 }
 0x13e   : > { %v1606_v13 = vmul.f32 %v8361_v43, %v1555_v42  ;;  %3983 = vmatmul.bf16.vlgmr.msra.gmra.mxu2 %v7343_v30  ;;  %v4152_v63 = vrot.slane %v4151_v36, 4  ;;  %v3538_v1 = vshll.u32 %v6776_v49, 16 }
 0x13f   : > { %4393 = vmatmul.bf16.vlgmr.msra.gmra.mxu3 %v4321_v20  ;;  %v4166_v52 = vrot.slane %v4164_v28, 5  ;;  %v3534_v22 = vrot.slane %v3532_v3, 5  ;;  %v7371_v3 = vld [vmem:[#allocation3 + $0x320] sm:$0xff] }
 0x140   : > { %v1625_v44 = vadd.f32 %v8370_v51, %v1606_v13  ;;  %v4322_v13 = vpack.c.b16 %v4308_v58, %v4307_v10  ;;  %v4157_v8 = vsel %vm7754_vm2, %v4152_v63, %v8476_v24  ;;  %v8500_v7 = vrot.slane %v3538_v1, 5  ;;  %v7379_v1 = vld [vmem:[#allocation3 + $0x360] sm:$0xff]  ;;  %4895 = vmatpush.bf16.msrb.mxu0 %v7371_v3 }
 0x141   : > { %v2723_v59 = vpop.f32.mrf.mxu2  ;;  %v2014_v16 = vpop.f32.mrf.mxu0  ;;  %5193 = vmatpush.bf16.msrb.mxu1 %v7379_v1 }
 0x142   : > { %v3021_v0 = vpop.f32.mrf.mxu3  ;;  %v1641_v4 = vmax.f32 %v1625_v44, 0.0  ;;  %v2763_v53 = vadd.f32 %v2723_v59, %v2353_v35  ;;  %v2315_v39 = vpop.f32.mrf.mxu1  ;;  %v4161_v35 = vor.u32 %v4160_v19, %v8476_v24  ;;  %v3526_v44 = vrot.slane %v3524_v34, 5  ;;  %v7387_v24 = vld [vmem:[#allocation3 + $0x3a0] sm:$0xff] }
 0x143   : > { %v2354_v6 = vadd.f32 %v2315_v39, %v2014_v16  ;;  %v3542_v16 = vshrl.u32 %v6776_v49, 16  ;;  %v6914_v39 = vld [vmem:[%s7742_s9 + $0x40] sm:$0xf]  ;;  %5603 = vmatpush.bf16.msrb.mxu2 %v7387_v24  ;;  %v3548_v34 = vshll.u32 %v6777_v9, 16 }
 0x144   : > { %1657 = vst [vmem:[%s8085_s27 + $0x78] sm:$0xff] %v1641_v4  ;;  %v3061_v15 = vadd.f32 %v3021_v0, %v2763_v53  ;;  %v4162_v0 = vrot.slane %v4161_v35, 4  ;;  %v3517_v53 = vsel %vm7754_vm2, %v3512_v47, %v8471_v61  ;;  %v3527_v38 = vsel %vm7754_vm2, %v3522_v27, %v3526_v44  ;;  %v7395_v19 = vld [vmem:[#allocation3 + $0x3e0] sm:$0xff]  ;;  %v7345_v27 = vld [vmem:[%s7742_s9 + $0x30] sm:$0xff] }
 0x145   : > { %v3531_v61 = vrot.slane %v3529_v62, 4  ;;  %v4178_v54 = vshll.u32 %v6914_v39, 16  ;;  %v3544_v40 = vrot.slane %v3542_v16, 4  ;;  %5901 = vmatpush.bf16.msrb.mxu3 %v7395_v19  ;;  %v7321_v35 = vld [vmem:[%s7742_s9 + $0x24] sm:$0xff] }
 0x146   : > { %v3109_v23 = vmul.f32 %v8361_v43, %v3061_v15  ;;  %v4172_v15 = vshll.u32 %v6913_v2, 16  ;;  %v4167_v12 = vsel %vm7754_vm2, %v4162_v0, %v4166_v52  ;;  %v3550_v52 = vrot.slane %v3548_v34, 5  ;;  %v6778_v0 = vld [vmem:[%s7742_s9 + $0x3c] sm:$0xf] }
 0x147   : > { %v3535_v32 = vor.u32 %v3534_v22, %v3531_v61  ;;  %v8505_v36 = vrot.slane %v4178_v54, 5 }
 0x148   : > { %v3125_v25 = vadd.f32 %v8370_v51, %v3109_v23  ;;  %v4182_v23 = vshrl.u32 %v6914_v39, 16  ;;  %v4174_v29 = vrot.slane %v4172_v15, 5 }
 0x149   : > { %v2725_v30 = vpop.f32.mrf.mxu2  ;;  %v2017_v17 = vpop.f32.mrf.mxu0  ;;  %v3536_v63 = vrot.slane %v3535_v32, 4 }
 0x14a   : > { %v3023_v20 = vpop.f32.mrf.mxu3  ;;  %v3141_v42 = vmax.f32 %v3125_v25, 0.0  ;;  %v2764_v21 = vadd.f32 %v2725_v30, %v2354_v6  ;;  %v2318_v55 = vpop.f32.mrf.mxu1  ;;  %v3669_v25 = vunpack.c.l.b16 %v3517_v53  ;;  %v3670_v6 = vunpack.c.l.b16 %v3527_v38  ;;  %v6916_v38 = vld [vmem:[%s7742_s9 + $0x48] sm:$0xf] }
 0x14b   : > { %v2355_v59 = vadd.f32 %v2318_v55, %v2017_v17  ;;  %v4184_v28 = vrot.slane %v4182_v23, 4  ;;  %v3545_v17 = vor.u32 %v3544_v40, %v8500_v7  ;;  %v6915_v55 = vld [vmem:[%s7742_s9 + $0x44] sm:$0x1]  ;;  %v4193_v54 = vshrl.u32 %v6916_v38, 16 }
 0x14c   : > { %6670 = vst [vmem:[%s8085_s27 + $0x80] sm:$0xff] %v3141_v42  ;;  %v3062_v46 = vadd.f32 %v3023_v20, %v2764_v21  ;;  %3348 = vmatmul.bf16.gmra.mxu0 %v7320_v31  ;;  %v4309_v20 = vunpack.c.l.b16 %v4157_v8  ;;  %v4310_v31 = vunpack.c.l.b16 %v4167_v12  ;;  %v3683_v45 = vpack.c.b16 %v3670_v6, %v3669_v25  ;;  %v6917_v8 = vld [vmem:[%s7742_s9 + $0x4c] sm:$0xf] }
 0x14d   : > { %3758 = vmatmul.bf16.gmra.mxu1 %v3682_v26  ;;  %v4171_v26 = vrot.slane %v4169_v14, 4  ;;  %v3546_v2 = vrot.slane %v3545_v17, 4  ;;  %v4196_v23 = vshll.u32 %v6916_v38, 16  ;;  %v4206_v9 = vshrl.u32 %v6917_v8, 16  ;;  %v6918_v17 = vld [vmem:[%s7742_s9 + $0x50] sm:$0x1] }
 0x14e   : > { %v3110_v56 = vmul.f32 %v8361_v43, %v3062_v46  ;;  %3988 = vmatmul.bf16.gmra.mxu2 %v7344_v11  ;;  %v4323_v44 = vpack.c.b16 %v4310_v31, %v4309_v20 }
 0x14f   : > { %4398 = vmatmul.bf16.gmra.mxu3 %v4322_v13  ;;  %v4175_v46 = vor.u32 %v4174_v29, %v4171_v26  ;;  %v3551_v12 = vsel %vm7754_vm2, %v3546_v2, %v3550_v52 }
 0x150   : > { %v3126_v4 = vadd.f32 %v8370_v51, %v3110_v56  ;;  %v4185_v56 = vor.u32 %v4184_v28, %v8505_v36  ;;  %v3672_v34 = vunpack.c.l.b16 %v3551_v12  ;;  %v6780_v28 = vld [vmem:[%s7742_s9 + $0x44] sm:$0x1] }
 0x151   : > { %v2728_v57 = vpop.f32.mrf.mxu2  ;;  %v2019_v18 = vpop.f32.mrf.mxu0  ;;  %v4176_v53 = vrot.slane %v4175_v46, 4 }
 0x152   : > { %v3026_v33 = vpop.f32.mrf.mxu3  ;;  %v3142_v10 = vmax.f32 %v3126_v4, 0.0  ;;  %v2765_v5 = vadd.f32 %v2728_v57, %v2355_v59  ;;  %v2320_v60 = vpop.f32.mrf.mxu1  ;;  %v4188_v59 = vshll.u32 %v6915_v55, 16  ;;  %v6779_v4 = vld [vmem:[%s7742_s9 + $0x40] sm:$0xf]  ;;  %v3553_v57 = vshrl.u32 %v6778_v0, 16 }
 0x153   : > { %v2356_v21 = vadd.f32 %v2320_v60, %v2019_v18  ;;  %v4186_v14 = vrot.slane %v4185_v56, 4  ;;  %v3541_v60 = vsel %vm7754_vm2, %v3536_v63, %v8500_v7  ;;  %v4181_v7 = vsel %vm7754_vm2, %v4176_v53, %v8505_v36  ;;  %v7322_v56 = vld [vmem:[%s7742_s9 + $0x30] sm:$0xff]  ;;  %v7346_v53 = vld [vmem:[%s7742_s9 + $0x3c] sm:$0xff] }
 0x154   : > { %6671 = vst [vmem:[%s8085_s27 + $0x88] sm:$0xff] %v3142_v10  ;;  %v3063_v58 = vadd.f32 %v3026_v33, %v2765_v5  ;;  %v3556_v33 = vshll.u32 %v6778_v0, 16  ;;  %v4190_v15 = vrot.slane %v4188_v59, 5  ;;  %v3562_v10 = vshll.u32 %v6779_v4, 16 }
 0x155   : > { %v3566_v5 = vshrl.u32 %v6779_v4, 16  ;;  %v3555_v6 = vrot.slane %v3553_v57, 4  ;;  %v3671_v32 = vunpack.c.l.b16 %v3541_v60  ;;  %v4195_v55 = vrot.slane %v4193_v54, 4  ;;  %v6781_v57 = vld [vmem:[%s7742_s9 + $0x48] sm:$0xf] }
 0x156   : > { %v3111_v30 = vmul.f32 %v8361_v43, %v3063_v58  ;;  %v4202_v58 = vshll.u32 %v6917_v8, 16  ;;  %v3558_v26 = vrot.slane %v3556_v33, 5  ;;  %v4191_v29 = vsel %vm7754_vm2, %v4186_v14, %v4190_v15  ;;  %v6782_v8 = vld [vmem:[%s7742_s9 + $0x4c] sm:$0xf]  ;;  %v6919_v14 = vld [vmem:[%s7742_s9 + $0x54] sm:$0xf] }
 0x157   : > { %v3568_v20 = vrot.slane %v3566_v5, 4  ;;  %v4208_v36 = vrot.slane %v4206_v9, 4  ;;  %v4312_v46 = vunpack.c.l.b16 %v4191_v29  ;;  %v3684_v59 = vpack.c.b16 %v3672_v34, %v3671_v32  ;;  %v7370_v5 = vld [vmem:[#allocation3 + $0x318] sm:$0xff] }
 0x158   : > { %v3127_v42 = vadd.f32 %v8370_v51, %v3111_v30  ;;  %v8530_v30 = vrot.slane %v3562_v10, 5  ;;  %v6920_v60 = vld [vmem:[%s7742_s9 + $0x58] sm:$0xf]  ;;  %v3580_v54 = vshll.u32 %v6781_v57, 16  ;;  %v3586_v9 = vshll.u32 %v6782_v8, 16  ;;  %4896 = vmatpush.bf16.msrb.mxu0 %v7370_v5 }
 0x159   : > { %v2730_v11 = vpop.f32.mrf.mxu2  ;;  %v2022_v48 = vpop.f32.mrf.mxu0 }
 0x15a   : > { %v3028_v13 = vpop.f32.mrf.mxu3  ;;  %v3143_v47 = vmax.f32 %v3127_v42, 0.0  ;;  %v2766_v41 = vadd.f32 %v2730_v11, %v2356_v21  ;;  %v2323_v49 = vpop.f32.mrf.mxu1  ;;  %v7386_v42 = vld [vmem:[#allocation3 + $0x398] sm:$0xff]  ;;  %v4198_v11 = vrot.slane %v4196_v23, 5 }
 0x15b   : > { %v2357_v39 = vadd.f32 %v2323_v49, %v2022_v48  ;;  %v7394_v21 = vld [vmem:[#allocation3 + $0x3d8] sm:$0xff]  ;;  %5604 = vmatpush.bf16.msrb.mxu2 %v7386_v42  ;;  %v3572_v48 = vshll.u32 %v6780_v28, 16  ;;  %v3582_v42 = vrot.slane %v3580_v54, 5 }
 0x15c   : > { %6672 = vst [vmem:[%s8085_s27 + $0x90] sm:$0xff] %v3143_v47  ;;  %v3064_v62 = vadd.f32 %v3028_v13, %v2766_v41  ;;  %3353 = vmatmul.bf16.gmra.mxu0 %v7321_v35  ;;  %v8535_v13 = vrot.slane %v4202_v58, 5  ;;  %v3559_v47 = vor.u32 %v3558_v26, %v3555_v6  ;;  %5902 = vmatpush.bf16.msrb.mxu3 %v7394_v21  ;;  %v4230_v6 = vshrl.u32 %v6920_v60, 16  ;;  %v6785_v54 = vld [vmem:[%s7742_s9 + $0x58] sm:$0xf] }
 0x15d   : > { %3763 = vmatmul.bf16.gmra.mxu1 %v3683_v45  ;;  %v4311_v45 = vunpack.c.l.b16 %v4181_v7  ;;  %v3569_v41 = vor.u32 %v3568_v20, %v8530_v30  ;;  %v4199_v0 = vor.u32 %v4198_v11, %v4195_v55  ;;  %v3574_v38 = vrot.slane %v3572_v48, 5  ;;  %v6921_v48 = vld [vmem:[%s7742_s9 + $0x5c] sm:$0x1] }
 0x15e   : > { %v3112_v16 = vmul.f32 %v8361_v43, %v3064_v62  ;;  %3993 = vmatmul.bf16.gmra.mxu2 %v7345_v27  ;;  %v4209_v62 = vor.u32 %v4208_v36, %v8535_v13  ;;  %v8560_v11 = vrot.slane %v3586_v9, 5 }
 0x15f   : > { %4403 = vmatmul.bf16.gmra.mxu3 %v4323_v44  ;;  %v4212_v44 = vshll.u32 %v6918_v17, 16  ;;  %v3570_v33 = vrot.slane %v3569_v41, 4  ;;  %v4200_v12 = vrot.slane %v4199_v0, 4 }
 0x160   : > { %v3128_v18 = vadd.f32 %v8370_v51, %v3112_v16  ;;  %v4324_v16 = vpack.c.b16 %v4312_v46, %v4311_v45 }
 0x161   : > { %v2733_v61 = vpop.f32.mrf.mxu2  ;;  %v2024_v19 = vpop.f32.mrf.mxu0  ;;  %v4214_v10 = vrot.slane %v4212_v44, 5  ;;  %v3575_v29 = vsel %vm7754_vm2, %v3570_v33, %v3574_v38  ;;  %v4205_v32 = vsel %vm7754_vm2, %v4200_v12, %v8535_v13  ;;  %v4232_v13 = vrot.slane %v4230_v6, 4  ;;  %v7323_v38 = vld [vmem:[%s7742_s9 + $0x3c] sm:$0xff]  ;;  %v7347_v12 = vld [vmem:[%s7742_s9 + $0x48] sm:$0xff] }
 0x162   : > { %v3031_v22 = vpop.f32.mrf.mxu3  ;;  %v3144_v40 = vmax.f32 %v3128_v18, 0.0  ;;  %v2767_v24 = vadd.f32 %v2733_v61, %v2357_v39  ;;  %v2325_v25 = vpop.f32.mrf.mxu1  ;;  %v3560_v39 = vrot.slane %v3559_v47, 4  ;;  %v7378_v18 = vld [vmem:[#allocation3 + $0x358] sm:$0xff]  ;;  %v4210_v61 = vrot.slane %v4209_v62, 4 }
 0x163   : > { %v2358_v27 = vadd.f32 %v2325_v25, %v2024_v19  ;;  %5194 = vmatpush.bf16.msrb.mxu1 %v7378_v18  ;;  %v4220_v19 = vshll.u32 %v6919_v14, 16  ;;  %v4226_v25 = vshll.u32 %v6920_v60, 16 }
 0x164   : > { %6673 = vst [vmem:[%s8085_s27 + $0x98] sm:$0xff] %v3144_v40  ;;  %v3065_v31 = vadd.f32 %v3031_v22, %v2767_v24  ;;  %v3577_v22 = vshrl.u32 %v6781_v57, 16  ;;  %v3590_v40 = vshrl.u32 %v6782_v8, 16  ;;  %v4217_v24 = vshrl.u32 %v6919_v14, 16 }
 0x165   : > { %v3565_v7 = vsel %vm7754_vm2, %v3560_v39, %v8530_v30  ;;  %v4215_v34 = vsel %vm7754_vm2, %v4210_v61, %v4214_v10  ;;  %v4222_v46 = vrot.slane %v4220_v19, 5  ;;  %v8563_v47 = vrot.slane %v4226_v25, 5  ;;  %v7377_v19 = vld [vmem:[#allocation3 + $0x350] sm:$0xff]  ;;  %v6922_v25 = vld [vmem:[%s7742_s9 + $0x60] sm:$0xf] }
 0x166   : > { %v3113_v35 = vmul.f32 %v8361_v43, %v3065_v31  ;;  %v3579_v28 = vrot.slane %v3577_v22, 4  ;;  %v3592_v36 = vrot.slane %v3590_v40, 4  ;;  %v4219_v45 = vrot.slane %v4217_v24, 4  ;;  %v7369_v24 = vld [vmem:[#allocation3 + $0x310] sm:$0xff] }
 0x167   : > { %v3673_v44 = vunpack.c.l.b16 %v3565_v7  ;;  %v3610_v7 = vshll.u32 %v6785_v54, 16  ;;  %4897 = vmatpush.bf16.msrb.mxu0 %v7369_v24  ;;  %5195 = vmatpush.bf16.msrb.mxu1 %v7377_v19  ;;  %v6926_v24 = vld [vmem:[%s7742_s9 + $0x70] sm:$0xf] }
 0x168   : > { %v3129_v49 = vadd.f32 %v8370_v51, %v3113_v35  ;;  %v6783_v35 = vld [vmem:[%s7742_s9 + $0x50] sm:$0x1]  ;;  %v3583_v0 = vor.u32 %v3582_v42, %v3579_v28 }
 0x169   : > { %v2735_v63 = vpop.f32.mrf.mxu2  ;;  %v2027_v1 = vpop.f32.mrf.mxu0  ;;  %v3596_v62 = vshll.u32 %v6783_v35, 16  ;;  %v4244_v35 = vshll.u32 %v6922_v25, 16 }
 0x16a   : > { %v3033_v52 = vpop.f32.mrf.mxu3  ;;  %v3145_v2 = vmax.f32 %v3129_v49, 0.0  ;;  %v2768_v3 = vadd.f32 %v2735_v63, %v2358_v27  ;;  %v2328_v4 = vpop.f32.mrf.mxu1  ;;  %v7385_v49 = vld [vmem:[#allocation3 + $0x390] sm:$0xff]  ;;  %v3674_v63 = vunpack.c.l.b16 %v3575_v29  ;;  %v3584_v61 = vrot.slane %v3583_v0, 4  ;;  %v6787_v0 = vld [vmem:[%s7742_s9 + $0x60] sm:$0xf] }
 0x16b   : > { %v2359_v58 = vadd.f32 %v2328_v4, %v2027_v1  ;;  %v7393_v27 = vld [vmem:[#allocation3 + $0x3d0] sm:$0xff]  ;;  %5605 = vmatpush.bf16.msrb.mxu2 %v7385_v49  ;;  %v4223_v1 = vor.u32 %v4222_v46, %v4219_v45  ;;  %v4233_v4 = vor.u32 %v4232_v13, %v8563_v47  ;;  %v3598_v22 = vrot.slane %v3596_v62, 5 }
 0x16c   : > { %6674 = vst [vmem:[%s8085_s27 + $0xa0] sm:$0xff] %v3145_v2  ;;  %v3066_v15 = vadd.f32 %v3033_v52, %v2768_v3  ;;  %3358 = vmatmul.bf16.gmra.mxu0 %v7322_v56  ;;  %v4313_v52 = vunpack.c.l.b16 %v4205_v32  ;;  %v4314_v56 = vunpack.c.l.b16 %v4215_v34  ;;  %5903 = vmatpush.bf16.msrb.mxu3 %v7393_v27  ;;  %v6784_v2 = vld [vmem:[%s7742_s9 + $0x54] sm:$0xf]  ;;  %v3593_v3 = vor.u32 %v3592_v36, %v8560_v11  ;;  %v6786_v36 = vld [vmem:[%s7742_s9 + $0x5c] sm:$0x1] }
 0x16d   : > { %3768 = vmatmul.bf16.gmra.mxu1 %v3684_v59  ;;  %v3601_v14 = vshrl.u32 %v6784_v2, 16  ;;  %v3614_v29 = vshrl.u32 %v6785_v54, 16  ;;  %v3589_v28 = vsel %vm7754_vm2, %v3584_v61, %v8560_v11 }
 0x16e   : > { %v3114_v23 = vmul.f32 %v8361_v43, %v3066_v15  ;;  %3998 = vmatmul.bf16.gmra.mxu2 %v7346_v53  ;;  %v4236_v53 = vshll.u32 %v6921_v48, 16  ;;  %v4325_v8 = vpack.c.b16 %v4314_v56, %v4313_v52  ;;  %v3604_v15 = vshll.u32 %v6784_v2, 16 }
 0x16f   : > { %4408 = vmatmul.bf16.gmra.mxu3 %v4324_v16  ;;  %v3603_v6 = vrot.slane %v3601_v14, 4  ;;  %v8601_v48 = vrot.slane %v3610_v7, 5  ;;  %v3616_v49 = vrot.slane %v3614_v29, 4  ;;  %v3675_v56 = vunpack.c.l.b16 %v3589_v28 }
 0x170   : > { %v3130_v26 = vadd.f32 %v8370_v51, %v3114_v23  ;;  %v4224_v23 = vrot.slane %v4223_v1, 4  ;;  %v4238_v9 = vrot.slane %v4236_v53, 5  ;;  %v6924_v1 = vld [vmem:[%s7742_s9 + $0x68] sm:$0x1]  ;;  %v6788_v53 = vld [vmem:[%s7742_s9 + $0x64] sm:$0xf] }
 0x171   : > { %v2738_v20 = vpop.f32.mrf.mxu2  ;;  %v2029_v55 = vpop.f32.mrf.mxu0  ;;  %v3617_v14 = vor.u32 %v3616_v49, %v8601_v48  ;;  %v3638_v54 = vshrl.u32 %v6788_v53, 16  ;;  %v7368_v49 = vld [vmem:[#allocation3 + $0x308] sm:$0xff] }
 0x172   : > { %v3036_v31 = vpop.f32.mrf.mxu3  ;;  %v3146_v21 = vmax.f32 %v3130_v26, 0.0  ;;  %v2769_v17 = vadd.f32 %v2738_v20, %v2359_v58  ;;  %v2330_v30 = vpop.f32.mrf.mxu1  ;;  %v4234_v58 = vrot.slane %v4233_v4, 4  ;;  %v3606_v26 = vrot.slane %v3604_v15, 5  ;;  %v6923_v20 = vld [vmem:[%s7742_s9 + $0x64] sm:$0xf]  ;;  %4898 = vmatpush.bf16.msrb.mxu0 %v7368_v49  ;;  %v7325_v49 = vld [vmem:[%s7742_s9 + $0x54] sm:$0xff] }
 0x173   : > { %v2360_v39 = vadd.f32 %v2330_v30, %v2029_v55  ;;  %v4241_v55 = vshrl.u32 %v6922_v25, 16  ;;  %v8597_v30 = vld [vmem:[%s9270_s3] ss:$0 sm:$0xff]  ;;  %v4250_v45 = vshll.u32 %v6923_v20, 16  ;;  %v4254_v46 = vshrl.u32 %v6923_v20, 16 }
 0x174   : > { %6675 = vst [vmem:[%s8085_s27 + $0xa8] sm:$0xff] %v3146_v21  ;;  %v3067_v41 = vadd.f32 %v3036_v31, %v2769_v17  ;;  %v8581_v31 = vld [vmem:[%s9269_s2] ss:$0 sm:$0xff]  ;;  %v4229_v21 = vsel %vm7754_vm2, %v4224_v23, %v8563_v47  ;;  %v4239_v17 = vsel %vm7754_vm2, %v4234_v58, %v4238_v9  ;;  %v3625_v15 = vshrl.u32 %v6787_v0, 16 }
 0x175   : > { %v8604_v62 = vunpack.c.l.b16 %v4229_v21  ;;  %v8606_v2 = vunpack.c.l.b16 %v4239_v17  ;;  %v4243_v4 = vrot.slane %v4241_v55, 4  ;;  %v3618_v7 = vrot.slane %v3617_v14, 4  ;;  %v7348_v21 = vld [vmem:[%s7742_s9 + $0x54] sm:$0xff] }
 0x176   : > { %v3115_v59 = vmul.f32 %v8361_v43, %v3067_v41  ;;  %v3685_v43 = vpack.c.b16 %v3674_v63, %v3673_v44  ;;  %v3607_v41 = vor.u32 %v3606_v26, %v3603_v6  ;;  %v7324_v6 = vld [vmem:[%s7742_s9 + $0x48] sm:$0xff]  ;;  %v3627_v29 = vrot.slane %v3625_v15, 4 }
 0x178   : > { %v3131_v16 = vadd.f32 %v8370_v51, %v3115_v59  ;;  %v3594_v51 = vrot.slane %v3593_v3, 4  ;;  %v3620_v3 = vshll.u32 %v6786_v36, 16  ;;  %v3640_v36 = vrot.slane %v3638_v54, 4 }
 0x179   : > { %v2740_v57 = vpop.f32.mrf.mxu2  ;;  %v2032_v18 = vpop.f32.mrf.mxu0 }
 0x17a   : > { %v3038_v33 = vpop.f32.mrf.mxu3  ;;  %v3147_v10 = vmax.f32 %v3131_v16, 0.0  ;;  %v2770_v5 = vadd.f32 %v2740_v57, %v2360_v39  ;;  %v2333_v60 = vpop.f32.mrf.mxu1  ;;  %v3599_v42 = vsel %vm7754_vm2, %v3594_v51, %v3598_v22  ;;  %v4246_v39 = vrot.slane %v4244_v35, 5  ;;  %v6925_v51 = vld [vmem:[%s7742_s9 + $0x6c] sm:$0xf] }
 0x17b   : > { %v2361_v34 = vadd.f32 %v2333_v60, %v2032_v18  ;;  %v3676_v59 = vunpack.c.l.b16 %v3599_v42  ;;  %v8611_v57 = vrot.slane %v4250_v45, 5  ;;  %v3634_v60 = vshll.u32 %v6788_v53, 16 }
 0x17c   : > { %6676 = vst [vmem:[%s8085_s27 + $0xb0] sm:$0xff] %v3147_v10  ;;  %v3068_v40 = vadd.f32 %v3038_v33, %v2770_v5  ;;  %3363 = vmatmul.bf16.gmra.mxu0 %v7323_v38  ;;  %v4256_v33 = vrot.slane %v4254_v46, 4  ;;  %v7384_v38 = vld [vmem:[#allocation3 + $0x388] sm:$0xff]  ;;  %v3628_v10 = vshll.u32 %v6787_v0, 16  ;;  %v3622_v61 = vrot.slane %v3620_v3, 5 }
 0x17d   : > { %3773 = vmatmul.bf16.gmra.mxu1 %v3685_v43  ;;  %v7392_v43 = vld [vmem:[#allocation3 + $0x3c8] sm:$0xff]  ;;  %v3686_v18 = vpack.c.b16 %v3676_v59, %v3675_v56  ;;  %5606 = vmatpush.bf16.msrb.mxu2 %v7384_v38  ;;  %v4260_v22 = vshll.u32 %v6924_v1, 16  ;;  %v4247_v9 = vor.u32 %v4246_v39, %v4243_v4  ;;  %v8626_v17 = vrot.slane %v3634_v60, 5  ;;  %v6927_v38 = vld [vmem:[%s7742_s9 + $0x74] sm:$0x1] }
 0x17e   : > { %v3116_v32 = vmul.f32 %v8581_v31, %v3068_v40  ;;  %4003 = vmatmul.bf16.gmra.mxu2 %v7347_v12  ;;  %5904 = vmatpush.bf16.msrb.mxu3 %v7392_v43  ;;  %v4326_v12 = vpack.c.b16 %v8606_v2, %v8604_v62  ;;  %v4257_v40 = vor.u32 %v4256_v33, %v8611_v57  ;;  %v3630_v20 = vrot.slane %v3628_v10, 5  ;;  %v6976_v43 = vld [vmem:[%s7742_s9 + $0xc] sm:$0xf] }
 0x17f   : > { %4413 = vmatmul.bf16.gmra.mxu3 %v4325_v8  ;;  %v3608_v8 = vrot.slane %v3607_v41, 4  ;;  %v4265_v55 = vshrl.u32 %v6925_v51, 16  ;;  %v4268_v35 = vshll.u32 %v6925_v51, 16  ;;  %v4274_v45 = vshll.u32 %v6926_v24, 16 }
 0x180   : > { %v3132_v11 = vadd.f32 %v8597_v30, %v3116_v32  ;;  %v4278_v46 = vshrl.u32 %v6926_v24, 16  ;;  %v4258_v41 = vrot.slane %v4257_v40, 4  ;;  %v3641_v2 = vor.u32 %v3640_v36, %v8626_v17  ;;  %v7096_v24 = vld [vmem:[%s7742_s9 + $0x18] sm:$0xf] }
 0x181   : > { %v2743_v47 = vpop.f32.mrf.mxu2  ;;  %v2034_v63 = vpop.f32.mrf.mxu0  ;;  %v3613_v26 = vsel %vm7754_vm2, %v3608_v8, %v8601_v48  ;;  %v4262_v48 = vrot.slane %v4260_v22, 5  ;;  %v4267_v62 = vrot.slane %v4265_v55, 4  ;;  %v4270_v3 = vrot.slane %v4268_v35, 5  ;;  %v6977_v8 = vld [vmem:[%s7742_s9 + $0x10] sm:$0xf] }
 0x182   : > { %v3041_v13 = vpop.f32.mrf.mxu3  ;;  %v3148_v27 = vmax.f32 %v3132_v11, 0.0  ;;  %v2771_v44 = vadd.f32 %v2743_v47, %v2361_v34  ;;  %v2335_v52 = vpop.f32.mrf.mxu1  ;;  %v6789_v11 = vld [vmem:[%s7742_s9 + $0x68] sm:$0x1]  ;;  %v8636_v1 = vrot.slane %v4274_v45, 5  ;;  %v4280_v4 = vrot.slane %v4278_v46, 4 }
 0x183   : > { %v2362_v58 = vadd.f32 %v2335_v52, %v2034_v63  ;;  %v8632_v63 = vunpack.c.l.b16 %v3613_v26  ;;  %v3631_v52 = vor.u32 %v3630_v20, %v3627_v29  ;;  %v3644_v0 = vshll.u32 %v6789_v11, 16  ;;  %v7391_v26 = vld [vmem:[#allocation3 + $0x3c0] sm:$0xff]  ;;  %v7097_v11 = vld [vmem:[%s7742_s9 + $0x1c] sm:$0xf] }
 0x184   : > { %6677 = vst [vmem:[%s8085_s27 + $0xb8] sm:$0xff] %v3148_v27  ;;  %v3069_v16 = vadd.f32 %v3041_v13, %v2771_v44  ;;  %v4248_v13 = vrot.slane %v4247_v9, 4  ;;  %v7376_v27 = vld [vmem:[#allocation3 + $0x348] sm:$0xff]  ;;  %v3623_v44 = vsel %vm7754_vm2, %v3618_v7, %v3622_v61  ;;  %v4263_v33 = vsel %vm7754_vm2, %v4258_v41, %v4262_v48  ;;  %5905 = vmatpush.bf16.msrb.mxu3 %v7391_v26 }
 0x185   : > { %5196 = vmatpush.bf16.msrb.mxu1 %v7376_v27  ;;  %v4604_v10 = vshrl.u32 %v6976_v43, 16  ;;  %v4617_v60 = vshrl.u32 %v6977_v8, 16  ;;  %v3632_v51 = vrot.slane %v3631_v52, 4  ;;  %v4281_v9 = vor.u32 %v4280_v4, %v8636_v1 }
 0x186   : > { %v3117_v5 = vmul.f32 %v8581_v31, %v3069_v16  ;;  %v8639_v16 = vunpack.c.l.b16 %v3623_v44  ;;  %v4253_v39 = vsel %vm7754_vm2, %v4248_v13, %v8611_v57  ;;  %v3646_v57 = vrot.slane %v3644_v0, 5 }
 0x187   : > { %v4284_v40 = vshll.u32 %v6927_v38, 16  ;;  %v4606_v7 = vrot.slane %v4604_v10, 4  ;;  %v4317_v20 = vunpack.c.l.b16 %v4253_v39  ;;  %v3637_v55 = vsel %vm7754_vm2, %v3632_v51, %v8626_v17  ;;  %v7032_v38 = vld [vmem:[%s7742_s9 + $0xc] sm:$0xe] }
 0x188   : > { %v3133_v23 = vadd.f32 %v8597_v30, %v3117_v5  ;;  %v4607_v5 = vshll.u32 %v6976_v43, 16  ;;  %v5312_v36 = vshrl.u32 %v7096_v24, 16  ;;  %v5315_v35 = vshll.u32 %v7096_v24, 16 }
 0x189   : > { %v2745_v19 = vpop.f32.mrf.mxu2  ;;  %v2037_v28 = vpop.f32.mrf.mxu0  ;;  %v4286_v13 = vrot.slane %v4284_v40, 5 }
 0x18a   : > { %v3043_v25 = vpop.f32.mrf.mxu3  ;;  %v3149_v32 = vmax.f32 %v3133_v23, 0.0  ;;  %v2772_v34 = vadd.f32 %v2745_v19, %v2362_v58  ;;  %v2338_v42 = vpop.f32.mrf.mxu1  ;;  %v3642_v23 = vrot.slane %v3641_v2, 4  ;;  %v4271_v58 = vor.u32 %v4270_v3, %v4267_v62  ;;  %v7033_v62 = vld [vmem:[%s7742_s9 + $0x10] sm:$0xf] }
 0x18b   : > { %v2363_v59 = vadd.f32 %v2338_v42, %v2037_v28  ;;  %v4609_v29 = vrot.slane %v4607_v5, 5  ;;  %v4619_v42 = vrot.slane %v4617_v60, 4  ;;  %v5321_v2 = vshll.u32 %v7097_v11, 16 }
 0x18c   : > { %6678 = vst [vmem:[%s8085_s27 + $0xc0] sm:$0xff] %v3149_v32  ;;  %v3070_v47 = vadd.f32 %v3043_v25, %v2772_v34  ;;  %3368 = vmatmul.bf16.gmra.mxu0 %v7324_v6  ;;  %v3687_v25 = vpack.c.b16 %v8639_v16, %v8632_v63  ;;  %v7383_v6 = vld [vmem:[#allocation3 + $0x380] sm:$0xff]  ;;  %v4318_v32 = vunpack.c.l.b16 %v4263_v33  ;;  %v6978_v34 = vld [vmem:[%s7742_s9 + $0x14] sm:$0x1]  ;;  %v3647_v45 = vsel %vm7754_vm2, %v3642_v23, %v3646_v57 }
 0x18d   : > { %3778 = vmatmul.bf16.gmra.mxu1 %v3686_v18  ;;  %v4613_v18 = vshll.u32 %v6977_v8, 16  ;;  %5607 = vmatpush.bf16.msrb.mxu2 %v7383_v6  ;;  %v4272_v46 = vrot.slane %v4271_v58, 4  ;;  %v4610_v27 = vor.u32 %v4609_v29, %v4606_v7  ;;  %v4623_v17 = vshll.u32 %v6978_v34, 16  ;;  %v7349_v33 = vld [vmem:[%s7742_s9 + $0x60] sm:$0xff]  ;;  %v7034_v23 = vld [vmem:[%s7742_s9 + $0x14] sm:$0x1] }
 0x18e   : > { %v3118_v56 = vmul.f32 %v8581_v31, %v3070_v47  ;;  %4008 = vmatmul.bf16.gmra.mxu2 %v7348_v21  ;;  %v4282_v47 = vrot.slane %v4281_v9, 4  ;;  %v4327_v52 = vpack.c.b16 %v4318_v32, %v4317_v20  ;;  %v5325_v3 = vshrl.u32 %v7097_v11, 16 }
 0x18f   : > { %4418 = vmatmul.bf16.gmra.mxu3 %v4326_v12  ;;  %v8655_v28 = vrot.slane %v4613_v18, 5  ;;  %v5314_v43 = vrot.slane %v5312_v36, 4  ;;  %v5317_v8 = vrot.slane %v5315_v35, 5  ;;  %v4277_v10 = vsel %vm7754_vm2, %v4272_v46, %v8636_v1  ;;  %v7098_v18 = vld [vmem:[%s7742_s9 + $0x20] sm:$0x1] }
 0x190   : > { %v3134_v53 = vadd.f32 %v8597_v30, %v3118_v56  ;;  %v7367_v56 = vld [vmem:[#allocation3 + $0x300] sm:$0xff]  ;;  %v4287_v5 = vsel %vm7754_vm2, %v4282_v47, %v4286_v13  ;;  %v4625_v57 = vrot.slane %v4623_v17, 5  ;;  %v7056_v1 = vrot.slane %v7032_v38, 9  ;;  %v6979_v46 = vld [vmem:[%s7742_s9 + $0x18] sm:$0xf] }
 0x191   : > { %v2748_v14 = vpop.f32.mrf.mxu2  ;;  %v2039_v22 = vpop.f32.mrf.mxu0  ;;  %v4620_v0 = vor.u32 %v4619_v42, %v8655_v28  ;;  %4899 = vmatpush.bf16.msrb.mxu0 %v7367_v56  ;;  %v5327_v58 = vrot.slane %v5325_v3, 4  ;;  %v5318_v24 = vor.u32 %v5317_v8, %v5314_v43  ;;  %v5331_v26 = vshll.u32 %v7098_v18, 16  ;;  %v7154_v42 = vld [vmem:[%s7742_s9 + $0x20] sm:$0x1] }
 0x192   : > { %v3046_v15 = vpop.f32.mrf.mxu3  ;;  %v3150_v12 = vmax.f32 %v3134_v53, 0.0  ;;  %v2773_v61 = vadd.f32 %v2748_v14, %v2363_v59  ;;  %v2340_v54 = vpop.f32.mrf.mxu1  ;;  %v7375_v59 = vld [vmem:[#allocation3 + $0x340] sm:$0xff]  ;;  %v8670_v14 = vunpack.c.l.b16 %v3637_v55  ;;  %v8691_v20 = vunpack.c.l.b16 %v4277_v10 }
 0x193   : > { %v2364_v48 = vadd.f32 %v2340_v54, %v2039_v22  ;;  %5197 = vmatpush.bf16.msrb.mxu1 %v7375_v59  ;;  %v8681_v22 = vrot.slane %v5321_v2, 5  ;;  %v7153_v54 = vld [vmem:[%s7742_s9 + $0x1c] sm:$0xf]  ;;  %v4621_v51 = vrot.slane %v4620_v0, 4  ;;  %v8693_v32 = vunpack.c.l.b16 %v4287_v5 }
 0x194   : > { %6679 = vst [vmem:[%s8085_s27 + $0xc8] sm:$0xff] %v3150_v12  ;;  %v3071_v19 = vadd.f32 %v3046_v15, %v2773_v61  ;;  %v8672_v15 = vunpack.c.l.b16 %v3647_v45  ;;  %v4611_v12 = vrot.slane %v4610_v27, 4  ;;  %v5039_v61 = vrot.slane %v7033_v62, 5 }
 0x195   : > { %v5328_v6 = vor.u32 %v5327_v58, %v8681_v22  ;;  %v5747_v7 = vrot.slane %v7153_v54, 5  ;;  %v5042_v34 = vrot.slane %v7034_v23, 5  ;;  %v4626_v36 = vsel %vm7754_vm2, %v4621_v51, %v4625_v57  ;;  %v7326_v23 = vld [vmem:[%s7742_s9 + $0x60] sm:$0xff] }
 0x196   : > { %v3119_v21 = vmul.f32 %v8581_v31, %v3071_v19  ;;  %v3688_v19 = vpack.c.b16 %v8672_v15, %v8670_v14  ;;  %v4616_v11 = vsel %vm7754_vm2, %v4611_v12, %v8655_v28  ;;  %v8703_v35 = vsel %vm7936_vm5, %v7056_v1, %v5039_v61 }
 0x197   : > { %v5041_v45 = vrot.slane %v5039_v61, 4  ;;  %v5329_v17 = vrot.slane %v5328_v6, 4  ;;  %v5749_v28 = vrot.slane %v5747_v7, 4  ;;  %v4328_v59 = vpack.c.b16 %v8693_v32, %v8691_v20  ;;  %v7350_v20 = vld [vmem:[%s7742_s9 + $0x6c] sm:$0xff] }
 0x198   : > { %v3135_v41 = vadd.f32 %v8597_v30, %v3119_v21  ;;  %v4628_v0 = vshrl.u32 %v6979_v46, 16  ;;  %v4631_v62 = vshll.u32 %v6979_v46, 16  ;;  %v8710_v2 = vunpack.c.l.b16 %v4616_v11  ;;  %v7037_v46 = vld [vmem:[%s7742_s9 + $0x20] sm:$0x1] }
 0x199   : > { %v2750_v44 = vpop.f32.mrf.mxu2  ;;  %v2042_v16 = vpop.f32.mrf.mxu0  ;;  %v8712_v3 = vunpack.c.l.b16 %v4626_v36 }
 0x19a   : > { %v3048_v63 = vpop.f32.mrf.mxu3  ;;  %v3151_v4 = vmax.f32 %v3135_v41, 0.0  ;;  %v2774_v53 = vadd.f32 %v2750_v44, %v2364_v48  ;;  %v2343_v39 = vpop.f32.mrf.mxu1  ;;  %v5333_v44 = vrot.slane %v5331_v26, 5  ;;  %v4630_v12 = vrot.slane %v4628_v0, 4 }
 0x19b   : > { %v2365_v40 = vadd.f32 %v2343_v39, %v2042_v16  ;;  %v7099_v16 = vld [vmem:[%s7742_s9 + $0x24] sm:$0xf]  ;;  %v4633_v61 = vrot.slane %v4631_v62, 5  ;;  %v4828_v1 = vpack.c.b16 %v8712_v3, %v8710_v2 }
 0x19c   : > { %6680 = vst [vmem:[%s8085_s27 + $0xd0] sm:$0xff] %v3151_v4  ;;  %v3072_v60 = vadd.f32 %v3048_v63, %v2774_v53  ;;  %3373 = vmatmul.bf16.gmra.mxu0 %v7325_v49  ;;  %v5319_v49 = vrot.slane %v5318_v24, 4  ;;  %v5750_v63 = vrot.slane %v7154_v42, 5  ;;  %v5043_v4 = vsel %vm7936_vm5, %v5041_v45, %v5042_v34  ;;  %v7100_v24 = vld [vmem:[%s7742_s9 + $0x28] sm:$0xf] }
 0x19d   : > { %3783 = vmatmul.bf16.gmra.mxu1 %v3687_v25  ;;  %v7152_v25 = vld [vmem:[%s7742_s9 + $0x18] sm:$0xe]  ;;  %v5110_v53 = vunpack.c.l.b16 %v8703_v35  ;;  %v5334_v10 = vsel %vm7754_vm2, %v5329_v17, %v5333_v44  ;;  %v5336_v54 = vshrl.u32 %v7099_v16, 16  ;;  %v5111_v58 = vunpack.c.l.b16 %v5043_v4  ;;  %v7038_v3 = vld [vmem:[%s7742_s9 + $0x24] sm:$0xe] }
 0x19e   : > { %v3120_v9 = vmul.f32 %v8581_v31, %v3072_v60  ;;  %4013 = vmatmul.bf16.gmra.mxu2 %v7349_v33  ;;  %v7176_v27 = vrot.slane %v7152_v25, 9  ;;  %v5324_v33 = vsel %vm7754_vm2, %v5319_v49, %v8681_v22  ;;  %v5751_v18 = vsel %vm7936_vm5, %v5749_v28, %v5750_v63  ;;  %v7036_v22 = vld [vmem:[%s7742_s9 + $0x1c] sm:$0xf]  ;;  %v7035_v42 = vld [vmem:[%s7742_s9 + $0x18] sm:$0xe] }
 0x19f   : > { %4423 = vmatmul.bf16.gmra.mxu3 %v4327_v52  ;;  %v6980_v52 = vld [vmem:[%s7742_s9 + $0x1c] sm:$0xf]  ;;  %v5339_v6 = vshll.u32 %v7099_v16, 16  ;;  %v5819_v11 = vunpack.c.l.b16 %v5751_v18  ;;  %v5046_v36 = vrot.slane %v7036_v22, 5  ;;  %v4634_v45 = vor.u32 %v4633_v61, %v4630_v12  ;;  %v6982_v16 = vld [vmem:[%s7742_s9 + $0x24] sm:$0xf] }
 0x1a0   : > { %v3136_v29 = vadd.f32 %v8597_v30, %v3120_v9  ;;  %v4637_v38 = vshll.u32 %v6980_v52, 16  ;;  %v4641_v43 = vshrl.u32 %v6980_v52, 16  ;;  %v5748_v5 = vsel %vm7936_vm5, %v7176_v27, %v5747_v7 }
 0x1a1   : > { %v2753_v21 = vpop.f32.mrf.mxu2  ;;  %v2044_v41 = vpop.f32.mrf.mxu0  ;;  %v8733_v9 = vunpack.c.l.b16 %v5324_v33  ;;  %v5345_v49 = vshll.u32 %v7100_v24, 16  ;;  %v5349_v27 = vshrl.u32 %v7100_v24, 16  ;;  %v5048_v63 = vrot.slane %v5046_v36, 4 }
 0x1a2   : > { %v3051_v55 = vpop.f32.mrf.mxu3  ;;  %v3152_v47 = vmax.f32 %v3136_v29, 0.0  ;;  %v2775_v13 = vadd.f32 %v2753_v21, %v2365_v40  ;;  %v2345_v48 = vpop.f32.mrf.mxu1  ;;  %v6981_v40 = vld [vmem:[%s7742_s9 + $0x20] sm:$0x1]  ;;  %v8738_v32 = vrot.slane %v4637_v38, 5  ;;  %v4643_v34 = vrot.slane %v4641_v43, 4 }
 0x1a3   : > { %v2366_v8 = vadd.f32 %v2345_v48, %v2044_v41  ;;  %v8741_v21 = vunpack.c.l.b16 %v5334_v10  ;;  %v4647_v41 = vshll.u32 %v6981_v40, 16  ;;  %v7057_v48 = vrot.slane %v7035_v42, 9  ;;  %v7155_v10 = vld [vmem:[%s7742_s9 + $0x24] sm:$0xe] }
 0x1a4   : > { %6681 = vst [vmem:[%s8085_s27 + $0xd8] sm:$0xff] %v3152_v47  ;;  %v3073_v56 = vadd.f32 %v3051_v55, %v2775_v13  ;;  %v5818_v55 = vunpack.c.l.b16 %v5748_v5  ;;  %v5338_v47 = vrot.slane %v5336_v54, 4  ;;  %v5341_v13 = vrot.slane %v5339_v6, 5  ;;  %v7156_v5 = vld [vmem:[%s7742_s9 + $0x28] sm:$0xf] }
 0x1a5   : > { %v4644_v28 = vor.u32 %v4643_v34, %v8738_v32  ;;  %v5049_v52 = vrot.slane %v7037_v46, 5  ;;  %v8751_v0 = vrot.slane %v5345_v49, 5  ;;  %v5351_v14 = vrot.slane %v5349_v27, 4  ;;  %v6983_v54 = vld [vmem:[%s7742_s9 + $0x28] sm:$0xf] }
 0x1a6   : > { %v3121_v39 = vmul.f32 %v8581_v31, %v3073_v56  ;;  %v7101_v56 = vld [vmem:[%s7742_s9 + $0x2c] sm:$0x1]  ;;  %v4635_v62 = vrot.slane %v4634_v45, 4  ;;  %v5342_v4 = vor.u32 %v5341_v13, %v5338_v47  ;;  %v5536_v33 = vpack.c.b16 %v8741_v21, %v8733_v9  ;;  %v7102_v49 = vld [vmem:[%s7742_s9 + $0x30] sm:$0xf] }
 0x1a7   : > { %v8759_v38 = vpack.c.b16 %v5819_v11, %v5818_v55  ;;  %v4649_v43 = vrot.slane %v4647_v41, 5  ;;  %v4645_v61 = vrot.slane %v4644_v28, 4  ;;  %v5355_v22 = vshll.u32 %v7101_v56, 16 }
 0x1a8   : > { %v3137_v60 = vadd.f32 %v8597_v30, %v3121_v39  ;;  %v4640_v24 = vsel %vm7754_vm2, %v4635_v62, %v8738_v32  ;;  %v5343_v6 = vrot.slane %v5342_v4, 4  ;;  %v4665_v34 = vshrl.u32 %v6983_v54, 16 }
 0x1a9   : > { %v2755_v51 = vpop.f32.mrf.mxu2  ;;  %v2047_v7 = vpop.f32.mrf.mxu0  ;;  %v4650_v55 = vsel %vm7754_vm2, %v4645_v61, %v4649_v43 }
 0x1aa   : > { %v3053_v57 = vpop.f32.mrf.mxu3  ;;  %v3153_v26 = vmax.f32 %v3137_v60, 0.0  ;;  %v2776_v25 = vadd.f32 %v2755_v51, %v2366_v8  ;;  %v2348_v29 = vpop.f32.mrf.mxu1  ;;  %v5047_v8 = vsel %vm7936_vm5, %v7057_v48, %v5046_v36  ;;  %v5050_v51 = vsel %vm7936_vm5, %v5048_v63, %v5049_v52  ;;  %v6984_v63 = vld [vmem:[%s7742_s9 + $0x2c] sm:$0x1] }
 0x1ab   : > { %v2367_v44 = vadd.f32 %v2348_v29, %v2047_v7  ;;  %v5112_v7 = vunpack.c.l.b16 %v5047_v8  ;;  %v7177_v29 = vrot.slane %v7155_v10, 9  ;;  %v5113_v11 = vunpack.c.l.b16 %v5050_v51  ;;  %v7039_v10 = vld [vmem:[%s7742_s9 + $0x28] sm:$0xf] }
 0x1ac   : > { %6682 = vst [vmem:[%s8085_s27 + $0xe0] sm:$0xff] %v3153_v26  ;;  %v3074_v35 = vadd.f32 %v3053_v57, %v2776_v25  ;;  %3378 = vmatmul.bf16.gmra.mxu0 %v7326_v23  ;;  %v5352_v57 = vor.u32 %v5351_v14, %v8751_v0  ;;  %v4652_v23 = vshrl.u32 %v6982_v16, 16  ;;  %v7157_v26 = vld [vmem:[%s7742_s9 + $0x2c] sm:$0x1]  ;;  %v5754_v25 = vrot.slane %v7156_v5, 5 }
 0x1ad   : > { %3788 = vmatmul.bf16.gmra.mxu1 %v3688_v19  ;;  %v8754_v19 = vpack.c.b16 %v5111_v58, %v5110_v53  ;;  %v4655_v58 = vshll.u32 %v6982_v16, 16  ;;  %v5357_v36 = vrot.slane %v5355_v22, 5  ;;  %v5757_v45 = vrot.slane %v7157_v26, 5 }
 0x1ae   : > { %v3122_v17 = vmul.f32 %v8581_v31, %v3074_v35  ;;  %4018 = vmatmul.bf16.gmra.mxu2 %v7350_v20  ;;  %v4661_v20 = vshll.u32 %v6983_v54, 16  ;;  %v5353_v35 = vrot.slane %v5352_v57, 4  ;;  %v4654_v46 = vrot.slane %v4652_v23, 4 }
 0x1af   : > { %4428 = vmatmul.bf16.gmra.mxu3 %v4328_v59  ;;  %v4657_v32 = vrot.slane %v4655_v58, 5  ;;  %v5348_v41 = vsel %vm7754_vm2, %v5343_v6, %v8751_v0  ;;  %v5756_v48 = vrot.slane %v5754_v25, 4  ;;  %v5755_v28 = vsel %vm7936_vm5, %v7177_v29, %v5754_v25 }
 0x1b0   : > { %v3138_v15 = vadd.f32 %v8597_v30, %v3122_v17  ;;  %v8787_v52 = vrot.slane %v4661_v20, 5  ;;  %v4667_v56 = vrot.slane %v4665_v34, 4  ;;  %v8789_v4 = vunpack.c.l.b16 %v4650_v55 }
 0x1b1   : > { %v2758_v39 = vpop.f32.mrf.mxu2  ;;  %v2049_v60 = vpop.f32.mrf.mxu0  ;;  %v8791_v16 = vpack.c.b16 %v5113_v11, %v5112_v7  ;;  %v8796_v43 = vunpack.c.l.b16 %v5348_v41  ;;  %v4658_v8 = vor.u32 %v4657_v32, %v4654_v46  ;;  %v5360_v5 = vshrl.u32 %v7102_v49, 16  ;;  %v7159_v11 = vld [vmem:[%s7742_s9 + $0x34] sm:$0xf] }
 0x1b2   : > { %v3056_v59 = vpop.f32.mrf.mxu3  ;;  %v3154_v53 = vmax.f32 %v3138_v15, 0.0  ;;  %v2777_v18 = vadd.f32 %v2758_v39, %v2367_v44  ;;  %v2350_v12 = vpop.f32.mrf.mxu1  ;;  %v8782_v44 = vunpack.c.l.b16 %v4640_v24  ;;  %v7103_v39 = vld [vmem:[%s7742_s9 + $0x34] sm:$0xf]  ;;  %v4668_v61 = vor.u32 %v4667_v56, %v8787_v52  ;;  %v7104_v24 = vld [vmem:[%s7742_s9 + $0x38] sm:$0x1] }
 0x1b3   : > { %v2368_v13 = vadd.f32 %v2350_v12, %v2049_v60  ;;  %v5820_v60 = vunpack.c.l.b16 %v5755_v28  ;;  %v4671_v12 = vshll.u32 %v6984_v63, 16  ;;  %v5363_v22 = vshll.u32 %v7102_v49, 16  ;;  %v7160_v56 = vld [vmem:[%s7742_s9 + $0x38] sm:$0x1] }
 0x1b4   : > { %6683 = vst [vmem:[%s8085_s27 + $0xe8] sm:$0xff] %v3154_v53  ;;  %v3075_v40 = vadd.f32 %v3056_v59, %v2777_v18  ;;  %v5358_v59 = vsel %vm7754_vm2, %v5353_v35, %v5357_v36  ;;  %v5758_v18 = vsel %vm7936_vm5, %v5756_v48, %v5757_v45  ;;  %v5369_v54 = vshll.u32 %v7103_v39, 16 }
 0x1b5   : > { %v5373_v51 = vshrl.u32 %v7103_v39, 16  ;;  %v8812_v2 = vunpack.c.l.b16 %v5358_v59  ;;  %v5821_v58 = vunpack.c.l.b16 %v5758_v18  ;;  %v5362_v6 = vrot.slane %v5360_v5, 4 }
 0x1b6   : > { %v3123_v42 = vmul.f32 %v8581_v31, %v3075_v40  ;;  %v4659_v40 = vrot.slane %v4658_v8, 4  ;;  %v5365_v26 = vrot.slane %v5363_v22, 5  ;;  %v4829_v9 = vpack.c.b16 %v8789_v4, %v8782_v44 }
 0x1b7   : > { %v8820_v21 = vrot.slane %v5369_v54, 5  ;;  %v4669_v20 = vrot.slane %v4668_v61, 4  ;;  %v4673_v34 = vrot.slane %v4671_v12, 5  ;;  %v5537_v41 = vpack.c.b16 %v8812_v2, %v8796_v43 }
 0x1b8   : > { %v3139_v47 = vadd.f32 %v8597_v30, %v3123_v42  ;;  %v7058_v42 = vrot.slane %v7038_v3, 9  ;;  %v5835_v48 = vpack.c.b16 %v5821_v58, %v5820_v60  ;;  %v4664_v49 = vsel %vm7754_vm2, %v4659_v40, %v8787_v52  ;;  %v6987_v3 = vld [vmem:[%s7742_s9 + $0x38] sm:$0x1]  ;;  %v7105_v58 = vld [vmem:[%s7742_s9 + $0x3c] sm:$0xf] }
 0x1b9   : > { %v2760_v27 = vpop.f32.mrf.mxu2  ;;  %v3344_v62 = vpop.f32.mrf.mxu0  ;;  %v5764_v18 = vrot.slane %v7160_v56, 5 }
 0x1ba   : > { %v3058_v17 = vpop.f32.mrf.mxu3  ;;  %v3155_v14 = vmax.f32 %v3139_v47, 0.0  ;;  %v2778_v15 = vadd.f32 %v2760_v27, %v2368_v13  ;;  %v3754_v0 = vpop.f32.mrf.mxu1  ;;  %v5379_v47 = vshll.u32 %v7104_v24, 16  ;;  %v6985_v13 = vld [vmem:[%s7742_s9 + $0x30] sm:$0xf]  ;;  %v5366_v27 = vor.u32 %v5365_v26, %v5362_v6 }
 0x1bb   : > { %v3794_v23 = vadd.f32 %v3754_v0, %v3344_v62  ;;  %v4674_v62 = vsel %vm7754_vm2, %v4669_v20, %v4673_v34  ;;  %v4676_v39 = vshrl.u32 %v6985_v13, 16  ;;  %v4679_v59 = vshll.u32 %v6985_v13, 16 }
 0x1bc   : > { %6684 = vst [vmem:[%s8085_s27 + $0xf0] sm:$0xff] %v3155_v14  ;;  %v3076_v53 = vadd.f32 %v3058_v17, %v2778_v15  ;;  %4900 = vmatmul.bf16.vlgmr.msrb.gmra.mxu0 %v4828_v1  ;;  %v7040_v1 = vld [vmem:[%s7742_s9 + $0x2c] sm:$0x1]  ;;  %v6986_v17 = vld [vmem:[%s7742_s9 + $0x34] sm:$0xf]  ;;  %v5761_v15 = vrot.slane %v7159_v11, 5 }
 0x1bd   : > { %5198 = vmatmul.bf16.vlgmr.msrb.gmra.mxu1 %v8754_v19  ;;  %v5053_v19 = vrot.slane %v7039_v10, 5  ;;  %v5056_v55 = vrot.slane %v7040_v1, 5  ;;  %v5381_v8 = vrot.slane %v5379_v47, 5  ;;  %v4685_v10 = vshll.u32 %v6986_v17, 16 }
 0x1be   : > { %v3124_v57 = vmul.f32 %v8581_v31, %v3076_v53  ;;  %5608 = vmatmul.bf16.vlgmr.msrb.gmra.mxu2 %v5536_v33  ;;  %v5375_v33 = vrot.slane %v5373_v51, 4  ;;  %v5367_v53 = vrot.slane %v5366_v27, 4  ;;  %v4689_v60 = vshrl.u32 %v6986_v17, 16  ;;  %v7043_v17 = vld [vmem:[%s7742_s9 + $0x38] sm:$0x1] }
 0x1bf   : > { %5906 = vmatmul.bf16.vlgmr.msrb.gmra.mxu3 %v8759_v38  ;;  %v7158_v38 = vld [vmem:[%s7742_s9 + $0x30] sm:$0xe]  ;;  %v5055_v32 = vrot.slane %v5053_v19, 4  ;;  %v8838_v0 = vsel %vm7936_vm5, %v7058_v42, %v5053_v19  ;;  %v5763_v54 = vrot.slane %v5761_v15, 4  ;;  %v4678_v1 = vrot.slane %v4676_v39, 4 }
 0x1c0   : > { %v3140_v25 = vadd.f32 %v8597_v30, %v3124_v57  ;;  %v5376_v63 = vor.u32 %v5375_v33, %v8820_v21  ;;  %v7178_v14 = vrot.slane %v7158_v38, 9  ;;  %v5114_v2 = vunpack.c.l.b16 %v8838_v0  ;;  %v7041_v38 = vld [vmem:[%s7742_s9 + $0x30] sm:$0xe]  ;;  %v7042_v42 = vld [vmem:[%s7742_s9 + $0x34] sm:$0xf] }
 0x1c1   : > { %v3984_v7 = vpop.f32.mrf.mxu2  ;;  %v3346_v45 = vpop.f32.mrf.mxu0  ;;  %v8843_v43 = vsel %vm7936_vm5, %v5055_v32, %v5056_v55  ;;  %v4681_v19 = vrot.slane %v4679_v59, 5  ;;  %v4691_v33 = vrot.slane %v4689_v60, 4  ;;  %v5372_v20 = vsel %vm7754_vm2, %v5367_v53, %v8820_v21 }
 0x1c2   : > { %v4394_v29 = vpop.f32.mrf.mxu3  ;;  %v3156_v36 = vmax.f32 %v3140_v25, 0.0  ;;  %v4024_v35 = vadd.f32 %v3984_v7, %v3794_v23  ;;  %v3756_v46 = vpop.f32.mrf.mxu1  ;;  %v5377_v61 = vrot.slane %v5376_v63, 4  ;;  %v8848_v22 = vsel %vm7936_vm5, %v7178_v14, %v5761_v15 }
 0x1c3   : > { %v3795_v5 = vadd.f32 %v3756_v46, %v3346_v45  ;;  %v8850_v23 = vunpack.c.l.b16 %v4664_v49  ;;  %v8855_v25 = vrot.slane %v4685_v10, 5  ;;  %v8858_v7 = vunpack.c.l.b16 %v4674_v62 }
 0x1c4   : > { %6685 = vst [vmem:[%s8085_s27 + $0xf8] sm:$0xff] %v3156_v36  ;;  %v4434_v28 = vadd.f32 %v4394_v29, %v4024_v35  ;;  %v5115_v29 = vunpack.c.l.b16 %v8843_v43  ;;  %v5822_v34 = vunpack.c.l.b16 %v8848_v22  ;;  %v5382_v11 = vsel %vm7754_vm2, %v5377_v61, %v5381_v8  ;;  %v7106_v35 = vld [vmem:[%s7742_s9 + $0x40] sm:$0xf] }
 0x1c5   : > { %v5765_v36 = vsel %vm7936_vm5, %v5763_v54, %v5764_v18  ;;  %v5384_v45 = vshrl.u32 %v7105_v58, 16  ;;  %v4682_v21 = vor.u32 %v4681_v19, %v4678_v1  ;;  %v4695_v46 = vshll.u32 %v6987_v3, 16  ;;  %v7161_v3 = vld [vmem:[%s7742_s9 + $0x3c] sm:$0xe] }
 0x1c6   : > { %v4482_v52 = vmul.f32 %v8581_v31, %v4434_v28  ;;  %v7059_v32 = vrot.slane %v7041_v38, 9  ;;  %v5387_v47 = vshll.u32 %v7105_v58, 16  ;;  %v4692_v27 = vor.u32 %v4691_v33, %v8855_v25  ;;  %v6989_v33 = vld [vmem:[%s7742_s9 + $0x40] sm:$0xf] }
 0x1c7   : > { %v5060_v28 = vrot.slane %v7042_v42, 5  ;;  %v8879_v63 = vunpack.c.l.b16 %v5372_v20  ;;  %v8881_v56 = vunpack.c.l.b16 %v5382_v11  ;;  %v5823_v44 = vunpack.c.l.b16 %v5765_v36  ;;  %v7163_v20 = vld [vmem:[%s7742_s9 + $0x44] sm:$0x1] }
 0x1c8   : > { %v4498_v12 = vadd.f32 %v8597_v30, %v4482_v52  ;;  %v5393_v4 = vshll.u32 %v7106_v35, 16  ;;  %v5389_v14 = vrot.slane %v5387_v47, 5  ;;  %v5397_v15 = vshrl.u32 %v7106_v35, 16 }
 0x1c9   : > { %v3986_v51 = vpop.f32.mrf.mxu2  ;;  %v3349_v6 = vpop.f32.mrf.mxu0  ;;  %v4697_v0 = vrot.slane %v4695_v46, 5  ;;  %v8886_v39 = vsel %vm7936_vm5, %v7059_v32, %v5060_v28  ;;  %v5063_v59 = vrot.slane %v7043_v17, 5  ;;  %v5062_v53 = vrot.slane %v5060_v28, 4  ;;  %v7108_v17 = vld [vmem:[%s7742_s9 + $0x48] sm:$0xf] }
 0x1ca   : > { %v4396_v57 = vpop.f32.mrf.mxu3  ;;  %v4514_v40 = vmax.f32 %v4498_v12, 0.0  ;;  %v4025_v24 = vadd.f32 %v3986_v51, %v3795_v5  ;;  %v3759_v26 = vpop.f32.mrf.mxu1  ;;  %v4693_v5 = vrot.slane %v4692_v27, 4  ;;  %v8888_v18 = vrot.slane %v5393_v4, 5  ;;  %v7162_v12 = vld [vmem:[%s7742_s9 + $0x40] sm:$0xf] }
 0x1cb   : > { %v3796_v49 = vadd.f32 %v3759_v26, %v3349_v6  ;;  %v5399_v60 = vrot.slane %v5397_v15, 4  ;;  %v4830_v22 = vpack.c.b16 %v8858_v7, %v8850_v23  ;;  %v5128_v54 = vpack.c.b16 %v5115_v29, %v5114_v2  ;;  %v7107_v51 = vld [vmem:[%s7742_s9 + $0x44] sm:$0x1]  ;;  %v7109_v15 = vld [vmem:[%s7742_s9 + $0x4c] sm:$0xf] }
 0x1cc   : > { %6960 = vst [vmem:[%s8085_s27 + $0x100] sm:$0xff] %v4514_v40  ;;  %v4435_v55 = vadd.f32 %v4396_v57, %v4025_v24  ;;  %4905 = vmatmul.bf16.gmra.mxu0 %v4829_v9  ;;  %v5386_v9 = vrot.slane %v5384_v45, 4  ;;  %v5538_v1 = vpack.c.b16 %v8881_v56, %v8879_v63  ;;  %v5836_v19 = vpack.c.b16 %v5823_v44, %v5822_v34  ;;  %v6988_v24 = vld [vmem:[%s7742_s9 + $0x3c] sm:$0xf] }
 0x1cd   : > { %5203 = vmatmul.bf16.gmra.mxu1 %v8791_v16  ;;  %v5116_v40 = vunpack.c.l.b16 %v8886_v39  ;;  %v4698_v23 = vsel %vm7754_vm2, %v4693_v5, %v4697_v0  ;;  %v8908_v2 = vsel %vm7936_vm5, %v5062_v53, %v5063_v59  ;;  %v5768_v26 = vrot.slane %v7162_v12, 5  ;;  %v7045_v53 = vld [vmem:[%s7742_s9 + $0x40] sm:$0xf] }
 0x1ce   : > { %v4483_v13 = vmul.f32 %v8581_v31, %v4435_v55  ;;  %5613 = vmatmul.bf16.gmra.mxu2 %v5537_v41  ;;  %v5390_v57 = vor.u32 %v5389_v14, %v5386_v9  ;;  %v5400_v7 = vor.u32 %v5399_v60, %v8888_v18  ;;  %v5403_v29 = vshll.u32 %v7107_v51, 16 }
 0x1cf   : > { %5911 = vmatmul.bf16.gmra.mxu3 %v5835_v48  ;;  %v4683_v48 = vrot.slane %v4682_v21, 4  ;;  %v4703_v55 = vshll.u32 %v6988_v24, 16  ;;  %v5117_v45 = vunpack.c.l.b16 %v8908_v2  ;;  %v4709_v21 = vshll.u32 %v6989_v33, 16 }
 0x1d0   : > { %v4499_v16 = vadd.f32 %v8597_v30, %v4483_v13  ;;  %v5391_v42 = vrot.slane %v5390_v57, 4  ;;  %v4713_v46 = vshrl.u32 %v6989_v33, 16  ;;  %v5771_v27 = vrot.slane %v7163_v20, 5  ;;  %v7046_v20 = vld [vmem:[%s7742_s9 + $0x44] sm:$0x1] }
 0x1d1   : > { %v3989_v62 = vpop.f32.mrf.mxu2  ;;  %v3351_v8 = vpop.f32.mrf.mxu0  ;;  %v4688_v58 = vsel %vm7754_vm2, %v4683_v48, %v8855_v25  ;;  %v7179_v25 = vrot.slane %v7161_v3, 9  ;;  %v8918_v28 = vunpack.c.l.b16 %v4698_v23  ;;  %v5401_v63 = vrot.slane %v5400_v7, 4  ;;  %v7044_v23 = vld [vmem:[%s7742_s9 + $0x3c] sm:$0xe] }
 0x1d2   : > { %v4399_v41 = vpop.f32.mrf.mxu3  ;;  %v4515_v52 = vmax.f32 %v4499_v16, 0.0  ;;  %v4026_v43 = vadd.f32 %v3989_v62, %v3796_v49  ;;  %v3761_v10 = vpop.f32.mrf.mxu1  ;;  %v8914_v35 = vunpack.c.l.b16 %v4688_v58  ;;  %v5405_v56 = vrot.slane %v5403_v29, 5  ;;  %v6990_v62 = vld [vmem:[%s7742_s9 + $0x44] sm:$0x1] }
 0x1d3   : > { %v3797_v38 = vadd.f32 %v3761_v10, %v3351_v8  ;;  %v8922_v44 = vsel %vm7936_vm5, %v7179_v25, %v5768_v26  ;;  %v5396_v16 = vsel %vm7754_vm2, %v5391_v42, %v8888_v18  ;;  %v4705_v14 = vrot.slane %v4703_v55, 5  ;;  %v7110_v25 = vld [vmem:[%s7742_s9 + $0x50] sm:$0x1] }
 0x1d4   : > { %6961 = vst [vmem:[%s8085_s27 + $0x108] sm:$0xff] %v4515_v52  ;;  %v4436_v61 = vadd.f32 %v4399_v41, %v4026_v43  ;;  %v8930_v41 = vrot.slane %v4709_v21, 5  ;;  %v4715_v48 = vrot.slane %v4713_v46, 4  ;;  %v5408_v0 = vshrl.u32 %v7108_v17, 16  ;;  %v8935_v52 = vld [vmem:[%s9269_s2] ss:$0 sm:$0xff] }
 0x1d5   : > { %v5411_v59 = vshll.u32 %v7108_v17, 16  ;;  %v5824_v5 = vunpack.c.l.b16 %v8922_v44  ;;  %v5406_v18 = vsel %vm7754_vm2, %v5401_v63, %v5405_v56  ;;  %v4719_v57 = vshll.u32 %v6990_v62, 16  ;;  %v7165_v21 = vld [vmem:[%s7742_s9 + $0x4c] sm:$0xf]  ;;  %v7166_v56 = vld [vmem:[%s7742_s9 + $0x50] sm:$0x1] }
 0x1d6   : > { %v4484_v6 = vmul.f32 %v8581_v31, %v4436_v61  ;;  %v4700_v31 = vshrl.u32 %v6988_v24, 16  ;;  %v5410_v60 = vrot.slane %v5408_v0, 4  ;;  %v5417_v61 = vshll.u32 %v7109_v15, 16 }
 0x1d7   : > { %v5413_v12 = vrot.slane %v5411_v59, 5  ;;  %v5421_v3 = vshrl.u32 %v7109_v15, 16  ;;  %v8950_v58 = vunpack.c.l.b16 %v5396_v16  ;;  %v5067_v2 = vrot.slane %v7045_v53, 5 }
 0x1d8   : > { %v4500_v34 = vadd.f32 %v8597_v30, %v4484_v6  ;;  %v5770_v30 = vrot.slane %v5768_v26, 4  ;;  %v4702_v9 = vrot.slane %v4700_v31, 4  ;;  %v4716_v6 = vor.u32 %v4715_v48, %v8930_v41 }
 0x1d9   : > { %v3991_v11 = vpop.f32.mrf.mxu2  ;;  %v3354_v13 = vpop.f32.mrf.mxu0  ;;  %v8954_v29 = vunpack.c.l.b16 %v5406_v18  ;;  %v4831_v42 = vpack.c.b16 %v8918_v28, %v8914_v35  ;;  %v5129_v31 = vpack.c.b16 %v5117_v45, %v5116_v40  ;;  %v8962_v55 = vrot.slane %v5417_v61, 5 }
 0x1da   : > { %v4401_v36 = vpop.f32.mrf.mxu3  ;;  %v4516_v32 = vmax.f32 %v4500_v34, 0.0  ;;  %v4027_v47 = vadd.f32 %v3991_v11, %v3797_v38  ;;  %v3764_v49 = vpop.f32.mrf.mxu1  ;;  %v5772_v10 = vsel %vm7936_vm5, %v5770_v30, %v5771_v27  ;;  %v4706_v51 = vor.u32 %v4705_v14, %v4702_v9 }
 0x1db   : > { %v3798_v8 = vadd.f32 %v3764_v49, %v3354_v13  ;;  %v5825_v24 = vunpack.c.l.b16 %v5772_v10  ;;  %v5414_v34 = vor.u32 %v5413_v12, %v5410_v60  ;;  %v5423_v11 = vrot.slane %v5421_v3, 4  ;;  %v6991_v49 = vld [vmem:[%s7742_s9 + $0x48] sm:$0xf] }
 0x1dc   : > { %6962 = vst [vmem:[%s8085_s27 + $0x110] sm:$0xff] %v4516_v32  ;;  %v4437_v4 = vadd.f32 %v4401_v36, %v4027_v47  ;;  %4910 = vmatmul.bf16.gmra.mxu0 %v4830_v22  ;;  %v8947_v22 = vld [vmem:[%s9270_s3] ss:$0 sm:$0xff]  ;;  %v7164_v36 = vld [vmem:[%s7742_s9 + $0x48] sm:$0xe]  ;;  %v4707_v32 = vrot.slane %v4706_v51, 4  ;;  %v5539_v39 = vpack.c.b16 %v8954_v29, %v8950_v58 }
 0x1dd   : > { %5208 = vmatmul.bf16.gmra.mxu1 %v5128_v54  ;;  %v4721_v47 = vrot.slane %v4719_v57, 5  ;;  %v7060_v13 = vrot.slane %v7044_v23, 9  ;;  %v4717_v30 = vrot.slane %v4716_v6, 4  ;;  %v5069_v27 = vrot.slane %v5067_v2, 4  ;;  %v7112_v29 = vld [vmem:[%s7742_s9 + $0x58] sm:$0xf] }
 0x1de   : > { %v4485_v43 = vmul.f32 %v8935_v52, %v4437_v4  ;;  %5618 = vmatmul.bf16.gmra.mxu2 %v5538_v1  ;;  %v5070_v17 = vrot.slane %v7046_v20, 5  ;;  %v5427_v63 = vshll.u32 %v7110_v25, 16  ;;  %v5837_v40 = vpack.c.b16 %v5825_v24, %v5824_v5  ;;  %v6992_v5 = vld [vmem:[%s7742_s9 + $0x4c] sm:$0xf] }
 0x1df   : > { %5916 = vmatmul.bf16.gmra.mxu3 %v5836_v19  ;;  %v5415_v45 = vrot.slane %v5414_v34, 4  ;;  %v5424_v28 = vor.u32 %v5423_v11, %v8962_v55  ;;  %v7180_v44 = vrot.slane %v7164_v36, 9  ;;  %v5775_v4 = vrot.slane %v7165_v21, 5  ;;  %v6993_v36 = vld [vmem:[%s7742_s9 + $0x50] sm:$0x1] }
 0x1e0   : > { %v4501_v54 = vadd.f32 %v8947_v22, %v4485_v43  ;;  %v4724_v16 = vshrl.u32 %v6991_v49, 16  ;;  %v4712_v15 = vsel %vm7754_vm2, %v4707_v32, %v8930_v41  ;;  %v4727_v62 = vshll.u32 %v6991_v49, 16 }
 0x1e1   : > { %v3994_v1 = vpop.f32.mrf.mxu2  ;;  %v3356_v38 = vpop.f32.mrf.mxu0  ;;  %v4722_v59 = vsel %vm7754_vm2, %v4717_v30, %v4721_v47  ;;  %v8981_v43 = vsel %vm7936_vm5, %v7060_v13, %v5067_v2  ;;  %v5429_v10 = vrot.slane %v5427_v63, 5  ;;  %v5420_v12 = vsel %vm7754_vm2, %v5415_v45, %v8962_v55 }
 0x1e2   : > { %v4404_v19 = vpop.f32.mrf.mxu3  ;;  %v4517_v26 = vmax.f32 %v4501_v54, 0.0  ;;  %v4028_v33 = vadd.f32 %v3994_v1, %v3798_v8  ;;  %v3766_v7 = vpop.f32.mrf.mxu1  ;;  %v8985_v8 = vsel %vm7936_vm5, %v5069_v27, %v5070_v17  ;;  %v5778_v61 = vrot.slane %v7166_v56, 5  ;;  %v7111_v1 = vld [vmem:[%s7742_s9 + $0x54] sm:$0xf]  ;;  %v7048_v56 = vld [vmem:[%s7742_s9 + $0x4c] sm:$0xf] }
 0x1e3   : > { %v3799_v14 = vadd.f32 %v3766_v7, %v3356_v38  ;;  %v5425_v54 = vrot.slane %v5424_v28, 4  ;;  %v5776_v51 = vsel %vm7936_vm5, %v7180_v44, %v5775_v4  ;;  %v5777_v57 = vrot.slane %v5775_v4, 4  ;;  %v7047_v4 = vld [vmem:[%s7742_s9 + $0x48] sm:$0xe] }
 0x1e4   : > { %6963 = vst [vmem:[%s8085_s27 + $0x118] sm:$0xff] %v4517_v26  ;;  %v4438_v46 = vadd.f32 %v4404_v19, %v4028_v33  ;;  %v4726_v3 = vrot.slane %v4724_v16, 4  ;;  %v4729_v58 = vrot.slane %v4727_v62, 5  ;;  %v4733_v24 = vshll.u32 %v6992_v5, 16 }
 0x1e5   : > { %v4737_v6 = vshrl.u32 %v6992_v5, 16  ;;  %v8995_v23 = vunpack.c.l.b16 %v4712_v15  ;;  %v8997_v2 = vunpack.c.l.b16 %v4722_v59  ;;  %v5118_v26 = vunpack.c.l.b16 %v8981_v43  ;;  %v7168_v5 = vld [vmem:[%s7742_s9 + $0x58] sm:$0xf] }
 0x1e6   : > { %v4486_v35 = vmul.f32 %v8935_v52, %v4438_v46  ;;  %v5119_v33 = vunpack.c.l.b16 %v8985_v8  ;;  %v5432_v20 = vshrl.u32 %v7111_v1, 16  ;;  %v5435_v25 = vshll.u32 %v7111_v1, 16 }
 0x1e7   : > { %v5430_v34 = vsel %vm7754_vm2, %v5425_v54, %v5429_v10  ;;  %v5826_v55 = vunpack.c.l.b16 %v5776_v51  ;;  %v4730_v21 = vor.u32 %v4729_v58, %v4726_v3  ;;  %v9011_v46 = vrot.slane %v4733_v24, 5  ;;  %v6994_v3 = vld [vmem:[%s7742_s9 + $0x54] sm:$0xf] }
 0x1e8   : > { %v4502_v9 = vadd.f32 %v8947_v22, %v4486_v35  ;;  %v4739_v32 = vrot.slane %v4737_v6, 4  ;;  %v5434_v49 = vrot.slane %v5432_v20, 4  ;;  %v5437_v30 = vrot.slane %v5435_v25, 5 }
 0x1e9   : > { %v3996_v48 = vpop.f32.mrf.mxu2  ;;  %v3359_v18 = vpop.f32.mrf.mxu0  ;;  %v5441_v27 = vshll.u32 %v7112_v29, 16  ;;  %v5445_v17 = vshrl.u32 %v7112_v29, 16  ;;  %v9013_v45 = vunpack.c.l.b16 %v5430_v34  ;;  %v4743_v44 = vshll.u32 %v6993_v36, 16 }
 0x1ea   : > { %v4406_v0 = vpop.f32.mrf.mxu3  ;;  %v4518_v53 = vmax.f32 %v4502_v9, 0.0  ;;  %v4029_v41 = vadd.f32 %v3996_v48, %v3799_v14  ;;  %v3769_v60 = vpop.f32.mrf.mxu1  ;;  %v4832_v15 = vpack.c.b16 %v8997_v2, %v8995_v23  ;;  %v4740_v62 = vor.u32 %v4739_v32, %v9011_v46  ;;  %v7049_v48 = vld [vmem:[%s7742_s9 + $0x50] sm:$0x1] }
 0x1eb   : > { %v3800_v7 = vadd.f32 %v3769_v60, %v3359_v18  ;;  %v9017_v16 = vrot.slane %v5441_v27, 5  ;;  %v5447_v9 = vrot.slane %v5445_v17, 4  ;;  %v5130_v59 = vpack.c.b16 %v5119_v33, %v5118_v26 }
 0x1ec   : > { %6964 = vst [vmem:[%s8085_s27 + $0x120] sm:$0xff] %v4518_v53  ;;  %v4439_v19 = vadd.f32 %v4406_v0, %v4029_v41  ;;  %4915 = vmatmul.bf16.gmra.mxu0 %v4831_v42  ;;  %v9005_v42 = vunpack.c.l.b16 %v5420_v12  ;;  %v7113_v0 = vld [vmem:[%s7742_s9 + $0x5c] sm:$0x1]  ;;  %v4731_v43 = vrot.slane %v4730_v21, 4  ;;  %v5074_v8 = vrot.slane %v7048_v56, 5 }
 0x1ed   : > { %5213 = vmatmul.bf16.gmra.mxu1 %v5129_v31  ;;  %v5779_v31 = vsel %vm7936_vm5, %v5777_v57, %v5778_v61  ;;  %v5438_v10 = vor.u32 %v5437_v30, %v5434_v49  ;;  %v7061_v60 = vrot.slane %v7047_v4, 9  ;;  %v7167_v12 = vld [vmem:[%s7742_s9 + $0x54] sm:$0xe]  ;;  %v4745_v61 = vrot.slane %v4743_v44, 5 }
 0x1ee   : > { %v4487_v38 = vmul.f32 %v8935_v52, %v4439_v19  ;;  %5623 = vmatmul.bf16.gmra.mxu2 %v5539_v39  ;;  %v5827_v28 = vunpack.c.l.b16 %v5779_v31  ;;  %v5540_v41 = vpack.c.b16 %v9013_v45, %v9005_v42  ;;  %v5077_v54 = vrot.slane %v7049_v48, 5 }
 0x1ef   : > { %5921 = vmatmul.bf16.gmra.mxu3 %v5837_v40  ;;  %v5448_v51 = vor.u32 %v5447_v9, %v9017_v16  ;;  %v5451_v57 = vshll.u32 %v7113_v0, 16  ;;  %v4741_v58 = vrot.slane %v4740_v62, 4  ;;  %v5782_v24 = vrot.slane %v7168_v5, 5 }
 0x1f0   : > { %v4503_v11 = vadd.f32 %v8947_v22, %v4487_v38  ;;  %v5838_v18 = vpack.c.b16 %v5827_v28, %v5826_v55  ;;  %v4736_v2 = vsel %vm7754_vm2, %v4731_v43, %v9011_v46  ;;  %v5076_v26 = vrot.slane %v5074_v8, 4  ;;  %v7169_v38 = vld [vmem:[%s7742_s9 + $0x5c] sm:$0x1] }
 0x1f1   : > { %v3999_v47 = vpop.f32.mrf.mxu2  ;;  %v3361_v39 = vpop.f32.mrf.mxu0  ;;  %v5439_v33 = vrot.slane %v5438_v10, 4  ;;  %v4748_v42 = vshrl.u32 %v6994_v3, 16  ;;  %v4751_v31 = vshll.u32 %v6994_v3, 16  ;;  %v5075_v55 = vsel %vm7936_vm5, %v7061_v60, %v5074_v8 }
 0x1f2   : > { %v4409_v13 = vpop.f32.mrf.mxu3  ;;  %v4519_v63 = vmax.f32 %v4503_v11, 0.0  ;;  %v4030_v35 = vadd.f32 %v3999_v47, %v3800_v7  ;;  %v3771_v40 = vpop.f32.mrf.mxu1  ;;  %v7181_v7 = vrot.slane %v7167_v12, 9  ;;  %v5449_v11 = vrot.slane %v5448_v51, 4  ;;  %v6996_v12 = vld [vmem:[%s7742_s9 + $0x5c] sm:$0x1] }
 0x1f3   : > { %v3801_v19 = vadd.f32 %v3771_v40, %v3361_v39  ;;  %v5453_v36 = vrot.slane %v5451_v57, 5  ;;  %v4746_v46 = vsel %vm7754_vm2, %v4741_v58, %v4745_v61  ;;  %v5784_v32 = vrot.slane %v5782_v24, 4 }
 0x1f4   : > { %6965 = vst [vmem:[%s8085_s27 + $0x128] sm:$0xff] %v4519_v63  ;;  %v4440_v14 = vadd.f32 %v4409_v13, %v4030_v35  ;;  %v5785_v47 = vrot.slane %v7169_v38, 5  ;;  %v6995_v13 = vld [vmem:[%s7742_s9 + $0x58] sm:$0xf]  ;;  %v9043_v49 = vunpack.c.l.b16 %v4736_v2  ;;  %v5078_v30 = vsel %vm7936_vm5, %v5076_v26, %v5077_v54  ;;  %v7114_v63 = vld [vmem:[%s7742_s9 + $0x60] sm:$0xf] }
 0x1f5   : > { %v5444_v27 = vsel %vm7754_vm2, %v5439_v33, %v9017_v16  ;;  %v5783_v17 = vsel %vm7936_vm5, %v7181_v7, %v5782_v24  ;;  %v4750_v40 = vrot.slane %v4748_v42, 4  ;;  %v4753_v45 = vrot.slane %v4751_v31, 5  ;;  %v7050_v54 = vld [vmem:[%s7742_s9 + $0x54] sm:$0xe] }
 0x1f6   : > { %v4488_v53 = vmul.f32 %v8935_v52, %v4440_v14  ;;  %v5120_v28 = vunpack.c.l.b16 %v5075_v55  ;;  %v5454_v56 = vsel %vm7754_vm2, %v5449_v11, %v5453_v36  ;;  %v4757_v44 = vshll.u32 %v6995_v13, 16  ;;  %v7115_v14 = vld [vmem:[%s7742_s9 + $0x64] sm:$0xf] }
 0x1f7   : > { %v4761_v4 = vshrl.u32 %v6995_v13, 16  ;;  %v5786_v16 = vsel %vm7936_vm5, %v5784_v32, %v5785_v47  ;;  %v5459_v62 = vshll.u32 %v7114_v63, 16  ;;  %v5121_v43 = vunpack.c.l.b16 %v5078_v30  ;;  %v7116_v32 = vld [vmem:[%s7742_s9 + $0x68] sm:$0x1]  ;;  %v7170_v13 = vld [vmem:[%s7742_s9 + $0x60] sm:$0xe] }
 0x1f8   : > { %v4504_v1 = vadd.f32 %v8947_v22, %v4488_v53  ;;  %v9060_v8 = vunpack.c.l.b16 %v5444_v27  ;;  %v5828_v10 = vunpack.c.l.b16 %v5783_v17  ;;  %v5531_v60 = vunpack.c.l.b16 %v5454_v56 }
 0x1f9   : > { %v4001_v6 = vpop.f32.mrf.mxu2  ;;  %v3364_v25 = vpop.f32.mrf.mxu0  ;;  %v4754_v61 = vor.u32 %v4753_v45, %v4750_v40  ;;  %v5829_v51 = vunpack.c.l.b16 %v5786_v16  ;;  %v4759_v57 = vrot.slane %v4757_v44, 5  ;;  %v4763_v3 = vrot.slane %v4761_v4, 4  ;;  %v7172_v4 = vld [vmem:[%s7742_s9 + $0x68] sm:$0x1] }
 0x1fa   : > { %v4411_v23 = vpop.f32.mrf.mxu3  ;;  %v4520_v29 = vmax.f32 %v4504_v1, 0.0  ;;  %v4031_v20 = vadd.f32 %v4001_v6, %v3801_v19  ;;  %v3774_v34 = vpop.f32.mrf.mxu1  ;;  %v7051_v1 = vld [vmem:[%s7742_s9 + $0x58] sm:$0xf]  ;;  %v5465_v19 = vshll.u32 %v7115_v14, 16  ;;  %v5461_v6 = vrot.slane %v5459_v62, 5 }
 0x1fb   : > { %v3802_v39 = vadd.f32 %v3774_v34, %v3364_v25  ;;  %v4767_v26 = vshll.u32 %v6996_v12, 16  ;;  %v7062_v33 = vrot.slane %v7050_v54, 9  ;;  %v5131_v7 = vpack.c.b16 %v5121_v43, %v5120_v28  ;;  %v7171_v34 = vld [vmem:[%s7742_s9 + $0x64] sm:$0xf] }
 0x1fc   : > { %6966 = vst [vmem:[%s8085_s27 + $0x130] sm:$0xff] %v4520_v29  ;;  %v4441_v21 = vadd.f32 %v4411_v23, %v4031_v20  ;;  %4920 = vmatmul.bf16.gmra.mxu0 %v4832_v15  ;;  %v5456_v15 = vshrl.u32 %v7114_v63, 16  ;;  %v5469_v23 = vshrl.u32 %v7115_v14, 16  ;;  %v4755_v29 = vrot.slane %v4754_v61, 4  ;;  %v7052_v20 = vld [vmem:[%s7742_s9 + $0x5c] sm:$0x1] }
 0x1fd   : > { %5218 = vmatmul.bf16.gmra.mxu1 %v5130_v59  ;;  %v4823_v59 = vunpack.c.l.b16 %v4746_v46  ;;  %v5081_v25 = vrot.slane %v7051_v1, 5  ;;  %v5541_v42 = vpack.c.b16 %v5531_v60, %v9060_v8  ;;  %v4764_v31 = vor.u32 %v4763_v3, %v4759_v57  ;;  %v6997_v8 = vld [vmem:[%s7742_s9 + $0x60] sm:$0xf] }
 0x1fe   : > { %v4489_v35 = vmul.f32 %v8935_v52, %v4441_v21  ;;  %5628 = vmatmul.bf16.gmra.mxu2 %v5540_v41  ;;  %v5458_v24 = vrot.slane %v5456_v15, 4  ;;  %v9071_v55 = vrot.slane %v5465_v19, 5  ;;  %v5471_v11 = vrot.slane %v5469_v23, 4 }
 0x1ff   : > { %5926 = vmatmul.bf16.gmra.mxu3 %v5838_v18  ;;  %v4833_v2 = vpack.c.b16 %v4823_v59, %v9043_v49  ;;  %v5839_v46 = vpack.c.b16 %v5829_v51, %v5828_v10  ;;  %v4769_v27 = vrot.slane %v4767_v26, 5  ;;  %v9078_v17 = vsel %vm7936_vm5, %v7062_v33, %v5081_v25  ;;  %v7117_v51 = vld [vmem:[%s7742_s9 + $0x6c] sm:$0xf]  ;;  %v7118_v33 = vld [vmem:[%s7742_s9 + $0x70] sm:$0xf] }
 0x200   : > { %v4505_v9 = vadd.f32 %v8947_v22, %v4489_v35  ;;  %v5462_v47 = vor.u32 %v5461_v6, %v5458_v24  ;;  %v5084_v63 = vrot.slane %v7052_v20, 5  ;;  %v5789_v35 = vrot.slane %v7171_v34, 5 }
 0x201   : > { %v4004_v48 = vpop.f32.mrf.mxu2  ;;  %v3366_v41 = vpop.f32.mrf.mxu0  ;;  %v4760_v56 = vsel %vm7754_vm2, %v4755_v29, %v4759_v57  ;;  %v5083_v44 = vrot.slane %v5081_v25, 4  ;;  %v5472_v16 = vor.u32 %v5471_v11, %v9071_v55  ;;  %v5475_v14 = vshll.u32 %v7116_v32, 16 }
 0x202   : > { %v4414_v0 = vpop.f32.mrf.mxu3  ;;  %v4521_v5 = vmax.f32 %v4505_v9, 0.0  ;;  %v4032_v53 = vadd.f32 %v4004_v48, %v3802_v39  ;;  %v3776_v18 = vpop.f32.mrf.mxu1  ;;  %v4765_v9 = vrot.slane %v4764_v31, 4  ;;  %v7182_v15 = vrot.slane %v7170_v13, 9 }
 0x203   : > { %v3803_v21 = vadd.f32 %v3776_v18, %v3366_v41  ;;  %v5463_v48 = vrot.slane %v5462_v47, 4  ;;  %v5791_v59 = vrot.slane %v5789_v35, 4  ;;  %v5792_v43 = vrot.slane %v7172_v4, 5  ;;  %v6998_v18 = vld [vmem:[%s7742_s9 + $0x64] sm:$0xf] }
 0x204   : > { %6967 = vst [vmem:[%s8085_s27 + $0x138] sm:$0xff] %v4521_v5  ;;  %v4442_v58 = vadd.f32 %v4414_v0, %v4032_v53  ;;  %v5122_v0 = vunpack.c.l.b16 %v9078_v17  ;;  %v9088_v53 = vunpack.c.l.b16 %v4760_v56  ;;  %v5085_v41 = vsel %vm7936_vm5, %v5083_v44, %v5084_v63  ;;  %v6999_v63 = vld [vmem:[%s7742_s9 + $0x68] sm:$0x1] }
 0x205   : > { %v4770_v60 = vsel %vm7754_vm2, %v4765_v9, %v4769_v27  ;;  %v5473_v12 = vrot.slane %v5472_v16, 4  ;;  %v5477_v61 = vrot.slane %v5475_v14, 5  ;;  %v5790_v54 = vsel %vm7936_vm5, %v7182_v15, %v5789_v35  ;;  %v7054_v35 = vld [vmem:[%s7742_s9 + $0x64] sm:$0xf]  ;;  %v7119_v14 = vld [vmem:[%s7742_s9 + $0x74] sm:$0x1] }
 0x206   : > { %v4490_v38 = vmul.f32 %v8935_v52, %v4442_v58  ;;  %v5468_v3 = vsel %vm7754_vm2, %v5463_v48, %v9071_v55  ;;  %v4772_v1 = vshrl.u32 %v6997_v8, 16  ;;  %v4775_v19 = vshll.u32 %v6997_v8, 16  ;;  %v7174_v15 = vld [vmem:[%s7742_s9 + $0x70] sm:$0xf]  ;;  %v7053_v8 = vld [vmem:[%s7742_s9 + $0x60] sm:$0xe] }
 0x207   : > { %v5123_v6 = vunpack.c.l.b16 %v5085_v41  ;;  %v5793_v23 = vsel %vm7936_vm5, %v5791_v59, %v5792_v43  ;;  %v4785_v26 = vshrl.u32 %v6998_v18, 16  ;;  %v5480_v25 = vshrl.u32 %v7117_v51, 16 }
 0x208   : > { %v4506_v36 = vadd.f32 %v8947_v22, %v4490_v38  ;;  %v5483_v34 = vshll.u32 %v7117_v51, 16  ;;  %v5478_v31 = vsel %vm7754_vm2, %v5473_v12, %v5477_v61  ;;  %v5532_v55 = vunpack.c.l.b16 %v5468_v3  ;;  %v7055_v12 = vld [vmem:[%s7742_s9 + $0x68] sm:$0x1] }
 0x209   : > { %v4006_v49 = vpop.f32.mrf.mxu2  ;;  %v3369_v45 = vpop.f32.mrf.mxu0  ;;  %v5830_v11 = vunpack.c.l.b16 %v5790_v54  ;;  %v5489_v32 = vshll.u32 %v7118_v33, 16  ;;  %v5831_v47 = vunpack.c.l.b16 %v5793_v23  ;;  %v5533_v17 = vunpack.c.l.b16 %v5478_v31 }
 0x20a   : > { %v4416_v30 = vpop.f32.mrf.mxu3  ;;  %v4522_v39 = vmax.f32 %v4506_v36, 0.0  ;;  %v4033_v40 = vadd.f32 %v4006_v49, %v3803_v21  ;;  %v3779_v28 = vpop.f32.mrf.mxu1  ;;  %v4774_v21 = vrot.slane %v4772_v1, 4  ;;  %v4787_v49 = vrot.slane %v4785_v26, 4 }
 0x20b   : > { %v3804_v5 = vadd.f32 %v3779_v28, %v3369_v45  ;;  %v5132_v45 = vpack.c.b16 %v5123_v6, %v5122_v0  ;;  %v9113_v28 = vrot.slane %v5489_v32, 5  ;;  %v5840_v59 = vpack.c.b16 %v5831_v47, %v5830_v11 }
 0x20c   : > { %6968 = vst [vmem:[%s8085_s27 + $0x140] sm:$0xff] %v4522_v39  ;;  %v4443_v62 = vadd.f32 %v4416_v30, %v4033_v40  ;;  %4925 = vmatmul.bf16.gmra.mxu0 %v4833_v2  ;;  %v4781_v2 = vshll.u32 %v6998_v18, 16  ;;  %v5493_v30 = vshrl.u32 %v7118_v33, 16  ;;  %v5482_v39 = vrot.slane %v5480_v25, 4 }
 0x20d   : > { %5223 = vmatmul.bf16.gmra.mxu1 %v5131_v7  ;;  %v5485_v40 = vrot.slane %v5483_v34, 5  ;;  %v4791_v0 = vshll.u32 %v6999_v63, 16  ;;  %v5499_v51 = vshll.u32 %v7119_v14, 16  ;;  %v5796_v3 = vrot.slane %v7174_v15, 5 }
 0x20e   : > { %v4491_v10 = vmul.f32 %v8935_v52, %v4443_v62  ;;  %5633 = vmatmul.bf16.gmra.mxu2 %v5541_v42  ;;  %v4825_v42 = vunpack.c.l.b16 %v4770_v60  ;;  %v9108_v13 = vrot.slane %v4781_v2, 5  ;;  %v5495_v56 = vrot.slane %v5493_v30, 4 }
 0x20f   : > { %5931 = vmatmul.bf16.gmra.mxu3 %v5839_v46  ;;  %v4777_v46 = vrot.slane %v4775_v19, 5  ;;  %v5486_v61 = vor.u32 %v5485_v40, %v5482_v39  ;;  %v4793_v23 = vrot.slane %v4791_v0, 5  ;;  %v5091_v26 = vrot.slane %v7055_v12, 5 }
 0x210   : > { %v4507_v57 = vadd.f32 %v8947_v22, %v4491_v10  ;;  %v4834_v9 = vpack.c.b16 %v4825_v42, %v9088_v53  ;;  %v4788_v43 = vor.u32 %v4787_v49, %v9108_v13  ;;  %v5088_v10 = vrot.slane %v7054_v35, 5 }
 0x211   : > { %v4009_v58 = vpop.f32.mrf.mxu2  ;;  %v3371_v29 = vpop.f32.mrf.mxu0  ;;  %v4778_v16 = vor.u32 %v4777_v46, %v4774_v21  ;;  %v5542_v53 = vpack.c.b16 %v5533_v17, %v5532_v55  ;;  %v5496_v54 = vor.u32 %v5495_v56, %v9113_v28  ;;  %v5501_v25 = vrot.slane %v5499_v51, 5 }
 0x212   : > { %v4419_v24 = vpop.f32.mrf.mxu3  ;;  %v4523_v38 = vmax.f32 %v4507_v57, 0.0  ;;  %v4034_v7 = vadd.f32 %v4009_v58, %v3804_v5  ;;  %v3781_v20 = vpop.f32.mrf.mxu1  ;;  %v7173_v57 = vld [vmem:[%s7742_s9 + $0x6c] sm:$0xe]  ;;  %v7063_v58 = vrot.slane %v7053_v8, 9  ;;  %v4789_v6 = vrot.slane %v4788_v43, 4 }
 0x213   : > { %v3805_v4 = vadd.f32 %v3781_v20, %v3371_v29  ;;  %v4779_v19 = vrot.slane %v4778_v16, 4  ;;  %v5090_v2 = vrot.slane %v5088_v10, 4  ;;  %v7183_v29 = vrot.slane %v7173_v57, 9 }
 0x214   : > { %6969 = vst [vmem:[%s8085_s27 + $0x148] sm:$0xff] %v4523_v38  ;;  %v4444_v36 = vadd.f32 %v4419_v24, %v4034_v7  ;;  %v7175_v24 = vld [vmem:[%s7742_s9 + $0x74] sm:$0x1]  ;;  %v5487_v7 = vrot.slane %v5486_v61, 4  ;;  %v5497_v20 = vrot.slane %v5496_v54, 4  ;;  %v5798_v34 = vrot.slane %v5796_v3, 4 }
 0x215   : > { %v5799_v42 = vrot.slane %v7175_v24, 5  ;;  %v5089_v21 = vsel %vm7936_vm5, %v7063_v58, %v5088_v10  ;;  %v5092_v46 = vsel %vm7936_vm5, %v5090_v2, %v5091_v26  ;;  %v5797_v63 = vsel %vm7936_vm5, %v7183_v29, %v5796_v3 }
 0x216   : > { %v4492_v27 = vmul.f32 %v8935_v52, %v4444_v36  ;;  %v4784_v36 = vsel %vm7754_vm2, %v4779_v19, %v9108_v13  ;;  %v5492_v17 = vsel %vm7754_vm2, %v5487_v7, %v9113_v28  ;;  %v5502_v13 = vsel %vm7754_vm2, %v5497_v20, %v5501_v25 }
 0x217   : > { %v5800_v35 = vsel %vm7936_vm5, %v5798_v34, %v5799_v42  ;;  %v5124_v40 = vunpack.c.l.b16 %v5089_v21  ;;  %v5535_v28 = vunpack.c.l.b16 %v5502_v13  ;;  %v5832_v16 = vunpack.c.l.b16 %v5797_v63 }
 0x218   : > { %v4508_v44 = vadd.f32 %v8947_v22, %v4492_v27  ;;  %v4794_v27 = vsel %vm7754_vm2, %v4789_v6, %v4793_v23  ;;  %v5833_v50 = vunpack.c.l.b16 %v5800_v35 }
 0x219   : > { %v4011_v62 = vpop.f32.mrf.mxu2  ;;  %v3374_v18 = vpop.f32.mrf.mxu0  ;;  %v4827_v56 = vunpack.c.l.b16 %v4794_v27 }
 0x21a   : > { %v4421_v48 = vpop.f32.mrf.mxu3  ;;  %v4524_v5 = vmax.f32 %v4508_v44, 0.0  ;;  %v4035_v41 = vadd.f32 %v4011_v62, %v3805_v4  ;;  %v3784_v60 = vpop.f32.mrf.mxu1  ;;  %v5125_v44 = vunpack.c.l.b16 %v5092_v46  ;;  %v5534_v4 = vunpack.c.l.b16 %v5492_v17 }
 0x21b   : > { %v3806_v38 = vadd.f32 %v3784_v60, %v3374_v18 }
 0x21c   : > { %6970 = vst [vmem:[%s8085_s27 + $0x150] sm:$0xff] %v4524_v5  ;;  %v4445_v1 = vadd.f32 %v4421_v48, %v4035_v41  ;;  %4930 = vmatmul.bf16.gmra.mxu0 %v4834_v9  ;;  %v5543_v5 = vpack.c.b16 %v5535_v28, %v5534_v4  ;;  %v5841_v41 = vpack.c.b16 %v5833_v50, %v5832_v16 }
 0x21d   : > { %5228 = vmatmul.bf16.gmra.mxu1 %v5132_v45  ;;  %v4826_v45 = vunpack.c.l.b16 %v4784_v36 }
 0x21e   : > { %v4493_v33 = vmul.f32 %v8935_v52, %v4445_v1  ;;  %5638 = vmatmul.bf16.gmra.mxu2 %v5542_v53 }
 0x21f   : > { %5936 = vmatmul.bf16.gmra.mxu3 %v5840_v59  ;;  %v4835_v37 = vpack.c.b16 %v4827_v56, %v4826_v45  ;;  %v5133_v59 = vpack.c.b16 %v5125_v44, %v5124_v40 }
 0x220   : > { %v4509_v31 = vadd.f32 %v8947_v22, %v4493_v33 }
 0x221   : > { %v4014_v55 = vpop.f32.mrf.mxu2  ;;  %v3376_v49 = vpop.f32.mrf.mxu0 }
 0x222   : > { %v4424_v11 = vpop.f32.mrf.mxu3  ;;  %v4525_v32 = vmax.f32 %v4509_v31, 0.0  ;;  %v4036_v47 = vadd.f32 %v4014_v55, %v3806_v38  ;;  %v3786_v30 = vpop.f32.mrf.mxu1 }
 0x223   : > { %v3807_v15 = vadd.f32 %v3786_v30, %v3376_v49 }
 0x224   : > { %6971 = vst [vmem:[%s8085_s27 + $0x158] sm:$0xff] %v4525_v32  ;;  %v4446_v39 = vadd.f32 %v4424_v11, %v4036_v47 }
 0x226   : > { %v4494_v9 = vmul.f32 %v8935_v52, %v4446_v39 }
 0x228   : > { %v4510_v14 = vadd.f32 %v8947_v22, %v4494_v9 }
 0x229   : > { %v4016_v62 = vpop.f32.mrf.mxu2  ;;  %v3379_v8 = vpop.f32.mrf.mxu0 }
 0x22a   : > { %v4426_v48 = vpop.f32.mrf.mxu3  ;;  %v4526_v43 = vmax.f32 %v4510_v14, 0.0  ;;  %v4037_v0 = vadd.f32 %v4016_v62, %v3807_v15  ;;  %v3789_v10 = vpop.f32.mrf.mxu1 }
 0x22b   : > { %v3808_v53 = vadd.f32 %v3789_v10, %v3379_v8 }
 0x22c   : > { %6972 = vst [vmem:[%s8085_s27 + $0x160] sm:$0xff] %v4526_v43  ;;  %v4447_v18 = vadd.f32 %v4426_v48, %v4037_v0  ;;  %4935 = vmatmul.bf16.gmra.mxu0 %v4835_v37 }
 0x22d   : > { %5233 = vmatmul.bf16.gmra.mxu1 %v5133_v59 }
 0x22e   : > { %v4495_v60 = vmul.f32 %v8935_v52, %v4447_v18  ;;  %5643 = vmatmul.bf16.gmra.mxu2 %v5543_v5 }
 0x22f   : > { %5941 = vmatmul.bf16.gmra.mxu3 %v5841_v41 }
 0x230   : > { %v4511_v12 = vadd.f32 %v8947_v22, %v4495_v60 }
 0x231   : > { %v4019_v61 = vpop.f32.mrf.mxu2  ;;  %v3381_v3 = vpop.f32.mrf.mxu0 }
 0x232   : > { %v4429_v54 = vpop.f32.mrf.mxu3  ;;  %v4527_v51 = vmax.f32 %v4511_v12, 0.0  ;;  %v4038_v57 = vadd.f32 %v4019_v61, %v3808_v53  ;;  %v3791_v1 = vpop.f32.mrf.mxu1 }
 0x233   : > { %v3809_v6 = vadd.f32 %v3791_v1, %v3381_v3 }
 0x234   : > { %6973 = vst [vmem:[%s8085_s27 + $0x168] sm:$0xff] %v4527_v51  ;;  %v4448_v19 = vadd.f32 %v4429_v54, %v4038_v57 }
 0x236   : > { %v4496_v58 = vmul.f32 %v8935_v52, %v4448_v19 }
 0x238   : > { %v4512_v24 = vadd.f32 %v8947_v22, %v4496_v58 }
 0x239   : > { %v4021_v23 = vpop.f32.mrf.mxu2  ;;  %v4901_v38 = vpop.f32.mrf.mxu0 }
 0x23a   : > { %v4431_v2 = vpop.f32.mrf.mxu3  ;;  %v4528_v26 = vmax.f32 %v4512_v24, 0.0  ;;  %v4039_v33 = vadd.f32 %v4021_v23, %v3809_v6  ;;  %v5199_v7 = vpop.f32.mrf.mxu1 }
 0x23b   : > { %v5239_v25 = vadd.f32 %v5199_v7, %v4901_v38 }
 0x23c   : > { %6974 = vst [vmem:[%s8085_s27 + $0x170] sm:$0xff] %v4528_v26  ;;  %v4449_v29 = vadd.f32 %v4431_v2, %v4039_v33 }
 0x23e   : > { %v4497_v20 = vmul.f32 %v8935_v52, %v4449_v29 }
 0x240   : > { %v4513_v34 = vadd.f32 %v8947_v22, %v4497_v20 }
 0x241   : > { %v5609_v42 = vpop.f32.mrf.mxu2  ;;  %v4903_v36 = vpop.f32.mrf.mxu0 }
 0x242   : > { %v5907_v31 = vpop.f32.mrf.mxu3  ;;  %v4529_v55 = vmax.f32 %v4513_v34, 0.0  ;;  %v5649_v11 = vadd.f32 %v5609_v42, %v5239_v25  ;;  %v5201_v21 = vpop.f32.mrf.mxu1 }
 0x243   : > { %v5240_v49 = vadd.f32 %v5201_v21, %v4903_v36 }
 0x244   : > { %6975 = vst [vmem:[%s8085_s27 + $0x178] sm:$0xff] %v4529_v55  ;;  %v5947_v46 = vadd.f32 %v5907_v31, %v5649_v11 }
 0x246   : > { %v5995_v32 = vmul.f32 %v8935_v52, %v5947_v46 }
 0x248   : > { %v6011_v47 = vadd.f32 %v8947_v22, %v5995_v32 }
 0x249   : > { %v5611_v30 = vpop.f32.mrf.mxu2  ;;  %v4906_v63 = vpop.f32.mrf.mxu0 }
 0x24a   : > { %v5909_v27 = vpop.f32.mrf.mxu3  ;;  %v6027_v17 = vmax.f32 %v6011_v47, 0.0  ;;  %v5650_v13 = vadd.f32 %v5611_v30, %v5240_v49  ;;  %v5204_v35 = vpop.f32.mrf.mxu1 }
 0x24b   : > { %v5241_v45 = vadd.f32 %v5204_v35, %v4906_v63 }
 0x24c   : > { %7216 = vst [vmem:[%s8085_s27 + $0x180] sm:$0xff] %v6027_v17  ;;  %v5948_v39 = vadd.f32 %v5909_v27, %v5650_v13 }
 0x24e   : > { %v5996_v40 = vmul.f32 %v8935_v52, %v5948_v39 }
 0x250   : > { %v6012_v56 = vadd.f32 %v8947_v22, %v5996_v40 }
 0x251   : > { %v5614_v44 = vpop.f32.mrf.mxu2  ;;  %v4908_v16 = vpop.f32.mrf.mxu0 }
 0x252   : > { %v5912_v4 = vpop.f32.mrf.mxu3  ;;  %v6028_v9 = vmax.f32 %v6012_v56, 0.0  ;;  %v5651_v28 = vadd.f32 %v5614_v44, %v5241_v45  ;;  %v5206_v50 = vpop.f32.mrf.mxu1 }
 0x253   : > { %v5242_v48 = vadd.f32 %v5206_v50, %v4908_v16  ;;  %v9186_v50 = vld [vmem:[%s9269_s2] ss:$0 sm:$0xff] }
 0x254   : > { %7217 = vst [vmem:[%s8085_s27 + $0x188] sm:$0xff] %v6028_v9  ;;  %v5949_v14 = vadd.f32 %v5912_v4, %v5651_v28 }
 0x256   : > { %v5997_v15 = vmul.f32 %v8935_v52, %v5949_v14 }
 0x258   : > { %v6013_v62 = vadd.f32 %v8947_v22, %v5997_v15 }
 0x259   : > { %v5616_v37 = vpop.f32.mrf.mxu2  ;;  %v4911_v8 = vpop.f32.mrf.mxu0 }
 0x25a   : > { %v5914_v59 = vpop.f32.mrf.mxu3  ;;  %v6029_v43 = vmax.f32 %v6013_v62, 0.0  ;;  %v5652_v0 = vadd.f32 %v5616_v37, %v5242_v48  ;;  %v5209_v10 = vpop.f32.mrf.mxu1 }
 0x25b   : > { %v5243_v18 = vadd.f32 %v5209_v10, %v4911_v8 }
 0x25c   : > { %7218 = vst [vmem:[%s8085_s27 + $0x190] sm:$0xff] %v6029_v43  ;;  %v5950_v5 = vadd.f32 %v5914_v59, %v5652_v0 }
 0x25e   : > { %v5998_v41 = vmul.f32 %v8935_v52, %v5950_v5 }
 0x260   : > { %v6014_v60 = vadd.f32 %v8947_v22, %v5998_v41  ;;  %v9195_v41 = vld [vmem:[%s9270_s3] ss:$0 sm:$0xff] }
 0x261   : > { %v5619_v53 = vpop.f32.mrf.mxu2  ;;  %v4913_v51 = vpop.f32.mrf.mxu0 }
 0x262   : > { %v5917_v12 = vpop.f32.mrf.mxu3  ;;  %v6030_v61 = vmax.f32 %v6014_v60, 0.0  ;;  %v5653_v54 = vadd.f32 %v5619_v53, %v5243_v18  ;;  %v5211_v57 = vpop.f32.mrf.mxu1 }
 0x263   : > { %v5244_v58 = vadd.f32 %v5211_v57, %v4913_v51 }
 0x264   : > { %7219 = vst [vmem:[%s8085_s27 + $0x198] sm:$0xff] %v6030_v61  ;;  %v5951_v3 = vadd.f32 %v5917_v12, %v5653_v54 }
 0x266   : > { %v5999_v1 = vmul.f32 %v8935_v52, %v5951_v3 }
 0x268   : > { %v6015_v19 = vadd.f32 %v8947_v22, %v5999_v1 }
 0x269   : > { %v5621_v24 = vpop.f32.mrf.mxu2  ;;  %v4916_v26 = vpop.f32.mrf.mxu0 }
 0x26a   : > { %v5919_v6 = vpop.f32.mrf.mxu3  ;;  %v6031_v23 = vmax.f32 %v6015_v19, 0.0  ;;  %v5654_v2 = vadd.f32 %v5621_v24, %v5244_v58  ;;  %v5214_v33 = vpop.f32.mrf.mxu1 }
 0x26b   : > { %v5245_v29 = vadd.f32 %v5214_v33, %v4916_v26 }
 0x26c   : > { %7220 = vst [vmem:[%s8085_s27 + $0x1a0] sm:$0xff] %v6031_v23  ;;  %v5952_v38 = vadd.f32 %v5919_v6, %v5654_v2 }
 0x26e   : > { %v6000_v7 = vmul.f32 %v8935_v52, %v5952_v38 }
 0x270   : > { %v6016_v20 = vadd.f32 %v8947_v22, %v6000_v7 }
 0x271   : > { %v5624_v25 = vpop.f32.mrf.mxu2  ;;  %v4918_v55 = vpop.f32.mrf.mxu0 }
 0x272   : > { %v5922_v34 = vpop.f32.mrf.mxu3  ;;  %v6032_v42 = vmax.f32 %v6016_v20, 0.0  ;;  %v5655_v31 = vadd.f32 %v5624_v25, %v5245_v29  ;;  %v5216_v11 = vpop.f32.mrf.mxu1 }
 0x273   : > { %v5246_v32 = vadd.f32 %v5216_v11, %v4918_v55 }
 0x274   : > { %7221 = vst [vmem:[%s8085_s27 + $0x1a8] sm:$0xff] %v6032_v42  ;;  %v5953_v36 = vadd.f32 %v5922_v34, %v5655_v31 }
 0x276   : > { %v6001_v21 = vmul.f32 %v8935_v52, %v5953_v36 }
 0x278   : > { %v6017_v46 = vadd.f32 %v8947_v22, %v6001_v21 }
 0x279   : > { %v5626_v47 = vpop.f32.mrf.mxu2  ;;  %v4921_v17 = vpop.f32.mrf.mxu0 }
 0x27a   : > { %v5924_v49 = vpop.f32.mrf.mxu3  ;;  %v6033_v30 = vmax.f32 %v6017_v46, 0.0  ;;  %v5656_v27 = vadd.f32 %v5626_v47, %v5246_v32  ;;  %v5219_v13 = vpop.f32.mrf.mxu1 }
 0x27b   : > { %v5247_v39 = vadd.f32 %v5219_v13, %v4921_v17 }
 0x27c   : > { %7222 = vst [vmem:[%s8085_s27 + $0x1b0] sm:$0xff] %v6033_v30  ;;  %v5954_v63 = vadd.f32 %v5924_v49, %v5656_v27 }
 0x27e   : > { %v6002_v35 = vmul.f32 %v8935_v52, %v5954_v63 }
 0x280   : > { %v6018_v40 = vadd.f32 %v8947_v22, %v6002_v35 }
 0x281   : > { %v5629_v45 = vpop.f32.mrf.mxu2  ;;  %v4923_v9 = vpop.f32.mrf.mxu0 }
 0x282   : > { %v5927_v56 = vpop.f32.mrf.mxu3  ;;  %v6034_v44 = vmax.f32 %v6018_v40, 0.0  ;;  %v5657_v4 = vadd.f32 %v5629_v45, %v5247_v39  ;;  %v5221_v28 = vpop.f32.mrf.mxu1 }
 0x283   : > { %v5248_v15 = vadd.f32 %v5221_v28, %v4923_v9 }
 0x284   : > { %7223 = vst [vmem:[%s8085_s27 + $0x1b8] sm:$0xff] %v6034_v44  ;;  %v5955_v16 = vadd.f32 %v5927_v56, %v5657_v4 }
 0x286   : > { %v6003_v14 = vmul.f32 %v9186_v50, %v5955_v16 }
 0x288   : > { %v6019_v52 = vadd.f32 %v8947_v22, %v6003_v14 }
 0x289   : > { %v5631_v62 = vpop.f32.mrf.mxu2  ;;  %v4926_v43 = vpop.f32.mrf.mxu0 }
 0x28a   : > { %v5929_v48 = vpop.f32.mrf.mxu3  ;;  %v6035_v37 = vmax.f32 %v6019_v52, 0.0  ;;  %v5658_v59 = vadd.f32 %v5631_v62, %v5248_v15  ;;  %v5224_v0 = vpop.f32.mrf.mxu1 }
 0x28b   : > { %v5249_v5 = vadd.f32 %v5224_v0, %v4926_v43 }
 0x28c   : > { %7224 = vst [vmem:[%s8085_s27 + $0x1c0] sm:$0xff] %v6035_v37  ;;  %v5956_v8 = vadd.f32 %v5929_v48, %v5658_v59 }
 0x28e   : > { %v6004_v10 = vmul.f32 %v9186_v50, %v5956_v8 }
 0x290   : > { %v6020_v22 = vadd.f32 %v9195_v41, %v6004_v10 }
 0x291   : > { %v5634_v18 = vpop.f32.mrf.mxu2  ;;  %v4928_v61 = vpop.f32.mrf.mxu0 }
 0x292   : > { %v5932_v60 = vpop.f32.mrf.mxu3  ;;  %v6036_v53 = vmax.f32 %v6020_v22, 0.0  ;;  %v5659_v12 = vadd.f32 %v5634_v18, %v5249_v5  ;;  %v5226_v54 = vpop.f32.mrf.mxu1 }
 0x293   : > { %v5250_v1 = vadd.f32 %v5226_v54, %v4928_v61 }
 0x294   : > { %7225 = vst [vmem:[%s8085_s27 + $0x1c8] sm:$0xff] %v6036_v53  ;;  %v5957_v51 = vadd.f32 %v5932_v60, %v5659_v12 }
 0x296   : > { %v6005_v57 = vmul.f32 %v9186_v50, %v5957_v51 }
 0x298   : > { %v6021_v3 = vadd.f32 %v9195_v41, %v6005_v57 }
 0x299   : > { %v5636_v19 = vpop.f32.mrf.mxu2  ;;  %v4931_v23 = vpop.f32.mrf.mxu0 }
 0x29a   : > { %v5934_v58 = vpop.f32.mrf.mxu3  ;;  %v6037_v24 = vmax.f32 %v6021_v3, 0.0  ;;  %v5660_v6 = vadd.f32 %v5636_v19, %v5250_v1  ;;  %v5229_v2 = vpop.f32.mrf.mxu1 }
 0x29b   : > { %v5251_v38 = vadd.f32 %v5229_v2, %v4931_v23 }
 0x29c   : > { %7226 = vst [vmem:[%s8085_s27 + $0x1d0] sm:$0xff] %v6037_v24  ;;  %v5958_v26 = vadd.f32 %v5934_v58, %v5660_v6 }
 0x29e   : > { %v6006_v33 = vmul.f32 %v9186_v50, %v5958_v26 }
 0x2a0   : > { %v6022_v7 = vadd.f32 %v9195_v41, %v6006_v33 }
 0x2a1   : > { %v5639_v29 = vpop.f32.mrf.mxu2  ;;  %v4933_v42 = vpop.f32.mrf.mxu0 }
 0x2a2   : > { %v5937_v20 = vpop.f32.mrf.mxu3  ;;  %v6038_v25 = vmax.f32 %v6022_v7, 0.0  ;;  %v5661_v34 = vadd.f32 %v5639_v29, %v5251_v38  ;;  %v5231_v31 = vpop.f32.mrf.mxu1 }
 0x2a3   : > { %v5252_v21 = vadd.f32 %v5231_v31, %v4933_v42 }
 0x2a4   : > { %7227 = vst [vmem:[%s8085_s27 + $0x1d8] sm:$0xff] %v6038_v25  ;;  %v5959_v55 = vadd.f32 %v5937_v20, %v5661_v34 }
 0x2a6   : > { %v6007_v11 = vmul.f32 %v9186_v50, %v5959_v55 }
 0x2a8   : > { %v6023_v36 = vadd.f32 %v9195_v41, %v6007_v11 }
 0x2a9   : > { %v5641_v46 = vpop.f32.mrf.mxu2  ;;  %v4936_v30 = vpop.f32.mrf.mxu0 }
 0x2aa   : > { %v5939_v32 = vpop.f32.mrf.mxu3  ;;  %v6039_v47 = vmax.f32 %v6023_v36, 0.0  ;;  %v5662_v49 = vadd.f32 %v5641_v46, %v5252_v21  ;;  %v5234_v27 = vpop.f32.mrf.mxu1 }
 0x2ab   : > { %v5253_v63 = vadd.f32 %v5234_v27, %v4936_v30 }
 0x2ac   : > { %7228 = vst [vmem:[%s8085_s27 + $0x1e0] sm:$0xff] %v6039_v47  ;;  %v5960_v17 = vadd.f32 %v5939_v32, %v5662_v49 }
 0x2ae   : > { %v6008_v13 = vmul.f32 %v9186_v50, %v5960_v17 }
 0x2b0   : > { %v6024_v35 = vadd.f32 %v9195_v41, %v6008_v13 }
 0x2b1   : > { %v5644_v39 = vpop.f32.mrf.mxu2  ;;  %v4938_v4 = vpop.f32.mrf.mxu0 }
 0x2b2   : > { %v5942_v40 = vpop.f32.mrf.mxu3  ;;  %v6040_v45 = vmax.f32 %v6024_v35, 0.0  ;;  %v5663_v56 = vadd.f32 %v5644_v39, %v5253_v63  ;;  %v5236_v9 = vpop.f32.mrf.mxu1 }
 0x2b3   : > { %v5254_v14 = vadd.f32 %v5236_v9, %v4938_v4 }
 0x2b4   : > { %7229 = vst [vmem:[%s8085_s27 + $0x1e8] sm:$0xff] %v6040_v45  ;;  %v5961_v44 = vadd.f32 %v5942_v40, %v5663_v56 }
 0x2b6   : > { %v6009_v28 = vmul.f32 %v9186_v50, %v5961_v44 }
 0x2b8   : > { %v6025_v16 = vadd.f32 %v9195_v41, %v6009_v28 }
 0x2b9   : > { %v5646_v52 = vpop.f32.mrf.mxu2 }
 0x2ba   : > { %v6041_v15 = vmax.f32 %v6025_v16, 0.0  ;;  %v5664_v62 = vadd.f32 %v5646_v52, %v5254_v14  ;;  %v5944_v48 = vpop.f32.mrf.mxu3 }
 0x2bc   : > { %7230 = vst [vmem:[%s8085_s27 + $0x1f0] sm:$0xff] %v6041_v15  ;;  %v5962_v37 = vadd.f32 %v5944_v48, %v5664_v62 }
 0x2be   : > { %v6010_v59 = vmul.f32 %v9186_v50, %v5962_v37 }
 0x2c0   : > { %v6026_v43 = vadd.f32 %v9195_v41, %v6010_v59 }
 0x2c2   : > { %v6042_v0 = vmax.f32 %v6026_v43, 0.0 }
 0x2c4   : > { %7231 = vst [vmem:[%s8085_s27 + $0x1f8] sm:$0xff] %v6042_v0 }
 0x2c5   : > { %s7233_s11 = sshll.u32 %s7591_s18, 4  ;;  %s7234_s14 = sshll.u32 %s7595_s19, 7 }
 0x2c6   : > { %s6073_s24 = sadd.s32 %s7234_s14, %s7233_s11  ;;  %s6086_s23 = sshll.u32 %s8085_s27, 4  ;;  %s6087_s23 = int_to_ptr.vmem [resolvable:$true] %s6086_s23 }
 0x2c7   : > { %s7235_s28 = sshll.u32 %s6073_s24, 3  ;;  %s7612_s7 = smov 2048  }
 0x2c8   : > { %s6075_s6 = scalar_lea.hbm %s9271_s4, %s7235_s28  ;;  %7404 = sst [smem:[#allocation8]] (%p7696_p3), %s7612_s7 }
 0x2c9   : > { %s6088_s13 = sshll.u32 %s6075_s6, 4  ;;  %s7613_s8 = smov 4096   ;;  %s6089_s13 = int_to_ptr.hbm [resolvable:$true] %s6088_s13 }
 0x2ca   : > { %7405 = sst [smem:[#allocation8 + $0x1]] (%p7696_p3), %s7613_s8  ;;  %s7614_s18 = smov 16  }
 0x2cb   : > { %7406 = sst [smem:[#allocation8 + $0x2]] (%p7696_p3), %s7614_s18  ;;  %s7615_s19 = smov 128  }
 0x2cc   : > { %7407 = sst [smem:[#allocation8 + $0x3]] (%p7696_p3), %s7615_s19  ;;  %s7616_s27 = smov 8  }
 0x2cd   : > { %7408 = sst [smem:[#allocation8 + $0x4]] (%p7696_p3), %s7615_s19  ;;  %s7617_s11 = smov [#allocation7]  }
 0x2ce   : > { %7409 = sst [smem:[#allocation8 + $0x5]] (%p7696_p3), %s7616_s27  ;;  %s7618_s14 = smov 0  }
 0x2cf   : > { %7410 = dma.general (%p7696_p3), %s6087_s23, 8192, %s6089_s13, %s6061_s10, %s7617_s11, [#allocation8], %s7618_s14, 0  }
 0x2d0 PF: > { %p7422_p2 = scmp.ge.s32.totalorder %s7607_s22, 2  ;;  %s6116_s24 = sand.u32 1, %s7579_s15  }
 0x2d1   : > { %s6117_s28 = scalar_lea.sflag [#allocation5], %s6116_s24 }
 0x2d2   : > { %p7417_p4 = pnand %p7422_p2, %p7705_p8 }
 0x2d4   : > { %p7418_p5 = pneg %p7417_p4 }
 0x2d6   : > { %7574 = dma.done.wait (%p7418_p5), %s6117_s28, 8192  }
 0x2d7   : > { %7576 = vsyncadd (%p7418_p5), %s6117_s28, 4294959104  ;;  %s18_s22 = sadd.s32 1, %s7607_s22   ;;  %s9280_s15 = smov %s7583_s16 }
 0x2d8   : > { %p15_p6 = scmp.ge.s32.totalorder %s18_s22, 6   ;;  %s9281_s16 = smov %s7587_s17 }
 0x2d9   : > { %s9282_s17 = smov %s7726_s12  ;;  %s9283_s18 = smov %s7599_s20 }
 0x2da   : > { %s9284_s19 = smov %s7603_s21  ;;  %s9285_s20 = smov %s9288_s25 }
 0x2db   : > { %s9286_s21 = smov %s9292_s26  ;;  %17 = sbr.rel (!%p15_p6) target bundleno = 6 (0x6), region = 109 }
 0x2e0   :  { %6123 = vsyncpa [#allocation4], 1 }
 0x2e1   :  { %6125 = vsyncpa [#allocation4 + $0x1], 1 }
 0x2e2   :  { %6126 = vsyncpa [#allocation5], 1 }
 0x2e3   :  { %6128 = vsyncpa [#allocation5 + $0x1], 1 }

</bundles_post_ra>
